<compile_context>
chip_gen: v7x
topology: tpu7x:2x2x1
jax: 0.10.0
libtpu: 0.0.40
codegen_flags: <defaults>
</compile_context>

<pallas_src>
import numpy as np

import jax
import jax.numpy as jnp
from jax import lax
from jax.experimental import pallas as pl
from jax.experimental.pallas import tpu as pltpu

# ----------------------------------------------------------------------------
# Hyperparameters (mirror of the `args` object used by ValidAutoUnet.__init__).
# forward slices x[:, :, c:-c] (3-D) and uses 'linear' interpolation
# => nnconv = nn.Conv1d, nnmp = nn.MaxPool1d.
# ----------------------------------------------------------------------------
NUM_CHANNEL = 8          # args.num_channel
KERNEL_SIZE = 3          # args.kernel_size (odd)
ACTIVATION = "relu"      # args.activation
SCALE_R = 2              # args.scale_r  (MaxPool1d(kernel=stride=scale_r))
N_LAYER_ENC = 4          # args.n_layer_enc
N_LAYER_DEC = 2          # args.n_layer_dec
CONV_BIAS = True         # args.conv_bias

FIRST_CH = min(128, NUM_CHANNEL)
CH_OUT = 2 * NUM_CHANNEL

# The fused kernel below is specialized to this configuration.
assert N_LAYER_ENC == 4 and N_LAYER_DEC == 2 and KERNEL_SIZE % 2 == 1

# ----------------------------------------------------------------------------
# Single lane-dense output slab layout (rows; lanes 0..127, length-padded).
# ----------------------------------------------------------------------------
OUT_LANES = 128
OUT_R_R0 = 0                               # act(last_conv): CH_OUT rows
OUT_XS0_R0 = CH_OUT                        # remaining xs[0]: nc rows
OUT_YS0_R0 = CH_OUT + NUM_CHANNEL          # ys[0]: nc rows
OUT_YS1_R0 = CH_OUT + 2 * NUM_CHANNEL      # ys[1]: 2*nc rows
OUT_YS2_R0 = CH_OUT + 4 * NUM_CHANNEL      # ys[2]: 2*nc rows
OUT_ROWS = CH_OUT + 6 * NUM_CHANNEL        # 64 rows for nc=8

# f32 MXU dots at full precision (exact one-hot selection, ~f32 conv accuracy).
_DOT = dict(preferred_element_type=jnp.float32, precision=lax.Precision.HIGHEST)


# ----------------------------------------------------------------------------
# Host-built constants.
# ----------------------------------------------------------------------------
def _interp_matrix(ly, r):
    """(ly, ly*r) matrix implementing F.interpolate(mode='linear',
    align_corners=False) for integer scale factor r (exact PyTorch weights)."""
    u = np.zeros((ly, ly * r), np.float32)
    for l in range(ly * r):
        src = max((l + 0.5) / float(r) - 0.5, 0.0)   # PyTorch clamps src < 0 to 0
        i0 = int(np.floor(src))
        i1 = min(i0 + 1, ly - 1)
        w = src - i0
        u[i0, l] += 1.0 - w
        u[i1, l] += w
    return u


def _pack_constants(params, u_mats):
    """Pack every weight / bias / interpolation matrix into one (ROWS, 128)
    f32 slab (one DMA).  Returns (slab, conv_meta, u_offs); all offsets are
    static Python ints baked into the kernel."""
    blocks, row = [], 0

    def add(a):
        nonlocal row
        a = jnp.asarray(a, jnp.float32)
        assert a.ndim == 2 and a.shape[1] <= OUT_LANES
        off = row
        blocks.append((off, a))
        row += ((a.shape[0] + 7) // 8) * 8            # keep blocks 8-row aligned
        return off

    conv_meta = {}

    def add_conv(name, wb, part_cins):
        w, b = wb                                     # (Cout,Cin,K), (Cout,)
        cout, cin, k = w.shape
        # (Cout,Cin,K) -> (K*Cout,Cin): tap-k block = rows [k*Cout:(k+1)*Cout]
        wt = jnp.transpose(w, (2, 0, 1)).reshape(k * cout, cin)
        conv_meta[name] = (add(wt), add(b.reshape(-1, 1)), cout, tuple(part_cins))

    add_conv("d_conv0", params["d_conv0"], (1,))
    add_conv("enc0", params["d_convs"][0], (FIRST_CH,))
    for i in range(1, N_LAYER_ENC):
        add_conv(f"enc{i}", params["d_convs"][i], (NUM_CHANNEL,))
    add_conv("encode", params["encode_conv"], (NUM_CHANNEL,))
    add_conv("dec0", params["u_convs"][0], (NUM_CHANNEL,))
    add_conv("dec1", params["u_convs"][1], (NUM_CHANNEL, NUM_CHANNEL))
    add_conv("last", params["last_conv"], (NUM_CHANNEL, NUM_CHANNEL))

    u_offs = tuple(add(u) for u in u_mats)            # 2 interpolation matrices

    slab = jnp.zeros((((row + 7) // 8) * 8, OUT_LANES), jnp.float32)
    for off, a in blocks:
        slab = slab.at[off:off + a.shape[0], 0:a.shape[1]].set(a)
    return slab, conv_meta, u_offs


# ----------------------------------------------------------------------------
# The fused whole-network kernel (one batch element per grid step).
# Activations live in (C, L) lane-dense layout (L on lanes, C on sublanes).
# ----------------------------------------------------------------------------
def _make_kernel(conv_meta, u_offs):
    K, R, nc = KERNEL_SIZE, SCALE_R, NUM_CHANNEL

    def kernel(x_ref, c_ref, o_ref):
        def conv_relu(x_parts, name):
            """Valid conv + bias + ReLU via per-tap MXU matmuls.  `x_parts` is a
            list of (c_i, Lin) arrays logically concatenated over channels (so
            skip-connection concats never materialize)."""
            w_off, b_off, cout, part_cins = conv_meta[name]
            lout = x_parts[0].shape[1] - K + 1
            acc = jnp.zeros((cout, lout), jnp.float32)
            col = 0
            for part, cin in zip(x_parts, part_cins):
                for k in range(K):
                    wk = c_ref[w_off + k * cout:w_off + (k + 1) * cout,
                               col:col + cin]               # (cout, cin), static
                    xk = part[:, k:k + lout]                # (cin, lout)
                    if cin == 1:
                        acc = acc + wk * xk                 # outer product -> VPU
                    else:
                        acc = acc + jnp.dot(wk, xk, **_DOT)  # MXU per-tap matmul
                col += cin
            acc = acc + c_ref[b_off:b_off + cout, 0:1]       # bias (cout,1)
            return jnp.maximum(acc, 0.0)                     # ReLU

        def maxpool(a):
            """MaxPool1d(kernel=R, stride=R): windowed max (VPU) then take every
            R-th lane via an in-kernel one-hot iota matmul (MXU, exact at
            HIGHEST precision; avoids strided lane gathers and any HBM const)."""
            lp = a.shape[1] // R
            lm = (lp - 1) * R + 1
            m = a[:, 0:lm]
            for j in range(1, R):
                m = jnp.maximum(m, a[:, j:j + lm])
            rows = lax.broadcasted_iota(jnp.int32, (lm, lp), 0)
            cols = lax.broadcasted_iota(jnp.int32, (lm, lp), 1)
            sel = (rows == R * cols).astype(jnp.float32)
            return jnp.dot(m, sel, **_DOT)

        def upsample(y, j):
            """F.interpolate(scale=R, 'linear', align_corners=False) as a matmul
            with the constant interpolation matrix from the slab."""
            lyc = y.shape[1]
            u = c_ref[u_offs[j]:u_offs[j] + lyc, 0:R * lyc]
            return jnp.dot(y, u, **_DOT)

        x = x_ref[0]                                         # (1, L) lane-dense
        h = conv_relu([x], "d_conv0")                        # act(d_conv0(x))

        xs = []
        for i in range(N_LAYER_ENC):                         # pool(act(conv(x)))
            h = maxpool(conv_relu([h], f"enc{i}"))
            xs.append(h)
        o_ref[0, OUT_XS0_R0:OUT_XS0_R0 + nc, 0:xs[0].shape[1]] = xs[0]

        y = conv_relu([xs[3]], "encode")                     # act(encode_conv(.))
        o_ref[0, OUT_YS0_R0:OUT_YS0_R0 + nc, 0:y.shape[1]] = y

        # ---- decoder layer 1 ------------------------------------------------
        y = upsample(conv_relu([y], "dec0"), 0)              # interp(act(conv(y)))
        skip = xs[2]
        crop = (skip.shape[1] - y.shape[1]) // 2
        skip = skip[:, crop:crop + y.shape[1]]               # x[:, :, crop:-crop]
        o_ref[0, OUT_YS1_R0:OUT_YS1_R0 + nc, 0:y.shape[1]] = y       # cat((y,skip))
        o_ref[0, OUT_YS1_R0 + nc:OUT_YS1_R0 + 2 * nc, 0:y.shape[1]] = skip

        # ---- decoder layer 2 ------------------------------------------------
        y2 = upsample(conv_relu([y, skip], "dec1"), 1)
        skip2 = xs[1]
        crop2 = (skip2.shape[1] - y2.shape[1]) // 2
        skip2 = skip2[:, crop2:crop2 + y2.shape[1]]
        o_ref[0, OUT_YS2_R0:OUT_YS2_R0 + nc, 0:y2.shape[1]] = y2
        o_ref[0, OUT_YS2_R0 + nc:OUT_YS2_R0 + 2 * nc, 0:y2.shape[1]] = skip2

        # ---- head -------------------------------------------------------------
        r = conv_relu([y2, skip2], "last")                   # act(last_conv(y))
        o_ref[0, OUT_R_R0:OUT_R_R0 + CH_OUT, 0:r.shape[1]] = r

    return kernel


# ----------------------------------------------------------------------------
# Parameters (deterministic synthetic init; shapes follow ValidAutoUnet.__init__)
# canonical (PyTorch) layout: weight (Cout, Cin, K); bias (Cout,)
# ----------------------------------------------------------------------------
def _make_conv_params(key, cin, cout, k):
    kw, kb = jax.random.split(key)
    w = jax.random.normal(kw, (cout, cin, k), jnp.float32) / jnp.sqrt(float(cin * k))
    b = jax.random.normal(kb, (cout,), jnp.float32) * 0.01
    return w, b


def init_params(key):
    k = KERNEL_SIZE
    n_ch = NUM_CHANNEL
    n_keys = 1 + N_LAYER_ENC + 1 + N_LAYER_DEC + 1
    keys = list(jax.random.split(key, n_keys))
    params = {}
    params["d_conv0"] = _make_conv_params(keys.pop(0), 1, FIRST_CH, k)
    d_convs = [_make_conv_params(keys.pop(0), FIRST_CH, n_ch, k)]
    for _ in range(N_LAYER_ENC - 1):
        d_convs.append(_make_conv_params(keys.pop(0), n_ch, n_ch, k))
    params["d_convs"] = d_convs
    params["encode_conv"] = _make_conv_params(keys.pop(0), n_ch, n_ch, k)
    u_convs = [_make_conv_params(keys.pop(0), n_ch, n_ch, k)]
    for _ in range(N_LAYER_DEC - 1):
        u_convs.append(_make_conv_params(keys.pop(0), 2 * n_ch, n_ch, k))
    params["u_convs"] = u_convs
    params["last_conv"] = _make_conv_params(keys.pop(0), 2 * n_ch, CH_OUT, k)
    return params


# ----------------------------------------------------------------------------
# Pallas wrapper: one fused pallas_call for the whole forward pass.
# Returns (act(r), xs, ys) in PyTorch NCL layout.
# ----------------------------------------------------------------------------
def valid_auto_unet_forward(x_bl, params):
    B, L = x_bl.shape
    K, nc, f32 = KERNEL_SIZE, NUM_CHANNEL, jnp.float32

    # ---- static length bookkeeping (mirrors the PyTorch forward) ----------
    l = L - (K - 1)                               # after d_conv0
    lens_pool = []
    for _ in range(N_LAYER_ENC):
        lc = l - (K - 1)
        lp = lc // SCALE_R
        lens_pool.append(lp)
        l = lp
    l_enc = l - (K - 1)                           # after encode_conv
    ly = l_enc
    dec_up = []
    for i in range(N_LAYER_DEC):
        lyc = ly - (K - 1)
        lup = lyc * SCALE_R
        diff = lens_pool[N_LAYER_ENC - 2 - i] - lup
        assert diff > 0 and diff % 2 == 0, "invalid crop configuration"
        dec_up.append((lyc, lup))
        ly = lup
    l_r = ly - (K - 1)
    assert lens_pool[0] <= OUT_LANES, "output slab lanes too narrow for xs[0]"

    # ---- pack every constant into one slab; build the specialized kernel ---
    u_mats = [_interp_matrix(lyc, SCALE_R) for (lyc, _) in dec_up]
    slab, conv_meta, u_offs = _pack_constants(params, u_mats)
    kernel = _make_kernel(conv_meta, u_offs)

    x3 = x_bl.reshape(B, 1, L).astype(f32)

    out = pl.pallas_call(
        kernel,
        grid=(B,),
        out_shape=jax.ShapeDtypeStruct((B, OUT_ROWS, OUT_LANES), f32),
        in_specs=[pl.BlockSpec((1, 1, L), lambda b: (b, 0, 0)),
                  pl.BlockSpec(slab.shape, lambda b: (0, 0))],
        out_specs=pl.BlockSpec((1, OUT_ROWS, OUT_LANES), lambda b: (b, 0, 0)),
        compiler_params=pltpu.CompilerParams(
            dimension_semantics=("parallel",)),   # v7x: batch across both TCs
    )(x3, slab)

    # ---- slice the single output slab back into the module's outputs -------
    r = out[:, OUT_R_R0:OUT_R_R0 + CH_OUT, :l_r]
    xs0 = out[:, OUT_XS0_R0:OUT_XS0_R0 + nc, :lens_pool[0]]
    ys0 = out[:, OUT_YS0_R0:OUT_YS0_R0 + nc, :l_enc]
    ys1 = out[:, OUT_YS1_R0:OUT_YS1_R0 + 2 * nc, :dec_up[0][1]]
    ys2 = out[:, OUT_YS2_R0:OUT_YS2_R0 + 2 * nc, :dec_up[1][1]]
    return r, [xs0], [ys0, ys1, ys2]


# ----------------------------------------------------------------------------
# Pure-JAX reference of the PyTorch semantics (for verification only).
# ----------------------------------------------------------------------------
def _ref_forward(x_bl, params):
    K = KERNEL_SIZE

    def conv(x, w, b):
        Lout = x.shape[-1] - K + 1
        acc = jnp.zeros((x.shape[0], w.shape[0], Lout), jnp.float32)
        for k in range(K):
            acc = acc + jnp.einsum("bcl,oc->bol", x[..., k:k + Lout], w[..., k],
                                   precision=lax.Precision.HIGHEST)
        acc = acc + b[None, :, None]
        return jnp.maximum(acc, 0.0)              # args.activation == 'relu'

    def pool(x):
        Bc, C, Lc = x.shape
        lp = Lc // SCALE_R
        return jnp.max(x[..., :lp * SCALE_R].reshape(Bc, C, lp, SCALE_R), axis=-1)

    def upsample(x):
        Bc, C, Lc = x.shape
        Lout = Lc * SCALE_R
        dst = jnp.arange(Lout, dtype=jnp.float32)
        src = jnp.maximum((dst + 0.5) / float(SCALE_R) - 0.5, 0.0)
        i0 = jnp.floor(src).astype(jnp.int32)
        i1 = jnp.minimum(i0 + 1, Lc - 1)
        w = src - i0.astype(jnp.float32)
        x0 = jnp.take(x, i0, axis=-1)
        x1 = jnp.take(x, i1, axis=-1)
        return (1.0 - w)[None, None, :] * x0 + w[None, None, :] * x1

    h = x_bl[:, None, :]
    h = conv(h, *params["d_conv0"])
    xs = []
    for i in range(N_LAYER_ENC):
        h = pool(conv(h, *params["d_convs"][i]))
        xs.append(h)
    ys = []
    y = conv(xs.pop(), *params["encode_conv"])
    ys.append(y)
    for i in range(N_LAYER_DEC):
        y = conv(y, *params["u_convs"][i])
        y = upsample(y)
        skip = xs.pop()
        crop = (skip.shape[-1] - y.shape[-1]) // 2
        skip = skip[..., crop:skip.shape[-1] - crop]
        y = jnp.concatenate([y, skip], axis=1)
        ys.append(y)
    r = conv(y, *params["last_conv"])
    return r, xs, ys


# ----------------------------------------------------------------------------
if __name__ == "__main__":
    key = jax.random.PRNGKey(0)
    k_x, k_p = jax.random.split(key)

    B, L = 2, 176        # chosen so every skip-connection crop is valid (even, > 0)
    x = jax.random.normal(k_x, (B, L), jnp.float32)
    params = init_params(k_p)

    r, xs, ys = valid_auto_unet_forward(x, params)
    jax.block_until_ready(r)
    for t in xs + ys:
        jax.block_until_ready(t)

    # Cross-check against a pure-JAX reference of the PyTorch semantics.
    # HIGHEST-precision MXU dots in the kernel => tight tolerance.
    r_ref, xs_ref, ys_ref = _ref_forward(x, params)
    ok = bool(jnp.allclose(r, r_ref, rtol=1e-3, atol=1e-3))
    for a, b in zip(xs, xs_ref):
        ok = ok and bool(jnp.allclose(a, b, rtol=1e-3, atol=1e-3))
    for a, b in zip(ys, ys_ref):
        ok = ok and bool(jnp.allclose(a, b, rtol=1e-3, atol=1e-3))
    assert ok, "Pallas fused kernel mismatches pure-JAX reference"

    print("KERNEL_OK")
</pallas_src>

<mosaic_0001>
module attributes {stable_mosaic.version = 11 : i64} {
  func.func @kernel(%arg0: i32, %arg1: memref<1x1x176xf32, #tpu.memory_space<vmem>>, %arg2: memref<336x128xf32, #tpu.memory_space<vmem>>, %arg3: memref<1x64x128xf32, #tpu.memory_space<vmem>>) attributes {dimension_semantics = [#tpu.dimension_semantics<parallel>], iteration_bounds = array<i64: 2>, scalar_prefetch = 0 : i64, scratch_operands = 0 : i64, tpu.core_type = #tpu.core_type<tc>, window_params = [{transform_indices = @transform_0, window_bounds = array<i64: 1, 1, 176>}, {pipeline_mode = #tpu.pipeline_mode<synchronous>, transform_indices = @transform_1, window_bounds = array<i64: 336, 128>}, {transform_indices = @transform_2, window_bounds = array<i64: 1, 64, 128>}]} {
    %c0 = arith.constant 0 : index
    %c0_0 = arith.constant 0 : index
    %c0_1 = arith.constant 0 : index
    %0 = vector.load %arg1[%c0, %c0_0, %c0_1] : memref<1x1x176xf32, #tpu.memory_space<vmem>>, vector<1x1x176xf32>
    %1 = vector.shape_cast %0 : vector<1x1x176xf32> to vector<1x176xf32>
    %cst = arith.constant 0.000000e+00 : f32
    %2 = vector.broadcast %cst : f32 to vector<8x174xf32>
    %c0_2 = arith.constant 0 : index
    %c0_3 = arith.constant 0 : index
    %3 = vector.load %arg2[%c0_2, %c0_3] : memref<336x128xf32, #tpu.memory_space<vmem>>, vector<8x1xf32>
    %4 = vector.extract_strided_slice %1 {offsets = [0, 0], sizes = [1, 174], strides = [1, 1]} : vector<1x176xf32> to vector<1x174xf32>
    %5 = vector.broadcast %3 : vector<8x1xf32> to vector<8x174xf32>
    %6 = vector.broadcast %4 : vector<1x174xf32> to vector<8x174xf32>
    %7 = arith.mulf %5, %6 : vector<8x174xf32>
    %8 = arith.addf %2, %7 : vector<8x174xf32>
    %c8 = arith.constant 8 : index
    %c0_4 = arith.constant 0 : index
    %9 = vector.load %arg2[%c8, %c0_4] : memref<336x128xf32, #tpu.memory_space<vmem>>, vector<8x1xf32>
    %10 = vector.extract_strided_slice %1 {offsets = [0, 1], sizes = [1, 174], strides = [1, 1]} : vector<1x176xf32> to vector<1x174xf32>
    %11 = vector.broadcast %9 : vector<8x1xf32> to vector<8x174xf32>
    %12 = vector.broadcast %10 : vector<1x174xf32> to vector<8x174xf32>
    %13 = arith.mulf %11, %12 : vector<8x174xf32>
    %14 = arith.addf %8, %13 : vector<8x174xf32>
    %c16 = arith.constant 16 : index
    %c0_5 = arith.constant 0 : index
    %15 = vector.load %arg2[%c16, %c0_5] : memref<336x128xf32, #tpu.memory_space<vmem>>, vector<8x1xf32>
    %16 = vector.extract_strided_slice %1 {offsets = [0, 2], sizes = [1, 174], strides = [1, 1]} : vector<1x176xf32> to vector<1x174xf32>
    %17 = vector.broadcast %15 : vector<8x1xf32> to vector<8x174xf32>
    %18 = vector.broadcast %16 : vector<1x174xf32> to vector<8x174xf32>
    %19 = arith.mulf %17, %18 : vector<8x174xf32>
    %20 = arith.addf %14, %19 : vector<8x174xf32>
    %c24 = arith.constant 24 : index
    %c0_6 = arith.constant 0 : index
    %21 = vector.load %arg2[%c24, %c0_6] : memref<336x128xf32, #tpu.memory_space<vmem>>, vector<8x1xf32>
    %22 = vector.broadcast %21 : vector<8x1xf32> to vector<8x174xf32>
    %23 = arith.addf %20, %22 : vector<8x174xf32>
    %cst_7 = arith.constant 0.000000e+00 : f32
    %24 = vector.broadcast %cst_7 : f32 to vector<8x174xf32>
    %25 = arith.maximumf %23, %24 : vector<8x174xf32>
    %cst_8 = arith.constant 0.000000e+00 : f32
    %26 = vector.broadcast %cst_8 : f32 to vector<8x172xf32>
    %c32 = arith.constant 32 : index
    %c0_9 = arith.constant 0 : index
    %27 = vector.load %arg2[%c32, %c0_9] : memref<336x128xf32, #tpu.memory_space<vmem>>, vector<8x8xf32>
    %28 = vector.extract_strided_slice %25 {offsets = [0, 0], sizes = [8, 172], strides = [1, 1]} : vector<8x174xf32> to vector<8x172xf32>
    %cst_10 = arith.constant dense<0.000000e+00> : vector<8x172xf32>
    %29 = tpu.matmul %27, %28, %cst_10 {dimension_numbers = #tpu.dot_dimension_numbers<[1], [0], [0], [1], [0, 0, 1, 1], [], []>, precision = #tpu.contract_precision<fp32>} : vector<8x8xf32>, vector<8x172xf32>, vector<8x172xf32> -> vector<8x172xf32>
    %30 = arith.addf %26, %29 : vector<8x172xf32>
    %c40 = arith.constant 40 : index
    %c0_11 = arith.constant 0 : index
    %31 = vector.load %arg2[%c40, %c0_11] : memref<336x128xf32, #tpu.memory_space<vmem>>, vector<8x8xf32>
    %32 = vector.extract_strided_slice %25 {offsets = [0, 1], sizes = [8, 172], strides = [1, 1]} : vector<8x174xf32> to vector<8x172xf32>
    %cst_12 = arith.constant dense<0.000000e+00> : vector<8x172xf32>
    %33 = tpu.matmul %31, %32, %cst_12 {dimension_numbers = #tpu.dot_dimension_numbers<[1], [0], [0], [1], [0, 0, 1, 1], [], []>, precision = #tpu.contract_precision<fp32>} : vector<8x8xf32>, vector<8x172xf32>, vector<8x172xf32> -> vector<8x172xf32>
    %34 = arith.addf %30, %33 : vector<8x172xf32>
    %c48 = arith.constant 48 : index
    %c0_13 = arith.constant 0 : index
    %35 = vector.load %arg2[%c48, %c0_13] : memref<336x128xf32, #tpu.memory_space<vmem>>, vector<8x8xf32>
    %36 = vector.extract_strided_slice %25 {offsets = [0, 2], sizes = [8, 172], strides = [1, 1]} : vector<8x174xf32> to vector<8x172xf32>
    %cst_14 = arith.constant dense<0.000000e+00> : vector<8x172xf32>
    %37 = tpu.matmul %35, %36, %cst_14 {dimension_numbers = #tpu.dot_dimension_numbers<[1], [0], [0], [1], [0, 0, 1, 1], [], []>, precision = #tpu.contract_precision<fp32>} : vector<8x8xf32>, vector<8x172xf32>, vector<8x172xf32> -> vector<8x172xf32>
    %38 = arith.addf %34, %37 : vector<8x172xf32>
    %c56 = arith.constant 56 : index
    %c0_15 = arith.constant 0 : index
    %39 = vector.load %arg2[%c56, %c0_15] : memref<336x128xf32, #tpu.memory_space<vmem>>, vector<8x1xf32>
    %40 = vector.broadcast %39 : vector<8x1xf32> to vector<8x172xf32>
    %41 = arith.addf %38, %40 : vector<8x172xf32>
    %cst_16 = arith.constant 0.000000e+00 : f32
    %42 = vector.broadcast %cst_16 : f32 to vector<8x172xf32>
    %43 = arith.maximumf %41, %42 : vector<8x172xf32>
    %44 = vector.extract_strided_slice %43 {offsets = [0, 0], sizes = [8, 171], strides = [1, 1]} : vector<8x172xf32> to vector<8x171xf32>
    %45 = vector.extract_strided_slice %43 {offsets = [0, 1], sizes = [8, 171], strides = [1, 1]} : vector<8x172xf32> to vector<8x171xf32>
    %46 = arith.maximumf %44, %45 : vector<8x171xf32>
    %47 = tpu.iota {dimensions = array<i32: 0>} : vector<171x86xi32>
    %48 = tpu.iota {dimensions = array<i32: 1>} : vector<171x86xi32>
    %c2_i32 = arith.constant 2 : i32
    %49 = vector.broadcast %c2_i32 : i32 to vector<171x86xi32>
    %50 = arith.muli %49, %48 : vector<171x86xi32>
    %51 = arith.cmpi eq, %47, %50 : vector<171x86xi32>
    %52 = arith.extui %51 : vector<171x86xi1> to vector<171x86xi32>
    %53 = arith.sitofp %52 : vector<171x86xi32> to vector<171x86xf32>
    %cst_17 = arith.constant dense<0.000000e+00> : vector<8x86xf32>
    %54 = tpu.matmul %46, %53, %cst_17 {dimension_numbers = #tpu.dot_dimension_numbers<[1], [0], [0], [1], [0, 0, 1, 1], [], []>, precision = #tpu.contract_precision<fp32>} : vector<8x171xf32>, vector<171x86xf32>, vector<8x86xf32> -> vector<8x86xf32>
    %cst_18 = arith.constant 0.000000e+00 : f32
    %55 = vector.broadcast %cst_18 : f32 to vector<8x84xf32>
    %c64 = arith.constant 64 : index
    %c0_19 = arith.constant 0 : index
    %56 = vector.load %arg2[%c64, %c0_19] : memref<336x128xf32, #tpu.memory_space<vmem>>, vector<8x8xf32>
    %57 = vector.extract_strided_slice %54 {offsets = [0, 0], sizes = [8, 84], strides = [1, 1]} : vector<8x86xf32> to vector<8x84xf32>
    %cst_20 = arith.constant dense<0.000000e+00> : vector<8x84xf32>
    %58 = tpu.matmul %56, %57, %cst_20 {dimension_numbers = #tpu.dot_dimension_numbers<[1], [0], [0], [1], [0, 0, 1, 1], [], []>, precision = #tpu.contract_precision<fp32>} : vector<8x8xf32>, vector<8x84xf32>, vector<8x84xf32> -> vector<8x84xf32>
    %59 = arith.addf %55, %58 : vector<8x84xf32>
    %c72 = arith.constant 72 : index
    %c0_21 = arith.constant 0 : index
    %60 = vector.load %arg2[%c72, %c0_21] : memref<336x128xf32, #tpu.memory_space<vmem>>, vector<8x8xf32>
    %61 = vector.extract_strided_slice %54 {offsets = [0, 1], sizes = [8, 84], strides = [1, 1]} : vector<8x86xf32> to vector<8x84xf32>
    %cst_22 = arith.constant dense<0.000000e+00> : vector<8x84xf32>
    %62 = tpu.matmul %60, %61, %cst_22 {dimension_numbers = #tpu.dot_dimension_numbers<[1], [0], [0], [1], [0, 0, 1, 1], [], []>, precision = #tpu.contract_precision<fp32>} : vector<8x8xf32>, vector<8x84xf32>, vector<8x84xf32> -> vector<8x84xf32>
    %63 = arith.addf %59, %62 : vector<8x84xf32>
    %c80 = arith.constant 80 : index
    %c0_23 = arith.constant 0 : index
    %64 = vector.load %arg2[%c80, %c0_23] : memref<336x128xf32, #tpu.memory_space<vmem>>, vector<8x8xf32>
    %65 = vector.extract_strided_slice %54 {offsets = [0, 2], sizes = [8, 84], strides = [1, 1]} : vector<8x86xf32> to vector<8x84xf32>
    %cst_24 = arith.constant dense<0.000000e+00> : vector<8x84xf32>
    %66 = tpu.matmul %64, %65, %cst_24 {dimension_numbers = #tpu.dot_dimension_numbers<[1], [0], [0], [1], [0, 0, 1, 1], [], []>, precision = #tpu.contract_precision<fp32>} : vector<8x8xf32>, vector<8x84xf32>, vector<8x84xf32> -> vector<8x84xf32>
    %67 = arith.addf %63, %66 : vector<8x84xf32>
    %c88 = arith.constant 88 : index
    %c0_25 = arith.constant 0 : index
    %68 = vector.load %arg2[%c88, %c0_25] : memref<336x128xf32, #tpu.memory_space<vmem>>, vector<8x1xf32>
    %69 = vector.broadcast %68 : vector<8x1xf32> to vector<8x84xf32>
    %70 = arith.addf %67, %69 : vector<8x84xf32>
    %cst_26 = arith.constant 0.000000e+00 : f32
    %71 = vector.broadcast %cst_26 : f32 to vector<8x84xf32>
    %72 = arith.maximumf %70, %71 : vector<8x84xf32>
    %73 = vector.extract_strided_slice %72 {offsets = [0, 0], sizes = [8, 83], strides = [1, 1]} : vector<8x84xf32> to vector<8x83xf32>
    %74 = vector.extract_strided_slice %72 {offsets = [0, 1], sizes = [8, 83], strides = [1, 1]} : vector<8x84xf32> to vector<8x83xf32>
    %75 = arith.maximumf %73, %74 : vector<8x83xf32>
    %76 = tpu.iota {dimensions = array<i32: 0>} : vector<83x42xi32>
    %77 = tpu.iota {dimensions = array<i32: 1>} : vector<83x42xi32>
    %c2_i32_27 = arith.constant 2 : i32
    %78 = vector.broadcast %c2_i32_27 : i32 to vector<83x42xi32>
    %79 = arith.muli %78, %77 : vector<83x42xi32>
    %80 = arith.cmpi eq, %76, %79 : vector<83x42xi32>
    %81 = arith.extui %80 : vector<83x42xi1> to vector<83x42xi32>
    %82 = arith.sitofp %81 : vector<83x42xi32> to vector<83x42xf32>
    %cst_28 = arith.constant dense<0.000000e+00> : vector<8x42xf32>
    %83 = tpu.matmul %75, %82, %cst_28 {dimension_numbers = #tpu.dot_dimension_numbers<[1], [0], [0], [1], [0, 0, 1, 1], [], []>, precision = #tpu.contract_precision<fp32>} : vector<8x83xf32>, vector<83x42xf32>, vector<8x42xf32> -> vector<8x42xf32>
    %cst_29 = arith.constant 0.000000e+00 : f32
    %84 = vector.broadcast %cst_29 : f32 to vector<8x40xf32>
    %c96 = arith.constant 96 : index
    %c0_30 = arith.constant 0 : index
    %85 = vector.load %arg2[%c96, %c0_30] : memref<336x128xf32, #tpu.memory_space<vmem>>, vector<8x8xf32>
    %86 = vector.extract_strided_slice %83 {offsets = [0, 0], sizes = [8, 40], strides = [1, 1]} : vector<8x42xf32> to vector<8x40xf32>
    %cst_31 = arith.constant dense<0.000000e+00> : vector<8x40xf32>
    %87 = tpu.matmul %85, %86, %cst_31 {dimension_numbers = #tpu.dot_dimension_numbers<[1], [0], [0], [1], [0, 0, 1, 1], [], []>, precision = #tpu.contract_precision<fp32>} : vector<8x8xf32>, vector<8x40xf32>, vector<8x40xf32> -> vector<8x40xf32>
    %88 = arith.addf %84, %87 : vector<8x40xf32>
    %c104 = arith.constant 104 : index
    %c0_32 = arith.constant 0 : index
    %89 = vector.load %arg2[%c104, %c0_32] : memref<336x128xf32, #tpu.memory_space<vmem>>, vector<8x8xf32>
    %90 = vector.extract_strided_slice %83 {offsets = [0, 1], sizes = [8, 40], strides = [1, 1]} : vector<8x42xf32> to vector<8x40xf32>
    %cst_33 = arith.constant dense<0.000000e+00> : vector<8x40xf32>
    %91 = tpu.matmul %89, %90, %cst_33 {dimension_numbers = #tpu.dot_dimension_numbers<[1], [0], [0], [1], [0, 0, 1, 1], [], []>, precision = #tpu.contract_precision<fp32>} : vector<8x8xf32>, vector<8x40xf32>, vector<8x40xf32> -> vector<8x40xf32>
    %92 = arith.addf %88, %91 : vector<8x40xf32>
    %c112 = arith.constant 112 : index
    %c0_34 = arith.constant 0 : index
    %93 = vector.load %arg2[%c112, %c0_34] : memref<336x128xf32, #tpu.memory_space<vmem>>, vector<8x8xf32>
    %94 = vector.extract_strided_slice %83 {offsets = [0, 2], sizes = [8, 40], strides = [1, 1]} : vector<8x42xf32> to vector<8x40xf32>
    %cst_35 = arith.constant dense<0.000000e+00> : vector<8x40xf32>
    %95 = tpu.matmul %93, %94, %cst_35 {dimension_numbers = #tpu.dot_dimension_numbers<[1], [0], [0], [1], [0, 0, 1, 1], [], []>, precision = #tpu.contract_precision<fp32>} : vector<8x8xf32>, vector<8x40xf32>, vector<8x40xf32> -> vector<8x40xf32>
    %96 = arith.addf %92, %95 : vector<8x40xf32>
    %c120 = arith.constant 120 : index
    %c0_36 = arith.constant 0 : index
    %97 = vector.load %arg2[%c120, %c0_36] : memref<336x128xf32, #tpu.memory_space<vmem>>, vector<8x1xf32>
    %98 = vector.broadcast %97 : vector<8x1xf32> to vector<8x40xf32>
    %99 = arith.addf %96, %98 : vector<8x40xf32>
    %cst_37 = arith.constant 0.000000e+00 : f32
    %100 = vector.broadcast %cst_37 : f32 to vector<8x40xf32>
    %101 = arith.maximumf %99, %100 : vector<8x40xf32>
    %102 = vector.extract_strided_slice %101 {offsets = [0, 0], sizes = [8, 39], strides = [1, 1]} : vector<8x40xf32> to vector<8x39xf32>
    %103 = vector.extract_strided_slice %101 {offsets = [0, 1], sizes = [8, 39], strides = [1, 1]} : vector<8x40xf32> to vector<8x39xf32>
    %104 = arith.maximumf %102, %103 : vector<8x39xf32>
    %105 = tpu.iota {dimensions = array<i32: 0>} : vector<39x20xi32>
    %106 = tpu.iota {dimensions = array<i32: 1>} : vector<39x20xi32>
    %c2_i32_38 = arith.constant 2 : i32
    %107 = vector.broadcast %c2_i32_38 : i32 to vector<39x20xi32>
    %108 = arith.muli %107, %106 : vector<39x20xi32>
    %109 = arith.cmpi eq, %105, %108 : vector<39x20xi32>
    %110 = arith.extui %109 : vector<39x20xi1> to vector<39x20xi32>
    %111 = arith.sitofp %110 : vector<39x20xi32> to vector<39x20xf32>
    %cst_39 = arith.constant dense<0.000000e+00> : vector<8x20xf32>
    %112 = tpu.matmul %104, %111, %cst_39 {dimension_numbers = #tpu.dot_dimension_numbers<[1], [0], [0], [1], [0, 0, 1, 1], [], []>, precision = #tpu.contract_precision<fp32>} : vector<8x39xf32>, vector<39x20xf32>, vector<8x20xf32> -> vector<8x20xf32>
    %cst_40 = arith.constant 0.000000e+00 : f32
    %113 = vector.broadcast %cst_40 : f32 to vector<8x18xf32>
    %c128 = arith.constant 128 : index
    %c0_41 = arith.constant 0 : index
    %114 = vector.load %arg2[%c128, %c0_41] : memref<336x128xf32, #tpu.memory_space<vmem>>, vector<8x8xf32>
    %115 = vector.extract_strided_slice %112 {offsets = [0, 0], sizes = [8, 18], strides = [1, 1]} : vector<8x20xf32> to vector<8x18xf32>
    %cst_42 = arith.constant dense<0.000000e+00> : vector<8x18xf32>
    %116 = tpu.matmul %114, %115, %cst_42 {dimension_numbers = #tpu.dot_dimension_numbers<[1], [0], [0], [1], [0, 0, 1, 1], [], []>, precision = #tpu.contract_precision<fp32>} : vector<8x8xf32>, vector<8x18xf32>, vector<8x18xf32> -> vector<8x18xf32>
    %117 = arith.addf %113, %116 : vector<8x18xf32>
    %c136 = arith.constant 136 : index
    %c0_43 = arith.constant 0 : index
    %118 = vector.load %arg2[%c136, %c0_43] : memref<336x128xf32, #tpu.memory_space<vmem>>, vector<8x8xf32>
    %119 = vector.extract_strided_slice %112 {offsets = [0, 1], sizes = [8, 18], strides = [1, 1]} : vector<8x20xf32> to vector<8x18xf32>
    %cst_44 = arith.constant dense<0.000000e+00> : vector<8x18xf32>
    %120 = tpu.matmul %118, %119, %cst_44 {dimension_numbers = #tpu.dot_dimension_numbers<[1], [0], [0], [1], [0, 0, 1, 1], [], []>, precision = #tpu.contract_precision<fp32>} : vector<8x8xf32>, vector<8x18xf32>, vector<8x18xf32> -> vector<8x18xf32>
    %121 = arith.addf %117, %120 : vector<8x18xf32>
    %c144 = arith.constant 144 : index
    %c0_45 = arith.constant 0 : index
    %122 = vector.load %arg2[%c144, %c0_45] : memref<336x128xf32, #tpu.memory_space<vmem>>, vector<8x8xf32>
    %123 = vector.extract_strided_slice %112 {offsets = [0, 2], sizes = [8, 18], strides = [1, 1]} : vector<8x20xf32> to vector<8x18xf32>
    %cst_46 = arith.constant dense<0.000000e+00> : vector<8x18xf32>
    %124 = tpu.matmul %122, %123, %cst_46 {dimension_numbers = #tpu.dot_dimension_numbers<[1], [0], [0], [1], [0, 0, 1, 1], [], []>, precision = #tpu.contract_precision<fp32>} : vector<8x8xf32>, vector<8x18xf32>, vector<8x18xf32> -> vector<8x18xf32>
    %125 = arith.addf %121, %124 : vector<8x18xf32>
    %c152 = arith.constant 152 : index
    %c0_47 = arith.constant 0 : index
    %126 = vector.load %arg2[%c152, %c0_47] : memref<336x128xf32, #tpu.memory_space<vmem>>, vector<8x1xf32>
    %127 = vector.broadcast %126 : vector<8x1xf32> to vector<8x18xf32>
    %128 = arith.addf %125, %127 : vector<8x18xf32>
    %cst_48 = arith.constant 0.000000e+00 : f32
    %129 = vector.broadcast %cst_48 : f32 to vector<8x18xf32>
    %130 = arith.maximumf %128, %129 : vector<8x18xf32>
    %131 = vector.extract_strided_slice %130 {offsets = [0, 0], sizes = [8, 17], strides = [1, 1]} : vector<8x18xf32> to vector<8x17xf32>
    %132 = vector.extract_strided_slice %130 {offsets = [0, 1], sizes = [8, 17], strides = [1, 1]} : vector<8x18xf32> to vector<8x17xf32>
    %133 = arith.maximumf %131, %132 : vector<8x17xf32>
    %134 = tpu.iota {dimensions = array<i32: 0>} : vector<17x9xi32>
    %135 = tpu.iota {dimensions = array<i32: 1>} : vector<17x9xi32>
    %c2_i32_49 = arith.constant 2 : i32
    %136 = vector.broadcast %c2_i32_49 : i32 to vector<17x9xi32>
    %137 = arith.muli %136, %135 : vector<17x9xi32>
    %138 = arith.cmpi eq, %134, %137 : vector<17x9xi32>
    %139 = arith.extui %138 : vector<17x9xi1> to vector<17x9xi32>
    %140 = arith.sitofp %139 : vector<17x9xi32> to vector<17x9xf32>
    %cst_50 = arith.constant dense<0.000000e+00> : vector<8x9xf32>
    %141 = tpu.matmul %133, %140, %cst_50 {dimension_numbers = #tpu.dot_dimension_numbers<[1], [0], [0], [1], [0, 0, 1, 1], [], []>, precision = #tpu.contract_precision<fp32>} : vector<8x17xf32>, vector<17x9xf32>, vector<8x9xf32> -> vector<8x9xf32>
    %c0_51 = arith.constant 0 : index
    %c16_52 = arith.constant 16 : index
    %c0_53 = arith.constant 0 : index
    %142 = vector.load %arg3[%c0_51, %c16_52, %c0_53] : memref<1x64x128xf32, #tpu.memory_space<vmem>>, vector<1x8x86xf32>
    %143 = vector.shape_cast %142 : vector<1x8x86xf32> to vector<8x86xf32>
    %144 = vector.shape_cast %54 : vector<8x86xf32> to vector<1x8x86xf32>
    tpu.vector_store %arg3[%c0_51, %c16_52, %c0_53], %144 {strides = array<i32>} : memref<1x64x128xf32, #tpu.memory_space<vmem>>, vector<1x8x86xf32>,
    %cst_54 = arith.constant 0.000000e+00 : f32
    %145 = vector.broadcast %cst_54 : f32 to vector<8x7xf32>
    %c160 = arith.constant 160 : index
    %c0_55 = arith.constant 0 : index
    %146 = vector.load %arg2[%c160, %c0_55] : memref<336x128xf32, #tpu.memory_space<vmem>>, vector<8x8xf32>
    %147 = vector.extract_strided_slice %141 {offsets = [0, 0], sizes = [8, 7], strides = [1, 1]} : vector<8x9xf32> to vector<8x7xf32>
    %cst_56 = arith.constant dense<0.000000e+00> : vector<8x7xf32>
    %148 = tpu.matmul %146, %147, %cst_56 {dimension_numbers = #tpu.dot_dimension_numbers<[1], [0], [0], [1], [0, 0, 1, 1], [], []>, precision = #tpu.contract_precision<fp32>} : vector<8x8xf32>, vector<8x7xf32>, vector<8x7xf32> -> vector<8x7xf32>
    %149 = arith.addf %145, %148 : vector<8x7xf32>
    %c168 = arith.constant 168 : index
    %c0_57 = arith.constant 0 : index
    %150 = vector.load %arg2[%c168, %c0_57] : memref<336x128xf32, #tpu.memory_space<vmem>>, vector<8x8xf32>
    %151 = vector.extract_strided_slice %141 {offsets = [0, 1], sizes = [8, 7], strides = [1, 1]} : vector<8x9xf32> to vector<8x7xf32>
    %cst_58 = arith.constant dense<0.000000e+00> : vector<8x7xf32>
    %152 = tpu.matmul %150, %151, %cst_58 {dimension_numbers = #tpu.dot_dimension_numbers<[1], [0], [0], [1], [0, 0, 1, 1], [], []>, precision = #tpu.contract_precision<fp32>} : vector<8x8xf32>, vector<8x7xf32>, vector<8x7xf32> -> vector<8x7xf32>
    %153 = arith.addf %149, %152 : vector<8x7xf32>
    %c176 = arith.constant 176 : index
    %c0_59 = arith.constant 0 : index
    %154 = vector.load %arg2[%c176, %c0_59] : memref<336x128xf32, #tpu.memory_space<vmem>>, vector<8x8xf32>
    %155 = vector.extract_strided_slice %141 {offsets = [0, 2], sizes = [8, 7], strides = [1, 1]} : vector<8x9xf32> to vector<8x7xf32>
    %cst_60 = arith.constant dense<0.000000e+00> : vector<8x7xf32>
    %156 = tpu.matmul %154, %155, %cst_60 {dimension_numbers = #tpu.dot_dimension_numbers<[1], [0], [0], [1], [0, 0, 1, 1], [], []>, precision = #tpu.contract_precision<fp32>} : vector<8x8xf32>, vector<8x7xf32>, vector<8x7xf32> -> vector<8x7xf32>
    %157 = arith.addf %153, %156 : vector<8x7xf32>
    %c184 = arith.constant 184 : index
    %c0_61 = arith.constant 0 : index
    %158 = vector.load %arg2[%c184, %c0_61] : memref<336x128xf32, #tpu.memory_space<vmem>>, vector<8x1xf32>
    %159 = vector.broadcast %158 : vector<8x1xf32> to vector<8x7xf32>
    %160 = arith.addf %157, %159 : vector<8x7xf32>
    %cst_62 = arith.constant 0.000000e+00 : f32
    %161 = vector.broadcast %cst_62 : f32 to vector<8x7xf32>
    %162 = arith.maximumf %160, %161 : vector<8x7xf32>
    %c0_63 = arith.constant 0 : index
    %c24_64 = arith.constant 24 : index
    %c0_65 = arith.constant 0 : index
    %163 = vector.load %arg3[%c0_63, %c24_64, %c0_65] : memref<1x64x128xf32, #tpu.memory_space<vmem>>, vector<1x8x7xf32>
    %164 = vector.shape_cast %163 : vector<1x8x7xf32> to vector<8x7xf32>
    %165 = vector.shape_cast %162 : vector<8x7xf32> to vector<1x8x7xf32>
    tpu.vector_store %arg3[%c0_63, %c24_64, %c0_65], %165 {strides = array<i32>} : memref<1x64x128xf32, #tpu.memory_space<vmem>>, vector<1x8x7xf32>,
    %cst_66 = arith.constant 0.000000e+00 : f32
    %166 = vector.broadcast %cst_66 : f32 to vector<8x5xf32>
    %c192 = arith.constant 192 : index
    %c0_67 = arith.constant 0 : index
    %167 = vector.load %arg2[%c192, %c0_67] : memref<336x128xf32, #tpu.memory_space<vmem>>, vector<8x8xf32>
    %168 = vector.extract_strided_slice %162 {offsets = [0, 0], sizes = [8, 5], strides = [1, 1]} : vector<8x7xf32> to vector<8x5xf32>
    %cst_68 = arith.constant dense<0.000000e+00> : vector<8x5xf32>
    %169 = tpu.matmul %167, %168, %cst_68 {dimension_numbers = #tpu.dot_dimension_numbers<[1], [0], [0], [1], [0, 0, 1, 1], [], []>, precision = #tpu.contract_precision<fp32>} : vector<8x8xf32>, vector<8x5xf32>, vector<8x5xf32> -> vector<8x5xf32>
    %170 = arith.addf %166, %169 : vector<8x5xf32>
    %c200 = arith.constant 200 : index
    %c0_69 = arith.constant 0 : index
    %171 = vector.load %arg2[%c200, %c0_69] : memref<336x128xf32, #tpu.memory_space<vmem>>, vector<8x8xf32>
    %172 = vector.extract_strided_slice %162 {offsets = [0, 1], sizes = [8, 5], strides = [1, 1]} : vector<8x7xf32> to vector<8x5xf32>
    %cst_70 = arith.constant dense<0.000000e+00> : vector<8x5xf32>
    %173 = tpu.matmul %171, %172, %cst_70 {dimension_numbers = #tpu.dot_dimension_numbers<[1], [0], [0], [1], [0, 0, 1, 1], [], []>, precision = #tpu.contract_precision<fp32>} : vector<8x8xf32>, vector<8x5xf32>, vector<8x5xf32> -> vector<8x5xf32>
    %174 = arith.addf %170, %173 : vector<8x5xf32>
    %c208 = arith.constant 208 : index
    %c0_71 = arith.constant 0 : index
    %175 = vector.load %arg2[%c208, %c0_71] : memref<336x128xf32, #tpu.memory_space<vmem>>, vector<8x8xf32>
    %176 = vector.extract_strided_slice %162 {offsets = [0, 2], sizes = [8, 5], strides = [1, 1]} : vector<8x7xf32> to vector<8x5xf32>
    %cst_72 = arith.constant dense<0.000000e+00> : vector<8x5xf32>
    %177 = tpu.matmul %175, %176, %cst_72 {dimension_numbers = #tpu.dot_dimension_numbers<[1], [0], [0], [1], [0, 0, 1, 1], [], []>, precision = #tpu.contract_precision<fp32>} : vector<8x8xf32>, vector<8x5xf32>, vector<8x5xf32> -> vector<8x5xf32>
    %178 = arith.addf %174, %177 : vector<8x5xf32>
    %c216 = arith.constant 216 : index
    %c0_73 = arith.constant 0 : index
    %179 = vector.load %arg2[%c216, %c0_73] : memref<336x128xf32, #tpu.memory_space<vmem>>, vector<8x1xf32>
    %180 = vector.broadcast %179 : vector<8x1xf32> to vector<8x5xf32>
    %181 = arith.addf %178, %180 : vector<8x5xf32>
    %cst_74 = arith.constant 0.000000e+00 : f32
    %182 = vector.broadcast %cst_74 : f32 to vector<8x5xf32>
    %183 = arith.maximumf %181, %182 : vector<8x5xf32>
    %c320 = arith.constant 320 : index
    %c0_75 = arith.constant 0 : index
    %184 = vector.load %arg2[%c320, %c0_75] : memref<336x128xf32, #tpu.memory_space<vmem>>, vector<5x10xf32>
    %cst_76 = arith.constant dense<0.000000e+00> : vector<8x10xf32>
    %185 = tpu.matmul %183, %184, %cst_76 {dimension_numbers = #tpu.dot_dimension_numbers<[1], [0], [0], [1], [0, 0, 1, 1], [], []>, precision = #tpu.contract_precision<fp32>} : vector<8x5xf32>, vector<5x10xf32>, vector<8x10xf32> -> vector<8x10xf32>
    %186 = vector.extract_strided_slice %112 {offsets = [0, 5], sizes = [8, 10], strides = [1, 1]} : vector<8x20xf32> to vector<8x10xf32>
    %c0_77 = arith.constant 0 : index
    %c32_78 = arith.constant 32 : index
    %c0_79 = arith.constant 0 : index
    %187 = vector.load %arg3[%c0_77, %c32_78, %c0_79] : memref<1x64x128xf32, #tpu.memory_space<vmem>>, vector<1x8x10xf32>
    %188 = vector.shape_cast %187 : vector<1x8x10xf32> to vector<8x10xf32>
    %189 = vector.shape_cast %185 : vector<8x10xf32> to vector<1x8x10xf32>
    tpu.vector_store %arg3[%c0_77, %c32_78, %c0_79], %189 {strides = array<i32>} : memref<1x64x128xf32, #tpu.memory_space<vmem>>, vector<1x8x10xf32>,
    %c0_80 = arith.constant 0 : index
    %c40_81 = arith.constant 40 : index
    %c0_82 = arith.constant 0 : index
    %190 = vector.load %arg3[%c0_80, %c40_81, %c0_82] : memref<1x64x128xf32, #tpu.memory_space<vmem>>, vector<1x8x10xf32>
    %191 = vector.shape_cast %190 : vector<1x8x10xf32> to vector<8x10xf32>
    %192 = vector.shape_cast %186 : vector<8x10xf32> to vector<1x8x10xf32>
    tpu.vector_store %arg3[%c0_80, %c40_81, %c0_82], %192 {strides = array<i32>} : memref<1x64x128xf32, #tpu.memory_space<vmem>>, vector<1x8x10xf32>,
    %cst_83 = arith.constant 0.000000e+00 : f32
    %193 = vector.broadcast %cst_83 : f32 to vector<8x8xf32>
    %c224 = arith.constant 224 : index
    %c0_84 = arith.constant 0 : index
    %194 = vector.load %arg2[%c224, %c0_84] : memref<336x128xf32, #tpu.memory_space<vmem>>, vector<8x8xf32>
    %195 = vector.extract_strided_slice %185 {offsets = [0, 0], sizes = [8, 8], strides = [1, 1]} : vector<8x10xf32> to vector<8x8xf32>
    %cst_85 = arith.constant dense<0.000000e+00> : vector<8x8xf32>
    %196 = tpu.matmul %194, %195, %cst_85 {dimension_numbers = #tpu.dot_dimension_numbers<[1], [0], [0], [1], [0, 0, 1, 1], [], []>, precision = #tpu.contract_precision<fp32>} : vector<8x8xf32>, vector<8x8xf32>, vector<8x8xf32> -> vector<8x8xf32>
    %197 = arith.addf %193, %196 : vector<8x8xf32>
    %c232 = arith.constant 232 : index
    %c0_86 = arith.constant 0 : index
    %198 = vector.load %arg2[%c232, %c0_86] : memref<336x128xf32, #tpu.memory_space<vmem>>, vector<8x8xf32>
    %199 = vector.extract_strided_slice %185 {offsets = [0, 1], sizes = [8, 8], strides = [1, 1]} : vector<8x10xf32> to vector<8x8xf32>
    %cst_87 = arith.constant dense<0.000000e+00> : vector<8x8xf32>
    %200 = tpu.matmul %198, %199, %cst_87 {dimension_numbers = #tpu.dot_dimension_numbers<[1], [0], [0], [1], [0, 0, 1, 1], [], []>, precision = #tpu.contract_precision<fp32>} : vector<8x8xf32>, vector<8x8xf32>, vector<8x8xf32> -> vector<8x8xf32>
    %201 = arith.addf %197, %200 : vector<8x8xf32>
    %c240 = arith.constant 240 : index
    %c0_88 = arith.constant 0 : index
    %202 = vector.load %arg2[%c240, %c0_88] : memref<336x128xf32, #tpu.memory_space<vmem>>, vector<8x8xf32>
    %203 = vector.extract_strided_slice %185 {offsets = [0, 2], sizes = [8, 8], strides = [1, 1]} : vector<8x10xf32> to vector<8x8xf32>
    %cst_89 = arith.constant dense<0.000000e+00> : vector<8x8xf32>
    %204 = tpu.matmul %202, %203, %cst_89 {dimension_numbers = #tpu.dot_dimension_numbers<[1], [0], [0], [1], [0, 0, 1, 1], [], []>, precision = #tpu.contract_precision<fp32>} : vector<8x8xf32>, vector<8x8xf32>, vector<8x8xf32> -> vector<8x8xf32>
    %205 = arith.addf %201, %204 : vector<8x8xf32>
    %c224_90 = arith.constant 224 : index
    %c8_91 = arith.constant 8 : index
    %206 = vector.load %arg2[%c224_90, %c8_91] : memref<336x128xf32, #tpu.memory_space<vmem>>, vector<8x8xf32>
    %207 = vector.extract_strided_slice %186 {offsets = [0, 0], sizes = [8, 8], strides = [1, 1]} : vector<8x10xf32> to vector<8x8xf32>
    %cst_92 = arith.constant dense<0.000000e+00> : vector<8x8xf32>
    %208 = tpu.matmul %206, %207, %cst_92 {dimension_numbers = #tpu.dot_dimension_numbers<[1], [0], [0], [1], [0, 0, 1, 1], [], []>, precision = #tpu.contract_precision<fp32>} : vector<8x8xf32>, vector<8x8xf32>, vector<8x8xf32> -> vector<8x8xf32>
    %209 = arith.addf %205, %208 : vector<8x8xf32>
    %c232_93 = arith.constant 232 : index
    %c8_94 = arith.constant 8 : index
    %210 = vector.load %arg2[%c232_93, %c8_94] : memref<336x128xf32, #tpu.memory_space<vmem>>, vector<8x8xf32>
    %211 = vector.extract_strided_slice %186 {offsets = [0, 1], sizes = [8, 8], strides = [1, 1]} : vector<8x10xf32> to vector<8x8xf32>
    %cst_95 = arith.constant dense<0.000000e+00> : vector<8x8xf32>
    %212 = tpu.matmul %210, %211, %cst_95 {dimension_numbers = #tpu.dot_dimension_numbers<[1], [0], [0], [1], [0, 0, 1, 1], [], []>, precision = #tpu.contract_precision<fp32>} : vector<8x8xf32>, vector<8x8xf32>, vector<8x8xf32> -> vector<8x8xf32>
    %213 = arith.addf %209, %212 : vector<8x8xf32>
    %c240_96 = arith.constant 240 : index
    %c8_97 = arith.constant 8 : index
    %214 = vector.load %arg2[%c240_96, %c8_97] : memref<336x128xf32, #tpu.memory_space<vmem>>, vector<8x8xf32>
    %215 = vector.extract_strided_slice %186 {offsets = [0, 2], sizes = [8, 8], strides = [1, 1]} : vector<8x10xf32> to vector<8x8xf32>
    %cst_98 = arith.constant dense<0.000000e+00> : vector<8x8xf32>
    %216 = tpu.matmul %214, %215, %cst_98 {dimension_numbers = #tpu.dot_dimension_numbers<[1], [0], [0], [1], [0, 0, 1, 1], [], []>, precision = #tpu.contract_precision<fp32>} : vector<8x8xf32>, vector<8x8xf32>, vector<8x8xf32> -> vector<8x8xf32>
    %217 = arith.addf %213, %216 : vector<8x8xf32>
    %c248 = arith.constant 248 : index
    %c0_99 = arith.constant 0 : index
    %218 = vector.load %arg2[%c248, %c0_99] : memref<336x128xf32, #tpu.memory_space<vmem>>, vector<8x1xf32>
    %219 = vector.broadcast %218 : vector<8x1xf32> to vector<8x8xf32>
    %220 = arith.addf %217, %219 : vector<8x8xf32>
    %cst_100 = arith.constant 0.000000e+00 : f32
    %221 = vector.broadcast %cst_100 : f32 to vector<8x8xf32>
    %222 = arith.maximumf %220, %221 : vector<8x8xf32>
    %c328 = arith.constant 328 : index
    %c0_101 = arith.constant 0 : index
    %223 = vector.load %arg2[%c328, %c0_101] : memref<336x128xf32, #tpu.memory_space<vmem>>, vector<8x16xf32>
    %cst_102 = arith.constant dense<0.000000e+00> : vector<8x16xf32>
    %224 = tpu.matmul %222, %223, %cst_102 {dimension_numbers = #tpu.dot_dimension_numbers<[1], [0], [0], [1], [0, 0, 1, 1], [], []>, precision = #tpu.contract_precision<fp32>} : vector<8x8xf32>, vector<8x16xf32>, vector<8x16xf32> -> vector<8x16xf32>
    %225 = vector.extract_strided_slice %83 {offsets = [0, 13], sizes = [8, 16], strides = [1, 1]} : vector<8x42xf32> to vector<8x16xf32>
    %c0_103 = arith.constant 0 : index
    %c48_104 = arith.constant 48 : index
    %c0_105 = arith.constant 0 : index
    %226 = vector.load %arg3[%c0_103, %c48_104, %c0_105] : memref<1x64x128xf32, #tpu.memory_space<vmem>>, vector<1x8x16xf32>
    %227 = vector.shape_cast %226 : vector<1x8x16xf32> to vector<8x16xf32>
    %228 = vector.shape_cast %224 : vector<8x16xf32> to vector<1x8x16xf32>
    tpu.vector_store %arg3[%c0_103, %c48_104, %c0_105], %228 {strides = array<i32>} : memref<1x64x128xf32, #tpu.memory_space<vmem>>, vector<1x8x16xf32>,
    %c0_106 = arith.constant 0 : index
    %c56_107 = arith.constant 56 : index
    %c0_108 = arith.constant 0 : index
    %229 = vector.load %arg3[%c0_106, %c56_107, %c0_108] : memref<1x64x128xf32, #tpu.memory_space<vmem>>, vector<1x8x16xf32>
    %230 = vector.shape_cast %229 : vector<1x8x16xf32> to vector<8x16xf32>
    %231 = vector.shape_cast %225 : vector<8x16xf32> to vector<1x8x16xf32>
    tpu.vector_store %arg3[%c0_106, %c56_107, %c0_108], %231 {strides = array<i32>} : memref<1x64x128xf32, #tpu.memory_space<vmem>>, vector<1x8x16xf32>,
    %cst_109 = arith.constant 0.000000e+00 : f32
    %232 = vector.broadcast %cst_109 : f32 to vector<16x14xf32>
    %c256 = arith.constant 256 : index
    %c0_110 = arith.constant 0 : index
    %233 = vector.load %arg2[%c256, %c0_110] : memref<336x128xf32, #tpu.memory_space<vmem>>, vector<16x8xf32>
    %234 = vector.extract_strided_slice %224 {offsets = [0, 0], sizes = [8, 14], strides = [1, 1]} : vector<8x16xf32> to vector<8x14xf32>
    %cst_111 = arith.constant dense<0.000000e+00> : vector<16x14xf32>
    %235 = tpu.matmul %233, %234, %cst_111 {dimension_numbers = #tpu.dot_dimension_numbers<[1], [0], [0], [1], [0, 0, 1, 1], [], []>, precision = #tpu.contract_precision<fp32>} : vector<16x8xf32>, vector<8x14xf32>, vector<16x14xf32> -> vector<16x14xf32>
    %236 = arith.addf %232, %235 : vector<16x14xf32>
    %c272 = arith.constant 272 : index
    %c0_112 = arith.constant 0 : index
    %237 = vector.load %arg2[%c272, %c0_112] : memref<336x128xf32, #tpu.memory_space<vmem>>, vector<16x8xf32>
    %238 = vector.extract_strided_slice %224 {offsets = [0, 1], sizes = [8, 14], strides = [1, 1]} : vector<8x16xf32> to vector<8x14xf32>
    %cst_113 = arith.constant dense<0.000000e+00> : vector<16x14xf32>
    %239 = tpu.matmul %237, %238, %cst_113 {dimension_numbers = #tpu.dot_dimension_numbers<[1], [0], [0], [1], [0, 0, 1, 1], [], []>, precision = #tpu.contract_precision<fp32>} : vector<16x8xf32>, vector<8x14xf32>, vector<16x14xf32> -> vector<16x14xf32>
    %240 = arith.addf %236, %239 : vector<16x14xf32>
    %c288 = arith.constant 288 : index
    %c0_114 = arith.constant 0 : index
    %241 = vector.load %arg2[%c288, %c0_114] : memref<336x128xf32, #tpu.memory_space<vmem>>, vector<16x8xf32>
    %242 = vector.extract_strided_slice %224 {offsets = [0, 2], sizes = [8, 14], strides = [1, 1]} : vector<8x16xf32> to vector<8x14xf32>
    %cst_115 = arith.constant dense<0.000000e+00> : vector<16x14xf32>
    %243 = tpu.matmul %241, %242, %cst_115 {dimension_numbers = #tpu.dot_dimension_numbers<[1], [0], [0], [1], [0, 0, 1, 1], [], []>, precision = #tpu.contract_precision<fp32>} : vector<16x8xf32>, vector<8x14xf32>, vector<16x14xf32> -> vector<16x14xf32>
    %244 = arith.addf %240, %243 : vector<16x14xf32>
    %c256_116 = arith.constant 256 : index
    %c8_117 = arith.constant 8 : index
    %245 = vector.load %arg2[%c256_116, %c8_117] : memref<336x128xf32, #tpu.memory_space<vmem>>, vector<16x8xf32>
    %246 = vector.extract_strided_slice %225 {offsets = [0, 0], sizes = [8, 14], strides = [1, 1]} : vector<8x16xf32> to vector<8x14xf32>
    %cst_118 = arith.constant dense<0.000000e+00> : vector<16x14xf32>
    %247 = tpu.matmul %245, %246, %cst_118 {dimension_numbers = #tpu.dot_dimension_numbers<[1], [0], [0], [1], [0, 0, 1, 1], [], []>, precision = #tpu.contract_precision<fp32>} : vector<16x8xf32>, vector<8x14xf32>, vector<16x14xf32> -> vector<16x14xf32>
    %248 = arith.addf %244, %247 : vector<16x14xf32>
    %c272_119 = arith.constant 272 : index
    %c8_120 = arith.constant 8 : index
    %249 = vector.load %arg2[%c272_119, %c8_120] : memref<336x128xf32, #tpu.memory_space<vmem>>, vector<16x8xf32>
    %250 = vector.extract_strided_slice %225 {offsets = [0, 1], sizes = [8, 14], strides = [1, 1]} : vector<8x16xf32> to vector<8x14xf32>
    %cst_121 = arith.constant dense<0.000000e+00> : vector<16x14xf32>
    %251 = tpu.matmul %249, %250, %cst_121 {dimension_numbers = #tpu.dot_dimension_numbers<[1], [0], [0], [1], [0, 0, 1, 1], [], []>, precision = #tpu.contract_precision<fp32>} : vector<16x8xf32>, vector<8x14xf32>, vector<16x14xf32> -> vector<16x14xf32>
    %252 = arith.addf %248, %251 : vector<16x14xf32>
    %c288_122 = arith.constant 288 : index
    %c8_123 = arith.constant 8 : index
    %253 = vector.load %arg2[%c288_122, %c8_123] : memref<336x128xf32, #tpu.memory_space<vmem>>, vector<16x8xf32>
    %254 = vector.extract_strided_slice %225 {offsets = [0, 2], sizes = [8, 14], strides = [1, 1]} : vector<8x16xf32> to vector<8x14xf32>
    %cst_124 = arith.constant dense<0.000000e+00> : vector<16x14xf32>
    %255 = tpu.matmul %253, %254, %cst_124 {dimension_numbers = #tpu.dot_dimension_numbers<[1], [0], [0], [1], [0, 0, 1, 1], [], []>, precision = #tpu.contract_precision<fp32>} : vector<16x8xf32>, vector<8x14xf32>, vector<16x14xf32> -> vector<16x14xf32>
    %256 = arith.addf %252, %255 : vector<16x14xf32>
    %c304 = arith.constant 304 : index
    %c0_125 = arith.constant 0 : index
    %257 = vector.load %arg2[%c304, %c0_125] : memref<336x128xf32, #tpu.memory_space<vmem>>, vector<16x1xf32>
    %258 = vector.broadcast %257 : vector<16x1xf32> to vector<16x14xf32>
    %259 = arith.addf %256, %258 : vector<16x14xf32>
    %cst_126 = arith.constant 0.000000e+00 : f32
    %260 = vector.broadcast %cst_126 : f32 to vector<16x14xf32>
    %261 = arith.maximumf %259, %260 : vector<16x14xf32>
    %c0_127 = arith.constant 0 : index
    %c0_128 = arith.constant 0 : index
    %c0_129 = arith.constant 0 : index
    %262 = vector.load %arg3[%c0_127, %c0_128, %c0_129] : memref<1x64x128xf32, #tpu.memory_space<vmem>>, vector<1x16x14xf32>
    %263 = vector.shape_cast %262 : vector<1x16x14xf32> to vector<16x14xf32>
    %264 = vector.shape_cast %261 : vector<16x14xf32> to vector<1x16x14xf32>
    tpu.vector_store %arg3[%c0_127, %c0_128, %c0_129], %264 {strides = array<i32>} : memref<1x64x128xf32, #tpu.memory_space<vmem>>, vector<1x16x14xf32>,
    return
  }
  func.func @transform_0(%arg0: i32) -> (i32, i32, i32) {
    %c0_i32 = arith.constant 0 : i32
    %c0_i32_0 = arith.constant 0 : i32
    %c0_i32_1 = arith.constant 0 : i32
    return %arg0, %c0_i32, %c0_i32_0 : i32, i32, i32
  }
  func.func @transform_1(%arg0: i32) -> (i32, i32) {
    %c0_i32 = arith.constant 0 : i32
    %c0_i32_0 = arith.constant 0 : i32
    %c0_i32_1 = arith.constant 0 : i32
    return %c0_i32, %c0_i32_0 : i32, i32
  }
  func.func @transform_2(%arg0: i32) -> (i32, i32, i32) {
    %c0_i32 = arith.constant 0 : i32
    %c0_i32_0 = arith.constant 0 : i32
    %c0_i32_1 = arith.constant 0 : i32
    return %arg0, %c0_i32, %c0_i32_0 : i32, i32, i32
  }
}

</mosaic_0001>

<bundles_post_ra>
// kernel: tpu_custom_call.1
= control target key start
LH: loop header
LB: loop body
LE: loop exit
PB: predicated region body
PF: predicated region fallthrough
CT: control target
= control target key end

     0   :  { %7 = vsyncpa [#allocation3], 0  ;;  %s22382_s0 = inlined_call_operand.hbm [shape: f32[2,1,176], index: 0, kind: input, shape index: {}]   ;;  %s22383_s1 = inlined_call_operand.hbm [shape: f32[336,128], index: 1, kind: input, shape index: {}]   ;;  %s22384_s2 = inlined_call_operand.hbm [shape: f32[2,64,128], index: 2, kind: output, shape index: {}]  }
   0x1   :  { %9 = vsyncpa [#allocation3 + $0x1], 0 }
   0x2   :  { %10 = vsyncpa [#allocation6], 0 }
   0x3   :  { %11 = vsyncpa [#allocation4], 0 }
   0x4   :  { %13 = vsyncpa [#allocation4 + $0x1], 0  ;;  %s20289_s9 = smov 0   ;;  %s20291_s10 = smov 0  }
   0x5   :  { %s20293_s11 = smov 0   ;;  %s20295_s12 = smov 0  }
   0x6 LB: > { %s20310_s13 = sadd.s32 4294967295, %s20250_s12   ;;  %s17705_s14 = sadd.s32 4294967294, %s20250_s12   ;;  %s20250_s12 = sphi %s20295_s12, %s22562_s12   ;;  %s20246_s11 = sphi %s20293_s11, %s22561_s11   ;;  %s20242_s10 = sphi %s20291_s10, %s22560_s10   ;;  %s20238_s9 = sphi %s20289_s9, %s22559_s9  }
   0x7   : > { %p39_p0 = scmp.ne.s32.totalorder %s20242_s10, %s20238_s9  ;;  %p22385_p1 = scmp.eq.s32.totalorder %s20310_s13, 0 }
   0x8   : > { %p90_p3 = scmp.eq.s32.totalorder %s17705_s14, 1  ;;  %p17706_p5 = scmp.ge.s32.totalorder %s20250_s12, 1 }
   0x9   : > { %p20319_p4 = por %p22385_p1, %p39_p0  ;;  %p97_p7 = scmp.lt.s32.totalorder %s20250_s12, 3 }
   0xa   : > { %p20324_p6 = por %p90_p3, %p39_p0  ;;  %s20252_s18 = smov [#allocation5]  }
   0xb   : > { %s22437_s15 = scalar_select %p20319_p4, 1, 0 }
   0xc   : > { %s22438_s16 = scalar_select %p20324_p6, 1, 0 }
   0xd   : > { %p20329_p8 = pnand %p17706_p5, %p97_p7  ;;  %s109_s19 = sshll.u32 %s20252_s18, 4  ;;  %s20333_s19 = int_to_ptr.vmem [resolvable:$true] %s109_s19 }
   0xe   : > { %s20345_s21 = sadd.s32 1, %s20250_s12   ;;  %s26_s22 = sadd.s32 1, %s20246_s11 }
   0xf   : > { %s22439_s17 = scalar_select %p20329_p8, 1, 0 }
  0x10   : > { %p20052_p9 = pneg %p20329_p8  ;;  %s23_s23 = ssub.s32 %s20250_s12, %s20345_s21 }
  0x11   : > { %s20122_s26 = scalar_lea.hbm %s22383_s1, 5376 }
  0x12   : > { %p20340_p11 = pnand %p20052_p9, %p22385_p1  ;;  %p20123_p12 = scmp.ne.s32.totalorder %s22383_s1, %s20122_s26 }
  0x13   : > { %p20129_p5 = scmp.lt.u32.totalorder %s20122_s26, %s22383_s1 }
  0x14   : > { %p20124_p13 = pneg %p20340_p11 }
  0x16   : > { %p20125_p0 = pnand %p20124_p13, %p20123_p12 }
  0x18   : > { %p20126_p3 = pneg %p20125_p0 }
  0x1a   : > { %p20131_p7 = pnand %p20129_p5, %p20126_p3 }
  0x1c   : > { %20134 = shalt.err (!%p20131_p7)
}
  0x1d   : > { %s20135_s3 = scalar_lea.vmem %s20333_s19, 5376  ;;  %p20143_p2 = scmp.lt.s32.totalorder %s20333_s19, %s20333_s19 }
  0x1e   : > { %p20136_p9 = scmp.ne.s32.totalorder %s20333_s19, %s20135_s3  ;;  %p20144_p6 = scmp.lt.s32.totalorder %s20135_s3, %s20135_s3 }
  0x20   : > { %p20138_p10 = pnand %p20136_p9, %p20124_p13  ;;  %p20145_p4 = por %p20144_p6, %p20143_p2 }
  0x22   : > { %p20139_p1 = pneg %p20138_p10 }
  0x24   : > { %p20146_p8 = pnand %p20145_p4, %p20139_p1 }
  0x26   : > { %20149 = shalt.err (!%p20146_p8)
}
  0x27   : > { %s20253_s4 = smov 128   ;;  %s20254_s5 = smov 8  }
  0x28   : > { %20055 = dma.hbm_to_vmem [thread:$0]  (!%p20340_p11), %s22383_s1, 5376, %s20333_s19, [#allocation6], %s20253_s4, %s20253_s4, %s20254_s5  }
  0x29   : > { %p24_p2 = scmp.eq.s32.totalorder %s23_s23, 0  ;;  %p33_p1 = scmp.ne.s32.totalorder %s20246_s11, %s20242_s10 }
  0x2a   : > { %p34_p4 = scmp.eq.s32.totalorder %s20250_s12, 0  ;;  %p20065_p6 = scmp.lt.s32.totalorder %s20250_s12, 2 }
  0x2b   : > { %s20376_s8 = scalar_select %p24_p2, %s20246_s11, %s26_s22  }
  0x2c   : > { %p35_p8 = por %p34_p4, %p33_p1  ;;  %p22441_p10 = scmp.eq.s32.totalorder %s20310_s13, 1 }
  0x2d   : > { %s123_s18 = sand.u32 1, %s20246_s11   ;;  %s17866_s24 = sshll.u32 %s20250_s12, 5 }
  0x2e   : > { %p20380_p12 = por %p22441_p10, %p33_p1  ;;  %s17709_s25 = sshll.u32 %s123_s18, 1 }
  0x2f   : > { %s20389_s27 = scalar_lea.hbm %s22382_s0, %s17866_s24  ;;  %s127_s19 = scalar_lea.vmem [#allocation2], %s17709_s25 }
  0x30   : > { %s135_s22 = sshll.u32 %s127_s19, 4  ;;  %p20391_p11 = pnand %p20065_p6, %p35_p8  ;;  %s20395_s22 = int_to_ptr.vmem [resolvable:$true] %s135_s22 }
  0x31   : > { %s124_s28 = scalar_lea.sflag [#allocation3], %s123_s18  ;;  %s20150_s29 = scalar_lea.hbm %s20389_s27, 32 }
  0x32   : > { %p20151_p13 = scmp.ne.s32.totalorder %s20389_s27, %s20150_s29  ;;  %p20152_p0 = pneg %p20391_p11 }
  0x33   : > { %s20155_s4 = scalar_lea.hbm %s22382_s0, 64  ;;  %p20156_p7 = scmp.lt.u32.totalorder %s20389_s27, %s22382_s0 }
  0x34   : > { %p20153_p3 = pnand %p20152_p0, %p20151_p13  ;;  %p20157_p9 = scmp.lt.u32.totalorder %s20155_s4, %s20150_s29 }
  0x35   : > { %p20159_p1 = scmp.lt.u32.totalorder %s20150_s29, %s20389_s27 }
  0x36   : > { %p20154_p5 = pneg %p20153_p3  ;;  %p20158_p2 = por %p20157_p9, %p20156_p7 }
  0x38   : > { %p20160_p4 = por %p20159_p1, %p20158_p2 }
  0x3a   : > { %p20161_p6 = pnand %p20160_p4, %p20154_p5 }
  0x3c   : > { %20164 = shalt.err (!%p20161_p6)
}
  0x3d   : > { %s20165_s7 = scalar_lea.vmem %s20395_s22, 32  ;;  %s20255_s18 = smov [#allocation2]  }
  0x3e   : > { %p20166_p8 = scmp.ne.s32.totalorder %s20395_s22, %s20165_s7  ;;  %s20170_s24 = sshll.u32 %s20255_s18, 4  ;;  %s20171_s24 = int_to_ptr.vmem [resolvable:$false] %s20170_s24 }
  0x3f   : > { %s20172_s25 = scalar_lea.vmem %s20171_s24, 64  ;;  %p20173_p3 = scmp.lt.s32.totalorder %s20395_s22, %s20171_s24 }
  0x40   : > { %p20168_p10 = pnand %p20166_p8, %p20152_p0  ;;  %p20174_p7 = scmp.lt.s32.totalorder %s20172_s25, %s20165_s7 }
  0x42   : > { %p20169_p13 = pneg %p20168_p10  ;;  %p20175_p9 = por %p20174_p7, %p20173_p3 }
  0x44   : > { %p20176_p2 = pnand %p20175_p9, %p20169_p13 }
  0x46   : > { %20179 = shalt.err (!%p20176_p2)
}
  0x47   : > { %20059 = dma.hbm_to_vmem [thread:$0]  (!%p20391_p11), %s20389_s27, 32, %s20395_s22, %s124_s28  }
  0x48   : > { %p22444_p5 = scmp.ne.s32.totalorder %s22439_s17, 0 }
  0x4a   : > { %144 = sbr.rel (%p22444_p5) target bundleno = 6079 (0x17bf), region = 28 }
  0x51   : > { %s20425_s20 = sand.u32 1, %s20242_s10   ;;  %p22445_p0 = scmp.ne.s32.totalorder %s22437_s15, 0 }
  0x52   : > { %s17713_s26 = sshll.u32 %s20425_s20, 1  ;;  %s147_s19 = scalar_lea.sflag [#allocation3], %s20425_s20 }
  0x53   : > { %s150_s29 = scalar_lea.vmem [#allocation2], %s17713_s26 }
  0x54   : > { %20225 = dma.done.wait (%p22445_p0), %s147_s19, 32  }
  0x55   : > { %20227 = vsyncadd (%p22445_p0), %s147_s19, 4294967264  ;;  %p22446_p1 = scmp.eq.s32.totalorder %s20310_s13, 0 }
  0x57   : > { %20229 = dma.done.wait (%p22446_p1), [#allocation6], 5376   ;;  %p22447_p11 = pmov %p22446_p1 }
  0x58   : > { %v20256_v0 = vmov 0   ;;  %v197_v1 = vld [vmem:[#allocation5 + $0x8] sm:$0xff]  ;;  %v176_v2 = vld [vmem:[#allocation5] sm:$0xff]  ;;  %v217_v3 = vld [vmem:[#allocation5 + $0x10] sm:$0xff]  ;;  %v183_v5 = vlaneseq  ;;  %s20257_s15 = smov 127   ;;  %s20258_s17 = smov 126  }
  0x59   : > { %20231 = vsyncadd (%p22447_p11), [#allocation6], 4294961920  ;;  %20120 = vset.pattern.permute.xlu0 %v20256_v0  ;;  %20121 = vset.pattern.permute.xlu1 %v20256_v0  ;;  %v237_v4 = vld [vmem:[#allocation5 + $0x18] sm:$0xff]  ;;  %vm22389_vm0 = vcmask 1039360   ;;  %vm231_vm1 = vcmask 1031168   ;;  %v20259_v25 = vmov 0.0  }
  0x5a   : > { %200 = vperm.xlu0 %20120, %v197_v1   ;;  %179 = vperm.xlu1 %20121, %v176_v2   ;;  %v20438_v6 = vshrl.u32 %v183_v5, 7  ;;  %v175_v9 = vld [vmem:[%s150_s29] sm:$0x3]  ;;  %v248_v38 = vld [vmem:[#allocation5 + $0x28] sm:$0xff]  ;;  %vm22388_vm2 = vcmask 64512   ;;  %v247_v58 = vld [vmem:[#allocation5 + $0x20] sm:$0xff] }
  0x5b   : > { %328 = vmatprep.mubr.f32.mxu0 %v20259_v25  ;;  %v1673_v37 = vld [vmem:[#allocation5 + $0x38] sm:$0xff]  ;;  %v260_v39 = vsel %vm22388_vm2, %v248_v38, 0  ;;  %v728_v60 = vsel %vm22388_vm2, %v247_v58, 0  ;;  %s17715_s27 = sshll.u32 %s20425_s20, 6  ;;  %s20264_s23 = smov 123  }
  0x5c   : > { %v185_v7 = vsub.s32 0, %v20438_v6  ;;  %v189_v8 = vsub.s32 1, %v20438_v6  ;;  %v329_v40 = vand.u32 4294901760, %v260_v39  ;;  %v797_v62 = vand.u32 4294901760, %v728_v60  ;;  %s21309_s22 = scalar_lea.vmem [#allocation7], %s17715_s27  ;;  %s20265_s28 = smov 120  }
  0x5d   : > { %v20485_v38 = vadd.s32 24, %v20438_v6  ;;  %s20266_s30 = smov 122   ;;  %s20267_s3 = smov 121  }
  0x5e   : > { %220 = vperm.xlu0 %20120, %v217_v3   ;;  %240 = vperm.xlu1 %20121, %v237_v4   ;;  %v186_v10 = vrot.slane %v175_v9, %v185_v7  ;;  %v190_v11 = vrot.slane %v175_v9, %v189_v8  ;;  %v330_v41 = vsub.f32 %v260_v39, %v329_v40  ;;  %s20268_s4 = smov 115   ;;  %s20269_s5 = smov 114  }
  0x5f   : > { %v798_v1 = vsub.f32 %v728_v60, %v797_v62  ;;  %v20670_v60 = vadd.s32 128, %v20438_v6  ;;  %s20270_s6 = smov 113   ;;  %s17867_s7 = sshll.u32 %s20310_s13, 10 }
  0x60   : > { %v331_v42 = vand.u32 4294901760, %v330_v41  ;;  %s17622_s18 = sshll.u32 %s21309_s22, 4  ;;  %s22334_s26 = scalar_lea.hbm %s22384_s2, %s17867_s7  ;;  %s22336_s18 = int_to_ptr.vmem [resolvable:$true] %s17622_s18 }
  0x61   : > { %v799_v4 = vand.u32 4294901760, %v798_v1  ;;  %s17609_s13 = scalar_lea.sflag [#allocation4], %s20425_s20  ;;  %s20180_s19 = scalar_lea.vmem %s22336_s18, 1024 }
  0x62   : > { %v332_v43 = vsub.f32 %v330_v41, %v331_v42  ;;  %p20181_p4 = scmp.ne.s32.totalorder %s22336_s18, %s20180_s19  ;;  %s20271_s29 = smov [#allocation7]  }
  0x63   : > { %v800_v9 = vsub.f32 %v798_v1, %v799_v4 }
  0x64   : > { %v333_v48 = vand.u32 4294901760, %v332_v43  ;;  %p20182_p6 = pnand %p20181_p4, %p20380_p12 }
  0x66   : > { %p20183_p8 = pneg %p20182_p6 }
  0xd9   : > { %v201_v12 = vpop.permute.xlu0 %200  ;;  %v180_v18 = vpop.permute.xlu1 %179 }
  0xda   : > { %v203_v13 = vmul.f32 %v201_v12, %v186_v10  ;;  %v204_v14 = vmul.f32 %v201_v12, %v190_v11  ;;  %v194_v22 = vmul.f32 %v190_v11, %v180_v18  ;;  %v193_v24 = vmul.f32 %v186_v10, %v180_v18 }
  0xdc   : > { %209 = vrot.lane.b32.xlu1 %v204_v14, %s20257_s15  ;;  %207 = vrot.lane.b32.xlu0 %v203_v13, %s20257_s15  ;;  %v1195_v14 = vld [vmem:[#allocation5 + $0x30] sm:$0xff] }
  0xdd   : > { %v221_v15 = vpop.permute.xlu0 %220  ;;  %v241_v19 = vpop.permute.xlu1 %240 }
  0xde   : > { %v223_v16 = vmul.f32 %v221_v15, %v186_v10  ;;  %v224_v17 = vmul.f32 %v221_v15, %v190_v11  ;;  %v801_v11 = vand.u32 4294901760, %v800_v9 }
  0xe0   : > { %229 = vrot.lane.b32.xlu1 %v224_v17, %s20258_s17  ;;  %227 = vrot.lane.b32.xlu0 %v223_v16, %s20258_s17  ;;  %v1204_v17 = vsel %vm22388_vm2, %v1195_v14, 0 }
 0x14e   : > { %v210_v20 = vpop.permute.xlu1 %209  ;;  %v208_v21 = vpop.permute.xlu0 %207 }
 0x14f   : > { %v212_v23 = vsel %vm22389_vm0, %v208_v21, %v210_v20  ;;  %v216_v26 = vadd.f32 %v210_v20, %v194_v22  ;;  %v1273_v20 = vand.u32 4294901760, %v1204_v17 }
 0x150   : > { %v215_v27 = vadd.f32 %v212_v23, %v193_v24 }
 0x151   : > { %v1274_v23 = vsub.f32 %v1204_v17, %v1273_v20  ;;  %v20262_v17 = vmov 1.0  }
 0x152   : > { %v230_v28 = vpop.permute.xlu1 %229  ;;  %v228_v29 = vpop.permute.xlu0 %227 }
 0x153   : > { %v236_v30 = vadd.f32 %v230_v28, %v216_v26  ;;  %v232_v31 = vsel %vm231_vm1, %v228_v29, %v230_v28 }
 0x154   : > { %v235_v32 = vadd.f32 %v232_v31, %v215_v27  ;;  %v1275_v27 = vand.u32 4294901760, %v1274_v23 }
 0x155   : > { %v244_v33 = vadd.f32 %v241_v19, %v236_v30 }
 0x156   : > { %v243_v34 = vadd.f32 %v241_v19, %v235_v32  ;;  %v1276_v30 = vsub.f32 %v1274_v23, %v1275_v27 }
 0x157   : > { %v246_v35 = vmax.f32 %v244_v33, 0.0 }
 0x158   : > { %v245_v36 = vmax.f32 %v243_v34, 0.0  ;;  %v1277_v32 = vand.u32 4294901760, %v1276_v30  ;;  %v20477_v34 = vadd.s32 8, %v20438_v6 }
 0x159   : > { %253 = vrot.lane.b32.xlu1 %v246_v35, %s20257_s15  ;;  %v730_v59 = vand.u32 4294901760, %v246_v35 }
 0x15a   : > { %251 = vrot.lane.b32.xlu0 %v245_v36, %s20257_s15  ;;  %v732_v63 = vand.u32 4294901760, %v245_v36 }
 0x15b   : > { %v809_v61 = vsub.f32 %v246_v35, %v730_v59 }
 0x15c   : > { %v815_v2 = vsub.f32 %v245_v36, %v732_v63 }
 0x15d   : > { %1198 = vrot.lane.b32.xlu1 %v246_v35, %s20258_s17  ;;  %v810_v0 = vand.u32 4294901760, %v809_v61  ;;  %v1718_v35 = vand.u32 127, %v183_v5 }
 0x15e   : > { %1196 = vrot.lane.b32.xlu0 %v245_v36, %s20258_s17  ;;  %v816_v7 = vand.u32 4294901760, %v815_v2  ;;  %v22426_v36 = vmov 0.0|0.0  }
 0x15f   : > { %v811_v3 = vsub.f32 %v809_v61, %v810_v0  ;;  %19536 = vmatprep.subr.bf16.mxu1 %v22426_v36  ;;  %v20487_v39 = vmul.u32 2, %v1718_v35 }
 0x160   : > { %v817_v10 = vsub.f32 %v815_v2, %v816_v7 }
 0x161   : > { %v812_v8 = vand.u32 4294901760, %v811_v3  ;;  %vm22397_vm3 = vcmp.eq.s32.totalorder %v20438_v6, %v20487_v39  ;;  %vm22396_vm4 = vcmp.eq.s32.totalorder %v20477_v34, %v20487_v39  ;;  %vm22392_vm6 = vcmp.eq.s32.totalorder %v20485_v38, %v20487_v39 }
 0x162   : > { %1676 = vperm.xlu0 %20120, %v1673_v37   ;;  %v818_v12 = vand.u32 4294901760, %v817_v10  ;;  %v20482_v37 = vadd.s32 16, %v20438_v6  ;;  %vm20509_vm7 = vmpackc.low %vm22396_vm4, %vm22397_vm3 }
 0x164   : > { %vm22393_vm5 = vcmp.eq.s32.totalorder %v20482_v37, %v20487_v39 }
 0x165   : > { %vm20523_vm8 = vmpackc.low %vm22392_vm6, %vm22393_vm5 }
 0x1cb   : > { %v254_v44 = vpop.permute.xlu1 %253 }
 0x1cc   : > { %v262_v45 = vand.u32 4294901760, %v254_v44  ;;  %v252_v46 = vpop.permute.xlu0 %251 }
 0x1cd   : > { %v255_v47 = vsel %vm22389_vm0, %v252_v46, %v254_v44 }
 0x1ce   : > { %v341_v49 = vsub.f32 %v254_v44, %v262_v45  ;;  %v264_v50 = vand.u32 4294901760, %v255_v47  ;;  %263 = vmatprep.subr.mxu0 %v262_v45  ;;  %v20532_v44 = vadd.s32 48, %v20438_v6 }
 0x1cf   : > { %v1199_v13 = vpop.permute.xlu1 %1198 }
 0x1d0   : > { %v347_v51 = vsub.f32 %v255_v47, %v264_v50  ;;  %265 = vmatpush1.msra.mxu0 %v264_v50  ;;  %v342_v52 = vand.u32 4294901760, %v341_v49  ;;  %v1206_v15 = vand.u32 4294901760, %v1199_v13  ;;  %v1197_v16 = vpop.permute.xlu0 %1196  ;;  %vm1726_vm12 = vcmp.eq.s32.totalorder %v20532_v44, %v20487_v39 }
 0x1d1   : > { %334 = vmatmul.mubr.f32.vlgmr.msra.gmra.mrb[0].mxu0 %v333_v48  ;;  %v1200_v19 = vsel %vm231_vm1, %v1197_v16, %v1199_v13  ;;  %v20556_v47 = vadd.s32 64, %v20438_v6  ;;  %v20559_v48 = vadd.s32 72, %v20438_v6 }
 0x1d2   : > { %v348_v53 = vand.u32 4294901760, %v347_v51  ;;  %v343_v54 = vsub.f32 %v341_v49, %v342_v52  ;;  %414 = vmatprep.mubr.f32.mxu0 %v20259_v25  ;;  %v1285_v18 = vsub.f32 %v1199_v13, %v1206_v15  ;;  %v1208_v21 = vand.u32 4294901760, %v1200_v19 }
 0x1d3   : > { %vm22407_vm15 = vcmp.eq.s32.totalorder %v20556_v47, %v20487_v39  ;;  %vm22404_vm1 = vcmp.eq.s32.totalorder %v20559_v48, %v20487_v39 }
 0x1d4   : > { %v349_v55 = vsub.f32 %v347_v51, %v348_v53  ;;  %v344_v56 = vand.u32 4294901760, %v343_v54  ;;  %v1286_v22 = vand.u32 4294901760, %v1285_v18  ;;  %v1291_v24 = vsub.f32 %v1200_v19, %v1208_v21  ;;  %vm20595_vm2 = vmpackc.low %vm22404_vm1, %vm22407_vm15 }
 0x1d5   : > { %v20607_v54 = vadd.s32 104, %v20438_v6  ;;  %vm1790_vm1 = vcmask 1042432  }
 0x1d6   : > { %345 = vmatprep.subr.mxu0 %v344_v56  ;;  %v350_v57 = vand.u32 4294901760, %v349_v55  ;;  %v1287_v26 = vsub.f32 %v1285_v18, %v1286_v22  ;;  %v1292_v28 = vand.u32 4294901760, %v1291_v24  ;;  %v20628_v56 = vadd.s32 112, %v20438_v6 }
 0x1d7   : > { %vm22398_vm5 = vcmp.eq.s32.totalorder %v20607_v54, %v20487_v39 }
 0x1d8   : > { %351 = vmatpush1.msra.mxu0 %v350_v57  ;;  %v1288_v29 = vand.u32 4294901760, %v1287_v26  ;;  %v1293_v31 = vsub.f32 %v1291_v24, %v1292_v28  ;;  %v20631_v57 = vadd.s32 120, %v20438_v6 }
 0x1d9   : > { %416 = vmatmul.mubr.f32.vlgmr.msra.gmra.mrb[0].mxu0 %v329_v40  ;;  %424 = vmatprep.subr.mxu0 %v341_v49 }
 0x1da   : > { %427 = vmatpush1.msra.mxu0 %v347_v51  ;;  %490 = vmatprep.mubr.f32.mxu0 %v20259_v25  ;;  %v1294_v33 = vand.u32 4294901760, %v1293_v31  ;;  %v20583_v51 = vadd.s32 88, %v20438_v6  ;;  %vm22399_vm4 = vcmp.eq.s32.totalorder %v20631_v57, %v20487_v39 }
 0x1db   : > { %500 = vmatprep.subr.mxu0 %v262_v45 }
 0x1e1   : > { %493 = vmatmul.mubr.f32.vlgmr.msra.gmra.mrb[0].mxu0 %v330_v41  ;;  %v20493_v41 = vadd.s32 40, %v20438_v6 }
 0x1e2   : > { %502 = vmatpush1.msra.mxu0 %v264_v50  ;;  %565 = vmatprep.mubr.f32.mxu0 %v20259_v25 }
 0x1e3   : > { %578 = vmatprep.subr.mxu0 %v342_v52  ;;  %vm22391_vm10 = vcmp.eq.s32.totalorder %v20493_v41, %v20487_v39 }
 0x1e9   : > { %569 = vmatmul.mubr.f32.vlgmr.msra.gmra.mrb[0].mxu0 %v331_v42  ;;  %v22422_v42 = vmov 1.0|1.0  }
 0x1ea   : > { %582 = vmatpush1.msra.mxu0 %v348_v53  ;;  %645 = vmatprep.mubr.f32.mxu0 %v20259_v25  ;;  %v20604_v53 = vadd.s32 96, %v20438_v6 }
 0x1eb   : > { %654 = vmatprep.subr.mxu0 %v262_v45  ;;  %19538 = vmatpush1.bf16.msk.msra.mxu1 %vm20509_vm7, %v22422_v42  ;;  %v20535_v45 = vadd.s32 56, %v20438_v6 }
 0x1ec   : > { %19539 = vmatprep.subr.bf16.mxu1 %v22426_v36  ;;  %vm22401_vm6 = vcmp.eq.s32.totalorder %v20604_v53, %v20487_v39 }
 0x1ed   : > { %vm1727_vm13 = vcmp.eq.s32.totalorder %v20535_v45, %v20487_v39 }
 0x1ee   : > { %vm20571_vm14 = vmpackc.low %vm1727_vm13, %vm1726_vm12  ;;  %v17723_v16 = vsel %vm1727_vm13, 1.0, %v20259_v25  ;;  %vm22473_vm13 = vcmp.eq.s32.totalorder %v20604_v53, %v20487_v39 }
 0x1ef   : > { %19541 = vmatpush1.bf16.msk.msra.mxu1 %vm20523_vm8, %v22422_v42 }
 0x1f0   : > { %19542 = vmatprep.subr.bf16.mxu1 %v22426_v36 }
 0x1f1   : > { %647 = vmatmul.mubr.f32.vlgmr.msra.gmra.mrb[0].mxu0 %v329_v40 }
 0x1f2   : > { %656 = vmatpush1.msra.mxu0 %v264_v50  ;;  %719 = vmatprep.mubr.f32.mxu0 %v20259_v25  ;;  %v20580_v50 = vadd.s32 80, %v20438_v6 }
 0x1f3   : > { %731 = vmatprep.subr.mxu0 %v730_v59 }
 0x1f4   : > { %vm22395_vm0 = vcmp.eq.s32.totalorder %v20580_v50, %v20487_v39 }
 0x1f9   : > { %721 = vmatmul.mubr.f32.vlgmr.msra.gmra.mrb[0].mxu0 %v329_v40  ;;  %v20490_v40 = vadd.s32 32, %v20438_v6 }
 0x1fa   : > { %733 = vmatpush1.msra.mxu0 %v732_v63  ;;  %796 = vmatprep.mubr.f32.mxu0 %v20259_v25 }
 0x1fb   : > { %813 = vmatprep.subr.mxu0 %v812_v8  ;;  %vm22390_vm9 = vcmp.eq.s32.totalorder %v20490_v40, %v20487_v39 }
 0x1fc   : > { %vm20547_vm11 = vmpackc.low %vm22391_vm10, %vm22390_vm9  ;;  %vm22394_vm9 = vcmp.eq.s32.totalorder %v20583_v51, %v20487_v39 }
 0x1fd   : > { %19544 = vmatpush1.bf16.msk.msra.mxu1 %vm20547_vm11, %v22422_v42  ;;  %vm20619_vm10 = vmpackc.low %vm22394_vm9, %vm22395_vm0  ;;  %vm22400_vm0 = vcmp.eq.s32.totalorder %v20628_v56, %v20487_v39 }
 0x1fe   : > { %19545 = vmatprep.subr.bf16.mxu1 %v22426_v36  ;;  %vm20643_vm9 = vmpackc.low %vm22398_vm5, %vm22401_vm6  ;;  %vm22403_vm5 = vcmp.eq.s32.totalorder %v20670_v60, %v20487_v39 }
 0x1ff   : > { %vm20661_vm3 = vmpackc.low %vm22399_vm4, %vm22400_vm0 }
 0x201   : > { %802 = vmatmul.mubr.f32.vlgmr.msra.gmra.mrb[0].mxu0 %v801_v11  ;;  %19547 = vmatpush1.bf16.msk.msra.mxu1 %vm20571_vm14, %v22422_v42 }
 0x202   : > { %819 = vmatpush1.msra.mxu0 %v818_v12  ;;  %882 = vmatprep.mubr.f32.mxu0 %v20259_v25 }
 0x203   : > { %892 = vmatprep.subr.mxu0 %v809_v61  ;;  %19548 = vmatprep.subr.bf16.mxu1 %v22426_v36  ;;  %v20673_v61 = vadd.s32 136, %v20438_v6 }
 0x205   : > { %19550 = vmatpush1.bf16.msk.msra.mxu1 %vm20595_vm2, %v22422_v42  ;;  %vm22402_vm4 = vcmp.eq.s32.totalorder %v20673_v61, %v20487_v39 }
 0x206   : > { %19551 = vmatprep.subr.bf16.mxu1 %v22426_v36  ;;  %vm20685_vm0 = vmpackc.low %vm22402_vm4, %vm22403_vm5 }
 0x209   : > { %884 = vmatmul.mubr.f32.vlgmr.msra.gmra.mrb[0].mxu0 %v797_v62  ;;  %19553 = vmatpush1.bf16.msk.msra.mxu1 %vm20619_vm10, %v22422_v42 }
 0x20a   : > { %895 = vmatpush1.msra.mxu0 %v815_v2  ;;  %958 = vmatprep.mubr.f32.mxu0 %v20259_v25  ;;  %v1677_v2 = vpop.permute.xlu0 %1676 }
 0x20b   : > { %968 = vmatprep.subr.mxu0 %v730_v59  ;;  %19554 = vmatprep.subr.bf16.mxu1 %v22426_v36 }
 0x20d   : > { %19556 = vmatpush1.bf16.msk.msra.mxu1 %vm20643_vm9, %v22422_v42 }
 0x20e   : > { %19557 = vmatprep.subr.bf16.mxu1 %v22426_v36 }
 0x211   : > { %961 = vmatmul.mubr.f32.vlgmr.msra.gmra.mrb[0].mxu0 %v798_v1  ;;  %19559 = vmatpush1.bf16.msk.msra.mxu1 %vm20661_vm3, %v22422_v42 }
 0x212   : > { %970 = vmatpush1.msra.mxu0 %v732_v63  ;;  %1033 = vmatprep.mubr.f32.mxu0 %v20259_v25 }
 0x213   : > { %1046 = vmatprep.subr.mxu0 %v810_v0  ;;  %19560 = vmatprep.subr.bf16.mxu1 %v22426_v36  ;;  %v20696_v0 = vadd.s32 152, %v20438_v6 }
 0x215   : > { %19562 = vmatpush1.bf16.msk.msra.mxu1 %vm20685_vm0, %v22422_v42  ;;  %vm22405_vm4 = vcmp.eq.s32.totalorder %v20696_v0, %v20487_v39 }
 0x216   : > { %19563 = vmatprep.subr.bf16.mxu1 %v22426_v36 }
 0x219   : > { %1037 = vmatmul.mubr.f32.vlgmr.msra.gmra.mrb[0].mxu0 %v799_v4  ;;  %v20717_v4 = vadd.s32 160, %v20438_v6 }
 0x21a   : > { %1050 = vmatpush1.msra.mxu0 %v816_v7  ;;  %1113 = vmatprep.mubr.f32.mxu0 %v20259_v25  ;;  %v1716_v7 = vadd.s32 168, %v20438_v6 }
 0x21b   : > { %1122 = vmatprep.subr.mxu0 %v730_v59  ;;  %v3884_v59 = vld [vmem:[#allocation5 + $0x58] sm:$0xff] }
 0x221   : > { %1115 = vmatmul.mubr.f32.vlgmr.msra.gmra.mrb[0].mxu0 %v797_v62 }
 0x222   : > { %1124 = vmatpush1.msra.mxu0 %v732_v63  ;;  %1187 = vmatprep.mubr.f32.mxu0 %v20259_v25  ;;  %v20693_v63 = vadd.s32 144, %v20438_v6 }
 0x223   : > { %1207 = vmatprep.subr.mxu0 %v1206_v15 }
 0x224   : > { %vm22406_vm6 = vcmp.eq.s32.totalorder %v20693_v63, %v20487_v39 }
 0x225   : > { %vm20709_vm5 = vmpackc.low %vm22405_vm4, %vm22406_vm6  ;;  %vm1740_vm4 = vcmp.eq.s32.totalorder %v20717_v4, %v20487_v39  ;;  %vm1741_vm6 = vcmp.eq.s32.totalorder %v1716_v7, %v20487_v39 }
 0x226   : > { %19565 = vmatpush1.bf16.msk.msra.mxu1 %vm20709_vm5, %v22422_v42  ;;  %v20731_v13 = vsel %vm1741_vm6, 1.0, %v20259_v25  ;;  %vm20737_vm15 = vmpackc.low %vm1790_vm1, %vm1740_vm4  ;;  %vm22470_vm6 = vcmp.eq.s32.totalorder %v20556_v47, %v20487_v39 }
 0x227   : > { %19566 = vmatprep.subr.bf16.mxu1 %v22426_v36 }
 0x229   : > { %1189 = vmatmul.mubr.f32.vlgmr.msra.gmra.mrb[0].mxu0 %v797_v62  ;;  %v2527_v62 = vld [vmem:[#allocation5 + $0x48] sm:$0xff] }
 0x22a   : > { %1209 = vmatpush1.msra.mxu0 %v1208_v21  ;;  %1272 = vmatprep.mubr.f32.mxu0 %v20259_v25 }
 0x22b   : > { %1289 = vmatprep.subr.mxu0 %v1288_v29 }
 0x231   : > { %1278 = vmatmul.mubr.f32.vlgmr.msra.gmra.mrb[0].mxu0 %v1277_v32 }
 0x232   : > { %1295 = vmatpush1.msra.mxu0 %v1294_v33  ;;  %1358 = vmatprep.mubr.f32.mxu0 %v20259_v25 }
 0x233   : > { %1368 = vmatprep.subr.mxu0 %v1285_v18  ;;  %v20753_v18 = vpack.c.bf16 %v20731_v13, %v20262_v17 }
 0x235   : > { %19569 = vmatpush1.bf16.msk.msra.mxu1 %vm20737_vm15, %v20753_v18 }
 0x236   : > { %19570 = vmatprep.subr.bf16.mxu1 %v22426_v36 }
 0x239   : > { %1360 = vmatmul.mubr.f32.vlgmr.msra.gmra.mrb[0].mxu0 %v1273_v20 }
 0x23a   : > { %1371 = vmatpush1.msra.mxu0 %v1291_v24  ;;  %1434 = vmatprep.mubr.f32.mxu0 %v20259_v25 }
 0x23b   : > { %1444 = vmatprep.subr.mxu0 %v1206_v15 }
 0x241   : > { %1437 = vmatmul.mubr.f32.vlgmr.msra.gmra.mrb[0].mxu0 %v1274_v23 }
 0x242   : > { %1446 = vmatpush1.msra.mxu0 %v1208_v21  ;;  %1509 = vmatprep.mubr.f32.mxu0 %v20259_v25 }
 0x243   : > { %1522 = vmatprep.subr.mxu0 %v1286_v22 }
 0x249   : > { %1513 = vmatmul.mubr.f32.vlgmr.msra.gmra.mrb[0].mxu0 %v1275_v27 }
 0x24a   : > { %1526 = vmatpush1.msra.mxu0 %v1292_v28  ;;  %1589 = vmatprep.mubr.f32.mxu0 %v20259_v25  ;;  %v17728_v28 = vsel %vm22473_vm13, 1.0, %v20259_v25  ;;  %vm22476_vm13 = vcmp.eq.s32.totalorder %v20631_v57, %v20487_v39 }
 0x24b   : > { %1598 = vmatprep.subr.mxu0 %v1206_v15  ;;  %v17722_v15 = vsel %vm1726_vm12, 1.0, %v20259_v25  ;;  %vm22471_vm12 = vcmp.eq.s32.totalorder %v20559_v48, %v20487_v39  ;;  %v20796_v45 = vsub.f32 %v17728_v28, %v17728_v28  ;;  %v17731_v48 = vsel %vm22476_vm13, 1.0, %v20259_v25 }
 0x24c   : > { %v20761_v19 = vsub.f32 %v17722_v15, %v17722_v15  ;;  %v17725_v22 = vsel %vm22471_vm12, 1.0, %v20259_v25  ;;  %vm22475_vm12 = vcmp.eq.s32.totalorder %v20628_v56, %v20487_v39  ;;  %v20819_v57 = vsub.f32 %v17731_v48, %v17731_v48 }
 0x24d   : > { %v20776_v24 = vsub.f32 %v17725_v22, %v17725_v22  ;;  %v17730_v47 = vsel %vm22475_vm12, 1.0, %v20259_v25  ;;  %vm22478_vm12 = vcmp.eq.s32.totalorder %v20673_v61, %v20487_v39  ;;  %vm22479_vm13 = vcmp.eq.s32.totalorder %v20693_v63, %v20487_v39 }
 0x24e   : > { %v22421_v26 = vand.u32 4294901760, %v20761_v19  ;;  %v20817_v15 = vsub.f32 %v17730_v47, %v17730_v47 }
 0x24f   : > { %22472 = vst [vmem:[#allocation11_spill] sm:$0xff] %v20776_v24  ;;  %v22412_v44 = vand.u32 4294901760, %v20776_v24 }
 0x250   : > { %v1942_v29 = vsub.f32 %v20761_v19, %v22421_v26  ;;  %v22408_v28 = vand.u32 4294901760, %v20817_v15 }
 0x251   : > { %1591 = vmatmul.mubr.f32.vlgmr.msra.gmra.mrb[0].mxu0 %v1273_v20 }
 0x252   : > { %1600 = vmatpush1.msra.mxu0 %v1208_v21  ;;  %1663 = vmatprep.mubr.f32.mxu0 %v20259_v25  ;;  %v17724_v21 = vsel %vm22470_vm6, 1.0, %v20259_v25  ;;  %vm22474_vm6 = vcmp.eq.s32.totalorder %v20607_v54, %v20487_v39  ;;  %v1943_v32 = vand.u32 4294901760, %v1942_v29  ;;  %v22409_v29 = vand.u32 4294901760, %v20819_v57 }
 0x253   : > { %18384 = vmatprep.subr.mxu0 %v20259_v25  ;;  %v20774_v23 = vsub.f32 %v17724_v21, %v17724_v21  ;;  %v17729_v31 = vsel %vm22474_vm6, 1.0, %v20259_v25  ;;  %vm22477_vm6 = vcmp.eq.s32.totalorder %v20670_v60, %v20487_v39  ;;  %v17733_v21 = vsel %vm22478_vm12, 1.0, %v20259_v25 }
 0x254   : > { %v20806_v53 = vsub.f32 %v17729_v31, %v17729_v31  ;;  %v17732_v17 = vsel %vm22477_vm6, 1.0, %v20259_v25  ;;  %v20836_v31 = vsub.f32 %v17733_v21, %v17733_v21  ;;  %v17734_v60 = vsel %vm22479_vm13, 1.0, %v20259_v25 }
 0x255   : > { %v22419_v35 = vand.u32 4294901760, %v20774_v23  ;;  %vm22480_vm6 = vcmp.eq.s32.totalorder %v20696_v0, %v20487_v39  ;;  %v17736_v21 = vsel %vm1740_vm4, 1.0, %v20259_v25  ;;  %vm22481_vm4 = vcmp.eq.s32.totalorder %v20438_v6, %v20487_v39 }
 0x256   : > { %v17735_v61 = vsel %vm22480_vm6, 1.0, %v20259_v25  ;;  %vm22482_vm12 = vcmp.eq.s32.totalorder %v20477_v34, %v20487_v39  ;;  %vm22483_vm13 = vcmp.eq.s32.totalorder %v20482_v37, %v20487_v39  ;;  %vm22485_vm6 = vcmp.eq.s32.totalorder %v20485_v38, %v20487_v39 }
 0x257   : > { %v20855_v63 = vsub.f32 %v17735_v61, %v17735_v61  ;;  %v17719_v6 = vsel %vm22485_vm6, 1.0, %v20259_v25  ;;  %vm22489_vm6 = vcmask 1039360  }
 0x258   : > { %v20962_v26 = vsub.f32 %v17719_v6, %v17719_v6 }
 0x259   : > { %1665 = vmatmul.mubr.f32.vlgmr.msra.gmra.mrb[0].mxu0 %v1273_v20  ;;  %v20763_v20 = vsub.f32 %v17723_v16, %v17723_v16  ;;  %v22410_v16 = vand.u32 4294901760, %v20806_v53 }
 0x25b   : > { %v22420_v27 = vand.u32 4294901760, %v20763_v20 }
 0x25d   : > { %v1949_v30 = vsub.f32 %v20763_v20, %v22420_v27 }
 0x25f   : > { %v1950_v33 = vand.u32 4294901760, %v1949_v30  ;;  %v20834_v30 = vsub.f32 %v17732_v17, %v17732_v17  ;;  %v2005_v17 = vsub.f32 %v20819_v57, %v22409_v29 }
 0x261   : > { %v20808_v54 = vpack.c.bf16 %v1950_v33, %v1943_v32  ;;  %v1991_v33 = vsub.f32 %v20806_v53, %v22410_v16  ;;  %v2006_v61 = vand.u32 4294901760, %v2005_v17 }
 0x263   : > { %v1992_v48 = vand.u32 4294901760, %v1991_v33  ;;  %v22417_v33 = vand.u32 4294901760, %v20855_v63 }
 0x32c   : > { %v1666_v3 = vpop.f32.mrb[0].mxu0 }
 0x32d   : > { %v20720_v8 = vadd.f32 %v1677_v2, %v1666_v3  ;;  %v1668_v9 = vpop.f32.mrb[1].mxu0  ;;  %v1963_v3 = vsub.f32 %v20776_v24, %v22412_v44 }
 0x32e   : > { %v20723_v10 = vadd.f32 %v1677_v2, %v1668_v9  ;;  %v1956_v2 = vsub.f32 %v20774_v23, %v22419_v35  ;;  %v22411_v9 = vand.u32 4294901760, %v20796_v45 }
 0x32f   : > { %v1681_v11 = vmax.f32 %v20720_v8, 0.0  ;;  %v1964_v56 = vand.u32 4294901760, %v1963_v3  ;;  %v20853_v3 = vsub.f32 %v17734_v60, %v17734_v60 }
 0x330   : > { %v1682_v12 = vmax.f32 %v20723_v10, 0.0  ;;  %v1957_v7 = vand.u32 4294901760, %v1956_v2  ;;  %v1984_v32 = vsub.f32 %v20796_v45, %v22411_v9  ;;  %v22418_v2 = vand.u32 4294901760, %v20834_v30 }
 0x331   : > { %1685 = vrot.lane.b32.xlu0 %v1681_v11, %s20257_s15 }
 0x332   : > { %1687 = vrot.lane.b32.xlu1 %v1682_v12, %s20257_s15  ;;  %v20830_v22 = vpack.c.bf16 %v1964_v56, %v1957_v7  ;;  %v1985_v47 = vand.u32 4294901760, %v1984_v32  ;;  %v22413_v7 = vand.u32 4294901760, %v20836_v31  ;;  %v1998_v56 = vsub.f32 %v20817_v15, %v22408_v28 }
 0x333   : > { %v22414_v32 = vand.u32 4294901760, %v20853_v3  ;;  %v2012_v29 = vsub.f32 %v20834_v30, %v22418_v2  ;;  %v20940_v2 = vsel %vm22483_vm13, 1.0, %v20259_v25  ;;  %vm1786_vm13 = vcmask 351232  }
 0x334   : > { %v20858_v0 = vpack.c.bf16 %v1992_v48, %v1985_v47  ;;  %v1999_v60 = vand.u32 4294901760, %v1998_v56  ;;  %v1792_v47 = vsel %vm1790_vm1, %v20731_v13, 0  ;;  %v20874_v48 = vsub.f32 %v17736_v21, %v17736_v21  ;;  %22484 = vst [vmem:[#allocation12_spill] sm:$0xff] %v20940_v2 }
 0x335   : > { %v2019_v4 = vsub.f32 %v20836_v31, %v22413_v7  ;;  %v20884_v56 = vsub.f32 %v1792_v47, %v1792_v47  ;;  %v2013_v17 = vand.u32 4294901760, %v2012_v29  ;;  %v2026_v13 = vsub.f32 %v20853_v3, %v22414_v32 }
 0x336   : > { %v20876_v28 = vpack.c.bf16 %v2006_v61, %v1999_v60  ;;  %v22416_v9 = vand.u32 4294901760, %v20874_v48  ;;  %v2033_v21 = vsub.f32 %v20855_v63, %v22417_v33  ;;  %v20960_v38 = vsub.f32 %v20940_v2, %v20940_v2 }
 0x337   : > { %v2020_v16 = vand.u32 4294901760, %v2019_v4  ;;  %v2027_v60 = vand.u32 4294901760, %v2026_v13  ;;  %v22415_v7 = vand.u32 4294901760, %v20884_v56  ;;  %v20908_v13 = vpack.c.bf16 %v20763_v20, %v20761_v19 }
 0x338   : > { %v2034_v61 = vand.u32 4294901760, %v2033_v21  ;;  %v2040_v29 = vsub.f32 %v20874_v48, %v22416_v9  ;;  %v20912_v21 = vpack.c.bf16 %v20776_v24, %v20774_v23  ;;  %v22429_v8 = vand.u32 4294901760, %v20960_v38 }
 0x339   : > { %v20887_v44 = vpack.c.bf16 %v2020_v16, %v2013_v17  ;;  %v2047_v16 = vsub.f32 %v20884_v56, %v22415_v7  ;;  %v17717_v7 = vsel %vm22482_vm12, 1.0, %v20259_v25  ;;  %vm22487_vm12 = vcmp.eq.s32.totalorder %v20490_v40, %v20487_v39 }
 0x33a   : > { %v20896_v47 = vpack.c.bf16 %v2034_v61, %v2027_v60  ;;  %v2041_v4 = vand.u32 4294901760, %v2040_v29  ;;  %v20934_v33 = vsub.f32 %v17717_v7, %v17717_v7  ;;  %v20956_v37 = vsel %vm22487_vm12, 1.0, %v20259_v25 }
 0x33b   : > { %v2048_v17 = vand.u32 4294901760, %v2047_v16  ;;  %22488 = vst [vmem:[#allocation13_spill] sm:$0xff] %v20956_v37  ;;  %v1914_v36 = vsub.f32 %v20960_v38, %v22429_v8  ;;  %vm22492_vm12 = vcmp.eq.s32.totalorder %v20583_v51, %v20487_v39 }
 0x33c   : > { %v22424_v35 = vand.u32 4294901760, %v20934_v33 }
 0x33d   : > { %v20904_v32 = vpack.c.bf16 %v2048_v17, %v2041_v4  ;;  %v17716_v17 = vsel %vm22481_vm4, 1.0, %v20259_v25  ;;  %vm22486_vm4 = vcmp.eq.s32.totalorder %v20493_v41, %v20487_v39  ;;  %v1915_v24 = vand.u32 4294901760, %v1914_v36 }
 0x33e   : > { %v20932_v9 = vsub.f32 %v17716_v17, %v17716_v17  ;;  %v17721_v34 = vsel %vm22486_vm4, 1.0, %v20259_v25  ;;  %v1907_v6 = vsub.f32 %v20934_v33, %v22424_v35  ;;  %vm22490_vm4 = vcmp.eq.s32.totalorder %v20580_v50, %v20487_v39 }
 0x33f   : > { %v20967_v4 = vsub.f32 %v17721_v34, %v17721_v34  ;;  %v17727_v50 = vsel %vm22492_vm12, 1.0, %v20259_v25  ;;  %vm7732_vm12 = vcmask 1040384  }
 0x340   : > { %v22425_v7 = vand.u32 4294901760, %v20932_v9 }
 0x341   : > { %v22491_v8 = vand.u32 4294901760, %v20967_v4 }
 0x342   : > { %v1900_v29 = vsub.f32 %v20932_v9, %v22425_v7 }
 0x344   : > { %v1901_v34 = vand.u32 4294901760, %v1900_v29 }
 0x3a3   : > { %v1686_v17 = vpop.permute.xlu0 %1685 }
 0x3a4   : > { %v1688_v27 = vpop.permute.xlu1 %1687 }
 0x3a5   : > { %v1689_v41 = vsel %vm22489_vm6, %v1686_v17, %v1688_v27  ;;  %v1693_v42 = vmax.f32 %v1682_v12, %v1688_v27  ;;  %v20979_v17 = vsub.f32 %v20956_v37, %v20956_v37 }
 0x3a6   : > { %v1692_v40 = vmax.f32 %v1681_v11, %v1689_v41  ;;  %v1908_v41 = vand.u32 4294901760, %v1907_v6  ;;  %v21013_v6 = vsel %vm22490_vm4, 1.0, %v20259_v25 }
 0x3a7   : > { %v1788_v16 = vsel %vm1786_vm13, %v1693_v42, 0  ;;  %v22428_v42 = vand.u32 4294901760, %v20962_v26  ;;  %v1927_v35 = vand.u32 4294901760, %v20979_v17  ;;  %vm5851_vm13 = vcmask 318464  }
 0x3a8   : > { %v20981_v10 = vand.u32 4294901760, %v1788_v16  ;;  %v20983_v12 = vand.u32 4294901760, %v1692_v40  ;;  %v21015_v7 = vpack.c.bf16 %v1908_v41, %v1901_v34  ;;  %v21029_v34 = vsub.f32 %v21013_v6, %v21013_v6 }
 0x3a9   : > { %v21031_v41 = vsub.f32 %v17727_v50, %v17727_v50  ;;  %v22496_v50 = vpack.c.bf16 %v20836_v31, %v20834_v30 }
 0x3aa   : > { %v20988_v11 = vsub.f32 %v1788_v16, %v20981_v10  ;;  %v20991_v27 = vsub.f32 %v1692_v40, %v20983_v12  ;;  %v1921_v16 = vsub.f32 %v20962_v26, %v22428_v42  ;;  %v1928_v42 = vsub.f32 %v20979_v17, %v1927_v35 }
 0x3ab   : > { %v1976_v39 = vand.u32 4294901760, %v21031_v41 }
 0x3ac   : > { %v22430_v61 = vand.u32 4294901760, %v20988_v11  ;;  %v22436_v60 = vand.u32 4294901760, %v20991_v27  ;;  %v1929_v36 = vand.u32 4294901760, %v1928_v42 }
 0x3ae   : > { %v1883_v29 = vsub.f32 %v20988_v11, %v22430_v61  ;;  %v1889_v40 = vsub.f32 %v20991_v27, %v22436_v60  ;;  %v1935_v61 = vsub.f32 %v20967_v4, %v22491_v8  ;;  %v1922_v60 = vand.u32 4294901760, %v1921_v16 }
 0x3b0   : > { %v1884_v2 = vand.u32 4294901760, %v1883_v29  ;;  %v1890_v37 = vand.u32 4294901760, %v1889_v40  ;;  %v21035_v8 = vpack.c.bf16 %v1922_v60, %v1915_v24  ;;  %v1936_v16 = vand.u32 4294901760, %v1935_v61 }
 0x3b1   : > { %v22493_v29 = vmov 0.0|0.0   ;;  %v1977_v60 = vsub.f32 %v21031_v41, %v1976_v39  ;;  %v21068_v40 = vpack.c.bf16 %v20934_v33, %v20932_v9 }
 0x3b2   : > { %1885 = vmatprep.mubr.f32.mxu1 %v1884_v2  ;;  %v21040_v51 = vpack.c.bf16 %v1936_v16, %v1929_v36  ;;  %v1969_v2 = vand.u32 4294901760, %v21029_v34  ;;  %v22497_v36 = vpack.c.bf16 %v20855_v63, %v20853_v3  ;;  %v22498_v16 = vpack.c.bf16 %v20884_v56, %v20874_v48 }
 0x3b3   : > { %1891 = vmatmul.mubr.f32.vlgmr.msra.gmra.mrb[0].mxu1 %v1890_v37  ;;  %v1978_v37 = vand.u32 4294901760, %v1977_v60  ;;  %v22500_v60 = vand.u32 4294901760, %v20988_v11 }
 0x3b4   : > { %19572 = vmatpush1.bf16.msra.mxu1 %v21015_v7  ;;  %2071 = vmatprep.mubr.f32.mxu1 %v20981_v10  ;;  %v1970_v24 = vsub.f32 %v21029_v34, %v1969_v2 }
 0x3b5   : > { %19573 = vmatprep.subr.bf16.mxu1 %v22493_v29 }
 0x3b6   : > { %v1971_v61 = vand.u32 4294901760, %v1970_v24  ;;  %v22499_v24 = vmov 1.0|1.0  }
 0x3b8   : > { %19575 = vmatpush1.bf16.msra.mxu1 %v21035_v8  ;;  %v19586_v42 = vpack.c.bf16 %v1978_v37, %v1971_v61  ;;  %v22502_v61 = vand.u32 4294901760, %v20934_v33 }
 0x3b9   : > { %19576 = vmatprep.subr.bf16.mxu1 %v22493_v29 }
 0x3bc   : > { %19578 = vmatpush1.bf16.msra.mxu1 %v21040_v51 }
 0x3bd   : > { %19579 = vmatprep.subr.bf16.mxu1 %v22493_v29 }
 0x3c0   : > { %19581 = vmatpush1.bf16.msra.mxu1 %v20808_v54 }
 0x3c1   : > { %19582 = vmatprep.subr.bf16.mxu1 %v22493_v29 }
 0x3c4   : > { %19584 = vmatpush1.bf16.msra.mxu1 %v20830_v22 }
 0x3c5   : > { %19585 = vmatprep.subr.bf16.mxu1 %v22493_v29 }
 0x3c8   : > { %19587 = vmatpush1.bf16.msra.mxu1 %v19586_v42  ;;  %v22503_v42 = vand.u32 4294901760, %v20991_v27 }
 0x3c9   : > { %19588 = vmatprep.subr.bf16.mxu1 %v22493_v29 }
 0x3cc   : > { %19590 = vmatpush1.bf16.msra.mxu1 %v20858_v0  ;;  %v19619_v0 = vpack.c.bf16 %v21031_v41, %v21029_v34  ;;  %v22516_v34 = vand.u32 4294901760, %v20834_v30  ;;  %v22517_v41 = vand.u32 4294901760, %v20836_v31 }
 0x3cd   : > { %19591 = vmatprep.subr.bf16.mxu1 %v22493_v29 }
 0x3d0   : > { %19593 = vmatpush1.bf16.msra.mxu1 %v20876_v28  ;;  %v21082_v28 = vpack.c.bf16 %v20967_v4, %v20979_v17  ;;  %v22509_v17 = vand.u32 4294901760, %v20774_v23  ;;  %v22513_v23 = vand.u32 4294901760, %v20806_v53 }
 0x3d1   : > { %19594 = vmatprep.subr.bf16.mxu1 %v22493_v29 }
 0x3d4   : > { %19596 = vmatpush1.bf16.msra.mxu1 %v20887_v44  ;;  %v21076_v44 = vpack.c.bf16 %v20962_v26, %v20960_v38 }
 0x3d5   : > { %19597 = vmatprep.subr.bf16.mxu1 %v22493_v29 }
 0x3d8   : > { %19599 = vmatpush1.bf16.msra.mxu1 %v20896_v47  ;;  %v22495_v47 = vpack.c.bf16 %v20819_v57, %v20817_v15 }
 0x3d9   : > { %19600 = vmatprep.subr.bf16.mxu1 %v22493_v29 }
 0x3dc   : > { %19602 = vmatpush1.bf16.msra.mxu1 %v20904_v32  ;;  %v22494_v32 = vpack.c.bf16 %v20806_v53, %v20796_v45  ;;  %v22519_v53 = vand.u32 4294901760, %v20855_v63 }
 0x3dd   : > { %19603 = vmatprep.subr.bf16.mxu1 %v22493_v29 }
 0x3df   : > { %2073 = vmatmul.mubr.f32.vlgmr.msra.gmra.mrb[0].mxu1 %v20983_v12 }
 0x3e0   : > { %19605 = vmatpush1.bf16.msra.mxu1 %v21068_v40  ;;  %2188 = vmatprep.mubr.f32.mxu1 %v20988_v11  ;;  %v22501_v11 = vand.u32 4294901760, %v20932_v9  ;;  %v22506_v9 = vand.u32 4294901760, %v20967_v4 }
 0x3e1   : > { %19606 = vmatprep.subr.bf16.mxu1 %v22493_v29 }
 0x3e2   : > { %v21164_v37 = vpack.c.bf16 %v22502_v61, %v22501_v11  ;;  %v21183_v33 = vpack.c.bf16 %v22506_v9, %v1927_v35 }
 0x3e4   : > { %19608 = vmatpush1.bf16.msra.mxu1 %v21076_v44 }
 0x3e5   : > { %19609 = vmatprep.subr.bf16.mxu1 %v22493_v29 }
 0x3e8   : > { %19611 = vmatpush1.bf16.msra.mxu1 %v21082_v28 }
 0x3e9   : > { %19612 = vmatprep.subr.bf16.mxu1 %v22493_v29 }
 0x3ec   : > { %19614 = vmatpush1.bf16.msra.mxu1 %v20908_v13 }
 0x3ed   : > { %19615 = vmatprep.subr.bf16.mxu1 %v22493_v29 }
 0x3f0   : > { %19617 = vmatpush1.bf16.msra.mxu1 %v20912_v21 }
 0x3f1   : > { %19618 = vmatprep.subr.bf16.mxu1 %v22493_v29 }
 0x3f4   : > { %19620 = vmatpush1.bf16.msra.mxu1 %v19619_v0  ;;  %v22504_v0 = vand.u32 4294901760, %v20960_v38  ;;  %v22507_v38 = vand.u32 4294901760, %v20761_v19  ;;  %v19686_v19 = vpack.c.bf16 %v1976_v39, %v1969_v2  ;;  %v19695_v39 = vpack.c.bf16 %v22517_v41, %v22516_v34 }
 0x3f5   : > { %19621 = vmatprep.subr.bf16.mxu1 %v22493_v29 }
 0x3f8   : > { %19623 = vmatpush1.bf16.msra.mxu1 %v22494_v32  ;;  %v22505_v32 = vand.u32 4294901760, %v20962_v26  ;;  %v22508_v26 = vand.u32 4294901760, %v20763_v20  ;;  %v22512_v20 = vand.u32 4294901760, %v20796_v45  ;;  %v22518_v45 = vand.u32 4294901760, %v20853_v3 }
 0x3f9   : > { %19624 = vmatprep.subr.bf16.mxu1 %v22493_v29 }
 0x3fa   : > { %v19698_v2 = vpack.c.bf16 %v22519_v53, %v22518_v45 }
 0x3fc   : > { %19626 = vmatpush1.bf16.msra.mxu1 %v22495_v47  ;;  %v21175_v47 = vpack.c.bf16 %v22505_v32, %v22504_v0 }
 0x3fd   : > { %19627 = vmatprep.subr.bf16.mxu1 %v22493_v29 }
 0x400   : > { %19629 = vmatpush1.bf16.msra.mxu1 %v22496_v50  ;;  %v22510_v50 = vld [vmem:[#allocation11_spill] sm:$0xff] }
 0x401   : > { %19630 = vmatprep.subr.bf16.mxu1 %v22493_v29  ;;  %v22511_v4 = vand.u32 4294901760, %v22510_v50 }
 0x403   : > { %v21199_v35 = vpack.c.bf16 %v22511_v4, %v22509_v17 }
 0x404   : > { %19632 = vmatpush1.bf16.msra.mxu1 %v22497_v36  ;;  %v19689_v36 = vpack.c.bf16 %v22513_v23, %v22512_v20 }
 0x405   : > { %19633 = vmatprep.subr.bf16.mxu1 %v22493_v29 }
 0x408   : > { %19635 = vmatpush1.bf16.msra.mxu1 %v22498_v16  ;;  %v22514_v16 = vand.u32 4294901760, %v20817_v15  ;;  %v22520_v15 = vand.u32 4294901760, %v20874_v48 }
 0x409   : > { %19636 = vmatprep.subr.bf16.mxu1 %v22493_v29 }
 0x40b   : > { %2191 = vmatmul.mubr.f32.vlgmr.msra.gmra.mrb[0].mxu1 %v20991_v27  ;;  %v21191_v27 = vpack.c.bf16 %v22508_v26, %v22507_v38 }
 0x40c   : > { %19638 = vmatpush1.bf16.msk.msra.mxu1 %vm20509_vm7, %v22499_v24  ;;  %2285 = vmatprep.mubr.f32.mxu1 %v22500_v60  ;;  %v22515_v60 = vand.u32 4294901760, %v20819_v57  ;;  %v22521_v57 = vand.u32 4294901760, %v20884_v56 }
 0x40d   : > { %19639 = vmatprep.subr.bf16.mxu1 %v22493_v29 }
 0x40e   : > { %v19692_v11 = vpack.c.bf16 %v22515_v60, %v22514_v16  ;;  %v19701_v61 = vpack.c.bf16 %v22521_v57, %v22520_v15 }
 0x410   : > { %19641 = vmatpush1.bf16.msk.msra.mxu1 %vm20523_vm8, %v22499_v24 }
 0x411   : > { %19642 = vmatprep.subr.bf16.mxu1 %v22493_v29 }
 0x414   : > { %19644 = vmatpush1.bf16.msk.msra.mxu1 %vm20547_vm11, %v22499_v24 }
 0x415   : > { %19645 = vmatprep.subr.bf16.mxu1 %v22493_v29 }
 0x418   : > { %19647 = vmatpush1.bf16.msk.msra.mxu1 %vm20571_vm14, %v22499_v24 }
 0x419   : > { %19648 = vmatprep.subr.bf16.mxu1 %v22493_v29 }
 0x41c   : > { %19650 = vmatpush1.bf16.msk.msra.mxu1 %vm20595_vm2, %v22499_v24 }
 0x41d   : > { %19651 = vmatprep.subr.bf16.mxu1 %v22493_v29 }
 0x420   : > { %19653 = vmatpush1.bf16.msk.msra.mxu1 %vm20619_vm10, %v22499_v24 }
 0x421   : > { %19654 = vmatprep.subr.bf16.mxu1 %v22493_v29 }
 0x424   : > { %19656 = vmatpush1.bf16.msk.msra.mxu1 %vm20643_vm9, %v22499_v24 }
 0x425   : > { %19657 = vmatprep.subr.bf16.mxu1 %v22493_v29 }
 0x428   : > { %19659 = vmatpush1.bf16.msk.msra.mxu1 %vm20661_vm3, %v22499_v24 }
 0x429   : > { %19660 = vmatprep.subr.bf16.mxu1 %v22493_v29 }
 0x42c   : > { %19662 = vmatpush1.bf16.msk.msra.mxu1 %vm20685_vm0, %v22499_v24 }
 0x42d   : > { %19663 = vmatprep.subr.bf16.mxu1 %v22493_v29 }
 0x430   : > { %19665 = vmatpush1.bf16.msk.msra.mxu1 %vm20709_vm5, %v22499_v24 }
 0x431   : > { %19666 = vmatprep.subr.bf16.mxu1 %v22493_v29 }
 0x434   : > { %19669 = vmatpush1.bf16.msk.msra.mxu1 %vm20737_vm15, %v20753_v18 }
 0x435   : > { %19670 = vmatprep.subr.bf16.mxu1 %v22493_v29 }
 0x437   : > { %2289 = vmatmul.mubr.f32.vlgmr.msra.gmra.mrb[0].mxu1 %v22503_v42 }
 0x438   : > { %19672 = vmatpush1.bf16.msra.mxu1 %v21164_v37  ;;  %2425 = vmatprep.mubr.f32.mxu1 %v20981_v10 }
 0x439   : > { %19673 = vmatprep.subr.bf16.mxu1 %v22493_v29 }
 0x43c   : > { %19675 = vmatpush1.bf16.msra.mxu1 %v21175_v47 }
 0x43d   : > { %19676 = vmatprep.subr.bf16.mxu1 %v22493_v29 }
 0x440   : > { %19678 = vmatpush1.bf16.msra.mxu1 %v21183_v33 }
 0x441   : > { %19679 = vmatprep.subr.bf16.mxu1 %v22493_v29 }
 0x444   : > { %19681 = vmatpush1.bf16.msra.mxu1 %v21191_v27 }
 0x445   : > { %19682 = vmatprep.subr.bf16.mxu1 %v22493_v29 }
 0x448   : > { %19684 = vmatpush1.bf16.msra.mxu1 %v21199_v35 }
 0x449   : > { %19685 = vmatprep.subr.bf16.mxu1 %v22493_v29 }
 0x44c   : > { %19687 = vmatpush1.bf16.msra.mxu1 %v19686_v19 }
 0x44d   : > { %19688 = vmatprep.subr.bf16.mxu1 %v22493_v29 }
 0x450   : > { %19690 = vmatpush1.bf16.msra.mxu1 %v19689_v36  ;;  %v3430_v36 = vld [vmem:[#allocation5 + $0x50] sm:$0xff] }
 0x451   : > { %19691 = vmatprep.subr.bf16.mxu1 %v22493_v29 }
 0x454   : > { %19693 = vmatpush1.bf16.msra.mxu1 %v19692_v11 }
 0x455   : > { %19694 = vmatprep.subr.bf16.mxu1 %v22493_v29 }
 0x458   : > { %19696 = vmatpush1.bf16.msra.mxu1 %v19695_v39 }
 0x459   : > { %19697 = vmatprep.subr.bf16.mxu1 %v22493_v29 }
 0x45c   : > { %19699 = vmatpush1.bf16.msra.mxu1 %v19698_v2 }
 0x45d   : > { %19700 = vmatprep.subr.bf16.mxu1 %v22493_v29 }
 0x460   : > { %19702 = vmatpush1.bf16.msra.mxu1 %v19701_v61 }
 0x461   : > { %19703 = vmatprep.subr.bf16.mxu1 %v22493_v29 }
 0x463   : > { %2427 = vmatmul.mubr.f32.vlgmr.msra.gmra.mrb[0].mxu1 %v20983_v12 }
 0x464   : > { %19705 = vmatpush1.bf16.msk.msra.mxu1 %vm20509_vm7, %v22499_v24  ;;  %2519 = vmatprep.mubr.f32.mxu1 %v20981_v10 }
 0x465   : > { %19706 = vmatprep.subr.bf16.mxu1 %v22493_v29 }
 0x468   : > { %19708 = vmatpush1.bf16.msk.msra.mxu1 %vm20523_vm8, %v22499_v24 }
 0x469   : > { %19709 = vmatprep.subr.bf16.mxu1 %v22493_v29 }
 0x46c   : > { %19711 = vmatpush1.bf16.msk.msra.mxu1 %vm20547_vm11, %v22499_v24 }
 0x46d   : > { %19712 = vmatprep.subr.bf16.mxu1 %v22493_v29 }
 0x470   : > { %19714 = vmatpush1.bf16.msk.msra.mxu1 %vm20571_vm14, %v22499_v24 }
 0x471   : > { %19715 = vmatprep.subr.bf16.mxu1 %v22493_v29 }
 0x474   : > { %19717 = vmatpush1.bf16.msk.msra.mxu1 %vm20595_vm2, %v22499_v24 }
 0x475   : > { %19718 = vmatprep.subr.bf16.mxu1 %v22493_v29 }
 0x478   : > { %19720 = vmatpush1.bf16.msk.msra.mxu1 %vm20619_vm10, %v22499_v24 }
 0x479   : > { %19721 = vmatprep.subr.bf16.mxu1 %v22493_v29 }
 0x47c   : > { %19723 = vmatpush1.bf16.msk.msra.mxu1 %vm20643_vm9, %v22499_v24 }
 0x47d   : > { %19724 = vmatprep.subr.bf16.mxu1 %v22493_v29 }
 0x480   : > { %19726 = vmatpush1.bf16.msk.msra.mxu1 %vm20661_vm3, %v22499_v24  ;;  %vm8208_vm3 = vcmask 703488  }
 0x481   : > { %19727 = vmatprep.subr.bf16.mxu1 %v22493_v29 }
 0x484   : > { %19729 = vmatpush1.bf16.msk.msra.mxu1 %vm20685_vm0, %v22499_v24  ;;  %vm20263_vm0 = vmmov 0  }
 0x485   : > { %19730 = vmatprep.subr.bf16.mxu1 %v22493_v29  ;;  %18386 = vmatprep.mubr.msk.f32.mxu0 %vm20263_vm0, %v20259_v25 }
 0x488   : > { %19732 = vmatpush1.bf16.msk.msra.mxu1 %vm20709_vm5, %v22499_v24  ;;  %vm22522_vm5 = vcmask 64512  }
 0x489   : > { %19733 = vmatprep.subr.bf16.mxu1 %v22493_v29  ;;  %v2533_v1 = vsel %vm22522_vm5, %v2527_v62, 0  ;;  %vm22523_vm9 = vmmov %vm22522_vm5 }
 0x48a   : > { %v2601_v14 = vand.u32 4294901760, %v2533_v1  ;;  %vm22524_vm10 = vmmov %vm22522_vm5 }
 0x48b   : > { %v3435_v60 = vsel %vm22524_vm10, %v3430_v36, 0  ;;  %vm9576_vm10 = vcmask 56320  }
 0x48c   : > { %19736 = vmatpush1.bf16.msk.msra.mxu1 %vm20737_vm15, %v20753_v18  ;;  %v2602_v18 = vsub.f32 %v2533_v1, %v2601_v14  ;;  %v3503_v34 = vand.u32 4294901760, %v3435_v60  ;;  %vm3897_vm15 = vcmask 678912  }
 0x48d   : > { %19737 = vmatprep.subr.bf16.mxu1 %v22493_v29 }
 0x48e   : > { %v2603_v30 = vand.u32 4294901760, %v2602_v18  ;;  %v3504_v39 = vsub.f32 %v3435_v60, %v3503_v34 }
 0x48f   : > { %2521 = vmatmul.mubr.f32.vlgmr.msra.gmra.mrb[0].mxu1 %v20983_v12  ;;  %v2526_v12 = vld [vmem:[#allocation5 + $0x40] sm:$0xff] }
 0x490   : > { %19739 = vmatpush3.bf16.msk.msra.mxu1 %vm20509_vm7, %v22499_v24  ;;  %18496 = vmatprep.mubr.msk.f32.mxu1 %vm20263_vm0, %v20259_v25  ;;  %v2604_v31 = vsub.f32 %v2602_v18, %v2603_v30  ;;  %v2982_v32 = vsel %vm22523_vm9, %v2526_v12, 0  ;;  %v3505_v53 = vand.u32 4294901760, %v3504_v39 }
 0x491   : > { %19740 = vmatprep.subr.bf16.mxu1 %v22493_v29  ;;  %v3050_v9 = vand.u32 4294901760, %v2982_v32 }
 0x492   : > { %v2605_v63 = vand.u32 4294901760, %v2604_v31  ;;  %v3506_v15 = vsub.f32 %v3504_v39, %v3505_v53 }
 0x493   : > { %v3051_v26 = vsub.f32 %v2982_v32, %v3050_v9 }
 0x494   : > { %19742 = vmatpush3.bf16.msk.msra.mxu1 %vm20523_vm8, %v22499_v24  ;;  %v3507_v61 = vand.u32 4294901760, %v3506_v15 }
 0x495   : > { %19743 = vmatprep.subr.bf16.mxu1 %v22493_v29  ;;  %v3052_v50 = vand.u32 4294901760, %v3051_v26 }
 0x497   : > { %v3053_v19 = vsub.f32 %v3051_v26, %v3052_v50 }
 0x498   : > { %19745 = vmatpush3.bf16.msk.msra.mxu1 %vm20547_vm11, %v22499_v24 }
 0x499   : > { %19746 = vmatprep.subr.bf16.mxu1 %v22493_v29  ;;  %v3054_v23 = vand.u32 4294901760, %v3053_v19 }
 0x49c   : > { %19748 = vmatpush3.bf16.msk.msra.mxu1 %vm20571_vm14, %v22499_v24 }
 0x49d   : > { %19749 = vmatprep.subr.bf16.mxu1 %v22493_v29 }
 0x4a0   : > { %19751 = vmatpush3.bf16.msk.msra.mxu1 %vm20595_vm2, %v22499_v24 }
 0x4a1   : > { %18494 = vmatprep.subr.mxu1 %v20259_v25 }
 0x4a4   : > { %18495 = vmatpush3.msk.msra.mxu1 %vm1790_vm1, %v21013_v6 }
 0x4a5   : > { %19752 = vmatprep.subr.bf16.mxu1 %v22493_v29 }
 0x562   : > { %v2522_v55 = vpop.f32.mrb[0].mxu1 }
 0x563   : > { %8209 = vst.msk [vmem:[%s21309_s22 + $0x10] sm:$0xff] %vm8208_vm3, %v2522_v55  ;;  %3431 = vrot.lane.b32.xlu0 %v2522_v55, %s20258_s17  ;;  %2529 = vrot.lane.b32.xlu1 %v2522_v55, %s20257_s15  ;;  %v2524_v58 = vpop.f32.mrb[1].mxu1  ;;  %v2985_v38 = vand.u32 4294901760, %v2522_v55  ;;  %vm7728_vm3 = vcmask 138240  }
 0x565   : > { %v3062_v17 = vsub.f32 %v2522_v55, %v2985_v38 }
 0x567   : > { %3887 = vperm.xlu1 %20121, %v3884_v59   ;;  %v3063_v4 = vand.u32 4294901760, %v3062_v17 }
 0x569   : > { %v3064_v20 = vsub.f32 %v3062_v17, %v3063_v4 }
 0x56b   : > { %v3065_v16 = vand.u32 4294901760, %v3064_v20 }
 0x5d5   : > { %v2530_v3 = vpop.permute.xlu1 %2529  ;;  %v3432_v11 = vpop.permute.xlu0 %3431 }
 0x5d6   : > { %v2536_v48 = vand.u32 4294901760, %v2530_v3  ;;  %v3438_v41 = vand.u32 4294901760, %v3432_v11 }
 0x5d8   : > { %v2613_v56 = vsub.f32 %v2530_v3, %v2536_v48  ;;  %18385 = vmatpush3.msra.mxu0 %v2536_v48  ;;  %v3515_v45 = vsub.f32 %v3432_v11, %v3438_v41 }
 0x5d9   : > { %18387 = vmatmul.mubr.f32.vlgmr.msra.gmra.mrb[2].mxu0 %v2605_v63  ;;  %18389 = vmatprep.subr.mxu0 %v20259_v25 }
 0x5da   : > { %v2614_v10 = vand.u32 4294901760, %v2613_v56  ;;  %18391 = vmatprep.mubr.msk.f32.mxu0 %vm20263_vm0, %v20259_v25  ;;  %v3516_v2 = vand.u32 4294901760, %v3515_v45 }
 0x5dc   : > { %v2615_v42 = vsub.f32 %v2613_v56, %v2614_v10  ;;  %v3517_v57 = vsub.f32 %v3515_v45, %v3516_v2 }
 0x5de   : > { %v2616_v0 = vand.u32 4294901760, %v2615_v42  ;;  %v3518_v55 = vand.u32 4294901760, %v3517_v57 }
 0x5e0   : > { %18390 = vmatpush3.msra.mxu0 %v2616_v0 }
 0x5e1   : > { %18392 = vmatmul.mubr.f32.vlgmr.msra.gmra.mrb[4].mxu0 %v2601_v14  ;;  %18394 = vmatprep.subr.mxu0 %v20259_v25 }
 0x5e2   : > { %18395 = vmatpush3.msra.mxu0 %v2613_v56  ;;  %18396 = vmatprep.mubr.msk.f32.mxu0 %vm20263_vm0, %v20259_v25 }
 0x5e3   : > { %18399 = vmatprep.subr.mxu0 %v20259_v25 }
 0x5e5   : > { %18397 = vmatmul.mubr.f32.vlgmr.msra.gmra.mrb[6].mxu0 %v2602_v18 }
 0x5e6   : > { %18400 = vmatpush3.msra.mxu0 %v2536_v48  ;;  %18401 = vmatprep.mubr.msk.f32.mxu0 %vm20263_vm0, %v20259_v25 }
 0x5e7   : > { %18404 = vmatprep.subr.mxu0 %v20259_v25 }
 0x5e9   : > { %18402 = vmatmul.mubr.f32.vlgmr.msra.gmra.mrb[8].mxu0 %v2603_v30 }
 0x5ea   : > { %18405 = vmatpush3.msra.mxu0 %v2614_v10  ;;  %18406 = vmatprep.mubr.msk.f32.mxu0 %vm20263_vm0, %v20259_v25 }
 0x5eb   : > { %18409 = vmatprep.subr.mxu0 %v20259_v25 }
 0x5ed   : > { %18407 = vmatmul.mubr.f32.vlgmr.msra.gmra.mrb[10].mxu0 %v2601_v14 }
 0x5ee   : > { %18410 = vmatpush3.msra.mxu0 %v2536_v48  ;;  %18411 = vmatprep.mubr.msk.f32.mxu0 %vm20263_vm0, %v20259_v25 }
 0x5ef   : > { %18414 = vmatprep.subr.mxu0 %v20259_v25 }
 0x5f1   : > { %18412 = vmatmul.mubr.f32.vlgmr.msra.gmra.mrb[12].mxu0 %v2601_v14 }
 0x5f2   : > { %18415 = vmatpush3.msra.mxu0 %v2985_v38  ;;  %18416 = vmatprep.mubr.msk.f32.mxu0 %vm20263_vm0, %v20259_v25 }
 0x5f3   : > { %18419 = vmatprep.subr.mxu0 %v20259_v25 }
 0x5f5   : > { %18417 = vmatmul.mubr.f32.vlgmr.msra.gmra.mrb[14].mxu0 %v3054_v23 }
 0x5f6   : > { %18420 = vmatpush3.msra.mxu0 %v3065_v16  ;;  %18421 = vmatprep.mubr.msk.f32.mxu0 %vm20263_vm0, %v20259_v25 }
 0x5f7   : > { %18424 = vmatprep.subr.mxu0 %v20259_v25 }
 0x5f9   : > { %18422 = vmatmul.mubr.f32.vlgmr.msra.gmra.mrb[16].mxu0 %v3050_v9 }
 0x5fa   : > { %18425 = vmatpush3.msra.mxu0 %v3062_v17  ;;  %18426 = vmatprep.mubr.msk.f32.mxu0 %vm20263_vm0, %v20259_v25 }
 0x5fb   : > { %18429 = vmatprep.subr.mxu0 %v20259_v25 }
 0x5fd   : > { %18427 = vmatmul.mubr.f32.vlgmr.msra.gmra.mrb[18].mxu0 %v3051_v26 }
 0x5fe   : > { %18430 = vmatpush3.msra.mxu0 %v2985_v38  ;;  %18431 = vmatprep.mubr.msk.f32.mxu0 %vm20263_vm0, %v20259_v25 }
 0x5ff   : > { %18434 = vmatprep.subr.mxu0 %v20259_v25 }
 0x601   : > { %18432 = vmatmul.mubr.f32.vlgmr.msra.gmra.mrb[20].mxu0 %v3052_v50 }
 0x602   : > { %18435 = vmatpush3.msra.mxu0 %v3063_v4  ;;  %18436 = vmatprep.mubr.msk.f32.mxu0 %vm20263_vm0, %v20259_v25 }
 0x603   : > { %18439 = vmatprep.subr.mxu0 %v20259_v25 }
 0x605   : > { %18437 = vmatmul.mubr.f32.vlgmr.msra.gmra.mrb[22].mxu0 %v3050_v9 }
 0x606   : > { %18440 = vmatpush3.msra.mxu0 %v2985_v38  ;;  %18441 = vmatprep.mubr.msk.f32.mxu0 %vm20263_vm0, %v20259_v25 }
 0x607   : > { %18444 = vmatprep.subr.mxu0 %v20259_v25 }
 0x609   : > { %18442 = vmatmul.mubr.f32.vlgmr.msra.gmra.mrb[24].mxu0 %v3050_v9 }
 0x60a   : > { %18445 = vmatpush3.msra.mxu0 %v3438_v41  ;;  %18446 = vmatprep.mubr.msk.f32.mxu0 %vm20263_vm0, %v20259_v25 }
 0x60b   : > { %18449 = vmatprep.subr.mxu0 %v20259_v25 }
 0x60d   : > { %18447 = vmatmul.mubr.f32.vlgmr.msra.gmra.mrb[26].mxu0 %v3507_v61 }
 0x60e   : > { %18450 = vmatpush3.msra.mxu0 %v3518_v55  ;;  %18451 = vmatprep.mubr.msk.f32.mxu0 %vm20263_vm0, %v20259_v25 }
 0x60f   : > { %18454 = vmatprep.subr.mxu0 %v20259_v25 }
 0x611   : > { %18452 = vmatmul.mubr.f32.vlgmr.msra.gmra.mrb[28].mxu0 %v3503_v34 }
 0x612   : > { %18455 = vmatpush3.msra.mxu0 %v3515_v45  ;;  %18456 = vmatprep.mubr.msk.f32.mxu0 %vm20263_vm0, %v20259_v25 }
 0x613   : > { %18459 = vmatprep.subr.mxu0 %v20259_v25 }
 0x615   : > { %18457 = vmatmul.mubr.f32.vlgmr.msra.gmra.mrb[30].mxu0 %v3504_v39 }
 0x616   : > { %18460 = vmatpush3.msra.mxu0 %v3438_v41  ;;  %18461 = vmatprep.mubr.msk.f32.mxu0 %vm20263_vm0, %v20259_v25 }
 0x617   : > { %18464 = vmatprep.subr.mxu0 %v20259_v25 }
 0x619   : > { %18462 = vmatmul.mubr.f32.vlgmr.msra.gmra.mrb[32].mxu0 %v3505_v53 }
 0x61a   : > { %18465 = vmatpush3.msra.mxu0 %v3516_v2  ;;  %18466 = vmatprep.mubr.msk.f32.mxu0 %vm20263_vm0, %v20259_v25 }
 0x61b   : > { %18469 = vmatprep.subr.mxu0 %v20259_v25 }
 0x61d   : > { %18467 = vmatmul.mubr.f32.vlgmr.msra.gmra.mrb[34].mxu0 %v3503_v34 }
 0x61e   : > { %18470 = vmatpush3.msra.mxu0 %v3438_v41  ;;  %18471 = vmatprep.mubr.msk.f32.mxu0 %vm20263_vm0, %v20259_v25 }
 0x61f   : > { %19782 = vmatprep.subr.bf16.mxu0 %v22493_v29 }
 0x621   : > { %18472 = vmatmul.mubr.f32.vlgmr.msra.gmra.mrb[36].mxu0 %v3503_v34 }
 0x622   : > { %19784 = vmatpush3.bf16.msk.msra.mxu0 %vm20509_vm7, %v22499_v24  ;;  %18571 = vmatprep.mubr.msk.f32.mxu0 %vm20263_vm0, %v20259_v25 }
 0x623   : > { %19785 = vmatprep.subr.bf16.mxu0 %v22493_v29 }
 0x626   : > { %19787 = vmatpush3.bf16.msk.msra.mxu0 %vm20523_vm8, %v22499_v24 }
 0x627   : > { %19788 = vmatprep.subr.bf16.mxu0 %v22493_v29 }
 0x62a   : > { %19790 = vmatpush3.bf16.msk.msra.mxu0 %vm20547_vm11, %v22499_v24 }
 0x62b   : > { %19791 = vmatprep.subr.bf16.mxu0 %v22493_v29 }
 0x62e   : > { %19793 = vmatpush3.bf16.msk.msra.mxu0 %vm20571_vm14, %v22499_v24 }
 0x62f   : > { %19794 = vmatprep.subr.bf16.mxu0 %v22493_v29 }
 0x632   : > { %19796 = vmatpush3.bf16.msk.msra.mxu0 %vm20595_vm2, %v22499_v24 }
 0x633   : > { %18569 = vmatprep.subr.mxu0 %v20259_v25 }
 0x636   : > { %18570 = vmatpush3.msk.msra.mxu0 %vm1790_vm1, %v21013_v6 }
 0x637   : > { %19797 = vmatprep.subr.bf16.mxu0 %v22493_v29 }
 0x6ac   : > { %v2607_v58 = vpop.f32.mrb[2].mxu0 }
 0x6ad   : > { %v18388_v59 = vpop.f32.mrb[3].mxu0 }
 0x6b4   : > { %v2683_v62 = vpop.f32.mrb[4].mxu0 }
 0x6b5   : > { %v2684_v1 = vadd.f32 %v2683_v62, %v2607_v58  ;;  %v18393_v14 = vpop.f32.mrb[5].mxu0 }
 0x6b8   : > { %v2757_v18 = vpop.f32.mrb[6].mxu0 }
 0x6b9   : > { %v2758_v30 = vadd.f32 %v2757_v18, %v2684_v1  ;;  %v18398_v31 = vpop.f32.mrb[7].mxu0 }
 0x6bc   : > { %v2831_v3 = vpop.f32.mrb[8].mxu0 }
 0x6bd   : > { %v2832_v63 = vadd.f32 %v2831_v3, %v2758_v30  ;;  %v18403_v48 = vpop.f32.mrb[9].mxu0 }
 0x6c0   : > { %v2905_v56 = vpop.f32.mrb[10].mxu0 }
 0x6c1   : > { %v2906_v10 = vadd.f32 %v2905_v56, %v2832_v63  ;;  %v18408_v12 = vpop.f32.mrb[11].mxu0 }
 0x6c2   : > { %v3888_v12 = vpop.permute.xlu1 %3887 }
 0x6c4   : > { %v2977_v42 = vpop.f32.mrb[12].mxu0 }
 0x6c5   : > { %v2978_v0 = vadd.f32 %v2977_v42, %v2906_v10  ;;  %v18413_v32 = vpop.f32.mrb[13].mxu0 }
 0x6c8   : > { %v3056_v9 = vpop.f32.mrb[14].mxu0 }
 0x6c9   : > { %v3057_v38 = vadd.f32 %v3056_v9, %v2978_v0  ;;  %v18418_v26 = vpop.f32.mrb[15].mxu0 }
 0x6cc   : > { %v3132_v17 = vpop.f32.mrb[16].mxu0 }
 0x6cd   : > { %v3133_v50 = vadd.f32 %v3132_v17, %v3057_v38  ;;  %v18423_v4 = vpop.f32.mrb[17].mxu0 }
 0x6d0   : > { %v3206_v19 = vpop.f32.mrb[18].mxu0 }
 0x6d1   : > { %v3207_v20 = vadd.f32 %v3206_v19, %v3133_v50  ;;  %v18428_v23 = vpop.f32.mrb[19].mxu0 }
 0x6d4   : > { %v3280_v36 = vpop.f32.mrb[20].mxu0 }
 0x6d5   : > { %v3281_v16 = vadd.f32 %v3280_v36, %v3207_v20  ;;  %v18433_v60 = vpop.f32.mrb[21].mxu0  ;;  %v3902_v20 = vsel %vm1790_vm1, %v21013_v6, 0 }
 0x6d6   : > { %v4062_v23 = vsub.f32 %v3902_v20, %v3902_v20 }
 0x6d8   : > { %v3354_v11 = vpop.f32.mrb[22].mxu0  ;;  %v4063_v36 = vand.u32 4294901760, %v4062_v23 }
 0x6d9   : > { %v3355_v34 = vadd.f32 %v3354_v11, %v3281_v16  ;;  %v18438_v41 = vpop.f32.mrb[23].mxu0  ;;  %v4480_v11 = vld [vmem:[#allocation5 + $0x60] sm:$0xff] }
 0x6da   : > { %v4064_v16 = vsub.f32 %v4062_v23, %v4063_v36 }
 0x6dc   : > { %v3426_v39 = vpop.f32.mrb[24].mxu0 }
 0x6dd   : > { %v3427_v45 = vadd.f32 %v3426_v39, %v3355_v34  ;;  %v18443_v53 = vpop.f32.mrb[25].mxu0 }
 0x6e0   : > { %v3509_v2 = vpop.f32.mrb[26].mxu0 }
 0x6e1   : > { %v18448_v15 = vpop.f32.mrb[27].mxu0 }
 0x6e4   : > { %v3585_v57 = vpop.f32.mrb[28].mxu0 }
 0x6e5   : > { %v3586_v61 = vadd.f32 %v3585_v57, %v3509_v2  ;;  %v18453_v55 = vpop.f32.mrb[29].mxu0 }
 0x6e8   : > { %v3659_v58 = vpop.f32.mrb[30].mxu0 }
 0x6e9   : > { %v3660_v59 = vadd.f32 %v3659_v58, %v3586_v61  ;;  %v18458_v62 = vpop.f32.mrb[31].mxu0 }
 0x6ec   : > { %v3733_v1 = vpop.f32.mrb[32].mxu0 }
 0x6ed   : > { %v3734_v14 = vadd.f32 %v3733_v1, %v3660_v59  ;;  %v18463_v18 = vpop.f32.mrb[33].mxu0 }
 0x6ee   : > { %v5384_v18 = vld [vmem:[#allocation5 + $0x70] sm:$0xff] }
 0x6f0   : > { %v3807_v30 = vpop.f32.mrb[34].mxu0 }
 0x6f1   : > { %v3808_v31 = vadd.f32 %v3807_v30, %v3734_v14  ;;  %v18468_v3 = vpop.f32.mrb[35].mxu0 }
 0x6f4   : > { %v3879_v63 = vpop.f32.mrb[36].mxu0 }
 0x6f5   : > { %v3880_v48 = vadd.f32 %v3879_v63, %v3808_v31  ;;  %v18473_v56 = vpop.f32.mrb[37].mxu0 }
 0x6f7   : > { %v3883_v10 = vadd.f32 %v3880_v48, %v3427_v45 }
 0x6f9   : > { %v3890_v42 = vadd.f32 %v3888_v12, %v3883_v10 }
 0x6fb   : > { %v3891_v0 = vmax.f32 %v3890_v42, 0.0 }
 0x6fd   : > { %3893 = vrot.lane.b32.xlu0 %v3891_v0, %s20257_s15 }
 0x76f   : > { %v3894_v32 = vpop.permute.xlu0 %3893 }
 0x770   : > { %v3896_v9 = vmax.f32 %v3891_v0, %v3894_v32 }
 0x772   : > { %v3899_v38 = vsel %vm3897_vm15, %v3896_v9, 0 }
 0x773   : > { %v3980_v26 = vand.u32 4294901760, %v3899_v38 }
 0x775   : > { %v21395_v17 = vsub.f32 %v3899_v38, %v3980_v26 }
 0x777   : > { %v3982_v50 = vand.u32 4294901760, %v21395_v17 }
 0x779   : > { %18572 = vmatmul.mubr.f32.vlgmr.msra.gmra.mrb[38].mxu0 %v3982_v50  ;;  %v3983_v4 = vsub.f32 %v21395_v17, %v3982_v50 }
 0x77a   : > { %19799 = vmatpush3.bf16.msra.mxu0 %v21164_v37  ;;  %18596 = vmatprep.mubr.msk.f32.mxu0 %vm20263_vm0, %v20259_v25 }
 0x77b   : > { %19800 = vmatprep.subr.bf16.mxu0 %v22493_v29  ;;  %v3984_v19 = vand.u32 4294901760, %v3983_v4 }
 0x77d   : > { %18497 = vmatmul.mubr.f32.vlgmr.msra.gmra.mrb[2].mxu1 %v3984_v19 }
 0x77e   : > { %19754 = vmatpush3.bf16.msra.mxu1 %v21015_v7  ;;  %19802 = vmatpush3.bf16.msra.mxu0 %v21175_v47 }
 0x77f   : > { %19755 = vmatprep.subr.bf16.mxu1 %v22493_v29  ;;  %19803 = vmatprep.subr.bf16.mxu0 %v22493_v29 }
 0x780   : > { %18521 = vmatprep.mubr.msk.f32.mxu1 %vm20263_vm0, %v20259_v25 }
 0x782   : > { %19757 = vmatpush3.bf16.msra.mxu1 %v21035_v8  ;;  %19805 = vmatpush3.bf16.msra.mxu0 %v21183_v33 }
 0x783   : > { %19758 = vmatprep.subr.bf16.mxu1 %v22493_v29  ;;  %19806 = vmatprep.subr.bf16.mxu0 %v22493_v29 }
 0x786   : > { %19760 = vmatpush3.bf16.msra.mxu1 %v21040_v51  ;;  %19808 = vmatpush3.bf16.msra.mxu0 %v21191_v27  ;;  %v4065_v51 = vand.u32 4294901760, %v4064_v16 }
 0x787   : > { %19761 = vmatprep.subr.bf16.mxu1 %v22493_v29  ;;  %19809 = vmatprep.subr.bf16.mxu0 %v22493_v29 }
 0x78a   : > { %19763 = vmatpush3.bf16.msra.mxu1 %v20808_v54  ;;  %19811 = vmatpush3.bf16.msra.mxu0 %v21199_v35 }
 0x78b   : > { %19764 = vmatprep.subr.bf16.mxu1 %v22493_v29  ;;  %18594 = vmatprep.subr.mxu0 %v20259_v25 }
 0x78e   : > { %19766 = vmatpush3.bf16.msra.mxu1 %v20830_v22  ;;  %18595 = vmatpush3.msra.mxu0 %v4063_v36 }
 0x78f   : > { %18597 = vmatmul.mubr.f32.vlgmr.msra.gmra.mrb[38].mxu0 %v3980_v26  ;;  %19812 = vmatprep.subr.bf16.mxu0 %v22493_v29 }
 0x790   : > { %19814 = vmatpush3.bf16.msk.msra.mxu0 %vm20509_vm7, %v22499_v24  ;;  %18519 = vmatprep.subr.mxu1 %v20259_v25 }
 0x791   : > { %19815 = vmatprep.subr.bf16.mxu0 %v22493_v29  ;;  %18621 = vmatprep.mubr.msk.f32.mxu0 %vm20263_vm0, %v20259_v25 }
 0x792   : > { %18520 = vmatpush3.msra.mxu1 %v4065_v51 }
 0x793   : > { %18522 = vmatmul.mubr.f32.vlgmr.msra.gmra.mrb[2].mxu1 %v3980_v26  ;;  %19767 = vmatprep.subr.bf16.mxu1 %v22493_v29 }
 0x794   : > { %19769 = vmatpush3.bf16.msra.mxu1 %v21068_v40  ;;  %19817 = vmatpush3.bf16.msk.msra.mxu0 %vm20523_vm8, %v22499_v24 }
 0x795   : > { %19770 = vmatprep.subr.bf16.mxu1 %v22493_v29  ;;  %19818 = vmatprep.subr.bf16.mxu0 %v22493_v29 }
 0x796   : > { %18546 = vmatprep.mubr.msk.f32.mxu1 %vm20263_vm0, %v20259_v25 }
 0x798   : > { %19772 = vmatpush3.bf16.msra.mxu1 %v21076_v44  ;;  %19820 = vmatpush3.bf16.msk.msra.mxu0 %vm20547_vm11, %v22499_v24 }
 0x799   : > { %19773 = vmatprep.subr.bf16.mxu1 %v22493_v29  ;;  %19821 = vmatprep.subr.bf16.mxu0 %v22493_v29 }
 0x79c   : > { %19775 = vmatpush3.bf16.msra.mxu1 %v21082_v28  ;;  %19823 = vmatpush3.bf16.msk.msra.mxu0 %vm20571_vm14, %v22499_v24 }
 0x79d   : > { %19776 = vmatprep.subr.bf16.mxu1 %v22493_v29  ;;  %19824 = vmatprep.subr.bf16.mxu0 %v22493_v29 }
 0x7a0   : > { %19778 = vmatpush3.bf16.msra.mxu1 %v20908_v13  ;;  %19826 = vmatpush3.bf16.msk.msra.mxu0 %vm20595_vm2, %v22499_v24  ;;  %v5838_v13 = vld [vmem:[#allocation5 + $0x78] sm:$0xff]  ;;  %vm22525_vm2 = vmmov %vm22522_vm5 }
 0x7a1   : > { %19779 = vmatprep.subr.bf16.mxu1 %v22493_v29  ;;  %18619 = vmatprep.subr.mxu0 %v20259_v25  ;;  %vm22526_vm11 = vmmov %vm22525_vm2 }
 0x7a2   : > { %v4936_v53 = vsel %vm22526_vm11, %v4480_v11, 0  ;;  %vm22527_vm14 = vmmov %vm22525_vm2 }
 0x7a3   : > { %v21484_v57 = vand.u32 4294901760, %v4936_v53  ;;  %v5389_v63 = vsel %vm22527_vm14, %v5384_v18, 0  ;;  %vm22530_vm6 = vmmov %vm22525_vm2  ;;  %vm10949_vm14 = vcmask 1044480  }
 0x7a4   : > { %19781 = vmatpush3.bf16.msra.mxu1 %v20912_v21  ;;  %18620 = vmatpush3.msk.msra.mxu0 %vm1790_vm1, %v21013_v6  ;;  %v4481_v21 = vld [vmem:[#allocation5 + $0x68] sm:$0xff]  ;;  %v5457_v10 = vand.u32 4294901760, %v5389_v63  ;;  %vm5855_vm1 = vcmask 1046528   ;;  %vm22531_vm4 = vmmov %vm22525_vm2 }
 0x7a5   : > { %18622 = vmatmul.mubr.f32.vlgmr.msra.gmra.mrb[38].mxu0 %v3980_v26  ;;  %18544 = vmatprep.subr.mxu1 %v20259_v25  ;;  %v4487_v6 = vsel %vm22525_vm2, %v4481_v21, 0  ;;  %v5005_v1 = vsub.f32 %v4936_v53, %v21484_v57  ;;  %vm22533_vm5 = vmmov %vm22525_vm2 }
 0x7a6   : > { %18624 = vmatprep.subr.mxu0 %v20259_v25  ;;  %18626 = vmatprep.mubr.msk.f32.mxu0 %vm20263_vm0, %v20259_v25  ;;  %v4555_v28 = vand.u32 4294901760, %v4487_v6  ;;  %v5458_v0 = vsub.f32 %v5389_v63, %v5457_v10  ;;  %vm22535_vm9 = vmmov %vm22525_vm2 }
 0x7a7   : > { %v5006_v3 = vand.u32 4294901760, %v5005_v1  ;;  %vm22536_vm15 = vmmov %vm22525_vm2 }
 0x7a8   : > { %18545 = vmatpush3.msra.mxu1 %v4062_v23  ;;  %v4556_v33 = vsub.f32 %v4487_v6, %v4555_v28  ;;  %v5459_v9 = vand.u32 4294901760, %v5458_v0  ;;  %vm22537_vm11 = vmmov %vm22525_vm2 }
 0x7a9   : > { %18547 = vmatmul.mubr.f32.vlgmr.msra.gmra.mrb[2].mxu1 %v21395_v17  ;;  %18629 = vmatprep.subr.mxu1 %v20259_v25  ;;  %v5007_v56 = vsub.f32 %v5005_v1, %v5006_v3 }
 0x7aa   : > { %18631 = vmatprep.mubr.msk.f32.mxu1 %vm20263_vm0, %v20259_v25  ;;  %v4557_v27 = vand.u32 4294901760, %v4556_v33  ;;  %v5460_v38 = vsub.f32 %v5458_v0, %v5459_v9 }
 0x7ab   : > { %v5008_v42 = vand.u32 4294901760, %v5007_v56 }
 0x7ac   : > { %v4558_v35 = vsub.f32 %v4556_v33, %v4557_v27  ;;  %v5461_v26 = vand.u32 4294901760, %v5460_v38 }
 0x7ae   : > { %v4559_v41 = vand.u32 4294901760, %v4558_v35 }
 0x878   : > { %v4476_v46 = vpop.f32.mrb[38].mxu0 }
 0x879   : > { %v18623_v49 = vpop.f32.mrb[39].mxu0 }
 0x87c   : > { %v4206_v52 = vpop.f32.mrb[2].mxu1 }
 0x87d   : > { %v21470_v54 = vadd.f32 %v4476_v46, %v4206_v52  ;;  %v18548_v22 = vpop.f32.mrb[3].mxu1 }
 0x87f   : > { %5385 = vrot.lane.b32.xlu0 %v21470_v54, %s20258_s17  ;;  %4483 = vrot.lane.b32.xlu1 %v21470_v54, %s20257_s15  ;;  %v4939_v60 = vand.u32 4294901760, %v21470_v54 }
 0x881   : > { %v21479_v39 = vsub.f32 %v21470_v54, %v4939_v60 }
 0x883   : > { %5841 = vperm.xlu1 %20121, %v5838_v13   ;;  %v5017_v15 = vand.u32 4294901760, %v21479_v39 }
 0x885   : > { %v5018_v62 = vsub.f32 %v21479_v39, %v5017_v15 }
 0x887   : > { %v5019_v31 = vand.u32 4294901760, %v5018_v62 }
 0x8f1   : > { %v4484_v34 = vpop.permute.xlu1 %4483  ;;  %v5386_v61 = vpop.permute.xlu0 %5385 }
 0x8f2   : > { %v4490_v45 = vand.u32 4294901760, %v4484_v34  ;;  %v21489_v59 = vand.u32 4294901760, %v5386_v61 }
 0x8f4   : > { %v4567_v2 = vsub.f32 %v4484_v34, %v4490_v45  ;;  %18625 = vmatpush3.msra.mxu0 %v4490_v45  ;;  %v21499_v30 = vsub.f32 %v5386_v61, %v21489_v59 }
 0x8f5   : > { %18627 = vmatmul.mubr.f32.vlgmr.msra.gmra.mrb[40].mxu0 %v4559_v41  ;;  %18639 = vmatprep.subr.mxu0 %v20259_v25 }
 0x8f6   : > { %v4568_v55 = vand.u32 4294901760, %v4567_v2  ;;  %18640 = vmatpush3.msra.mxu0 %v4490_v45  ;;  %18641 = vmatprep.mubr.msk.f32.mxu0 %vm20263_vm0, %v20259_v25  ;;  %v5470_v48 = vand.u32 4294901760, %v21499_v30 }
 0x8f7   : > { %18649 = vmatprep.subr.mxu0 %v20259_v25 }
 0x8f8   : > { %v4569_v58 = vsub.f32 %v4567_v2, %v4568_v55  ;;  %v5471_v12 = vsub.f32 %v21499_v30, %v5470_v48 }
 0x8f9   : > { %18642 = vmatmul.mubr.f32.vlgmr.msra.gmra.mrb[42].mxu0 %v4557_v27 }
 0x8fa   : > { %v4570_v14 = vand.u32 4294901760, %v4569_v58  ;;  %18650 = vmatpush3.msra.mxu0 %v4490_v45  ;;  %18651 = vmatprep.mubr.msk.f32.mxu0 %vm20263_vm0, %v20259_v25  ;;  %v5472_v32 = vand.u32 4294901760, %v5471_v12 }
 0x8fb   : > { %18659 = vmatprep.subr.mxu0 %v20259_v25 }
 0x8fc   : > { %18630 = vmatpush3.msra.mxu1 %v4570_v14 }
 0x8fd   : > { %18632 = vmatmul.mubr.f32.vlgmr.msra.gmra.mrb[4].mxu1 %v4555_v28  ;;  %18634 = vmatprep.subr.mxu1 %v20259_v25 }
 0x8fe   : > { %18652 = vmatmul.mubr.f32.vlgmr.msra.gmra.mrb[44].mxu0 %v4555_v28  ;;  %18635 = vmatpush3.msra.mxu1 %v4567_v2 }
 0x8ff   : > { %18660 = vmatpush3.msra.mxu0 %v5019_v31  ;;  %18636 = vmatprep.mubr.msk.f32.mxu1 %vm20263_vm0, %v20259_v25 }
 0x900   : > { %18644 = vmatprep.subr.mxu1 %v20259_v25  ;;  %18661 = vmatprep.mubr.msk.f32.mxu0 %vm20263_vm0, %v20259_v25 }
 0x901   : > { %18669 = vmatprep.subr.mxu0 %v20259_v25  ;;  %18637 = vmatmul.mubr.f32.vlgmr.msra.gmra.mrb[6].mxu1 %v4556_v33 }
 0x902   : > { %18645 = vmatpush3.msra.mxu1 %v4568_v55  ;;  %18662 = vmatmul.mubr.f32.vlgmr.msra.gmra.mrb[46].mxu0 %v21484_v57 }
 0x903   : > { %18670 = vmatpush3.msra.mxu0 %v4939_v60  ;;  %18646 = vmatprep.mubr.msk.f32.mxu1 %vm20263_vm0, %v20259_v25 }
 0x904   : > { %18654 = vmatprep.subr.mxu1 %v20259_v25  ;;  %18671 = vmatprep.mubr.msk.f32.mxu0 %vm20263_vm0, %v20259_v25 }
 0x905   : > { %18679 = vmatprep.subr.mxu0 %v20259_v25  ;;  %18647 = vmatmul.mubr.f32.vlgmr.msra.gmra.mrb[8].mxu1 %v4555_v28 }
 0x906   : > { %18655 = vmatpush3.msra.mxu1 %v4939_v60  ;;  %18672 = vmatmul.mubr.f32.vlgmr.msra.gmra.mrb[48].mxu0 %v5006_v3 }
 0x907   : > { %18680 = vmatpush3.msra.mxu0 %v4939_v60  ;;  %18656 = vmatprep.mubr.msk.f32.mxu1 %vm20263_vm0, %v20259_v25 }
 0x908   : > { %18664 = vmatprep.subr.mxu1 %v20259_v25  ;;  %18681 = vmatprep.mubr.msk.f32.mxu0 %vm20263_vm0, %v20259_v25 }
 0x909   : > { %18689 = vmatprep.subr.mxu0 %v20259_v25  ;;  %18657 = vmatmul.mubr.f32.vlgmr.msra.gmra.mrb[10].mxu1 %v5008_v42 }
 0x90a   : > { %18665 = vmatpush3.msra.mxu1 %v21479_v39  ;;  %18682 = vmatmul.mubr.f32.vlgmr.msra.gmra.mrb[50].mxu0 %v21484_v57 }
 0x90b   : > { %18690 = vmatpush3.msra.mxu0 %v5472_v32  ;;  %18666 = vmatprep.mubr.msk.f32.mxu1 %vm20263_vm0, %v20259_v25 }
 0x90c   : > { %18674 = vmatprep.subr.mxu1 %v20259_v25  ;;  %18691 = vmatprep.mubr.msk.f32.mxu0 %vm20263_vm0, %v20259_v25 }
 0x90d   : > { %18699 = vmatprep.subr.mxu0 %v20259_v25  ;;  %18667 = vmatmul.mubr.f32.vlgmr.msra.gmra.mrb[12].mxu1 %v5005_v1 }
 0x90e   : > { %18675 = vmatpush3.msra.mxu1 %v5017_v15  ;;  %18692 = vmatmul.mubr.f32.vlgmr.msra.gmra.mrb[52].mxu0 %v5457_v10 }
 0x90f   : > { %18700 = vmatpush3.msra.mxu0 %v21489_v59  ;;  %18676 = vmatprep.mubr.msk.f32.mxu1 %vm20263_vm0, %v20259_v25 }
 0x910   : > { %18684 = vmatprep.subr.mxu1 %v20259_v25  ;;  %18701 = vmatprep.mubr.msk.f32.mxu0 %vm20263_vm0, %v20259_v25 }
 0x911   : > { %18709 = vmatprep.subr.mxu0 %v20259_v25  ;;  %18677 = vmatmul.mubr.f32.vlgmr.msra.gmra.mrb[14].mxu1 %v21484_v57 }
 0x912   : > { %18685 = vmatpush3.msra.mxu1 %v21489_v59  ;;  %18702 = vmatmul.mubr.f32.vlgmr.msra.gmra.mrb[54].mxu0 %v5459_v9 }
 0x913   : > { %18710 = vmatpush3.msra.mxu0 %v21489_v59  ;;  %18686 = vmatprep.mubr.msk.f32.mxu1 %vm20263_vm0, %v20259_v25 }
 0x914   : > { %18694 = vmatprep.subr.mxu1 %v20259_v25  ;;  %18711 = vmatprep.mubr.msk.f32.mxu0 %vm20263_vm0, %v20259_v25 }
 0x915   : > { %18687 = vmatmul.mubr.f32.vlgmr.msra.gmra.mrb[16].mxu1 %v5461_v26  ;;  %18792 = vmatprep.subr.mxu0 %v20259_v25 }
 0x916   : > { %18695 = vmatpush3.msra.mxu1 %v21499_v30  ;;  %18696 = vmatprep.mubr.msk.f32.mxu1 %vm20263_vm0, %v20259_v25 }
 0x917   : > { %18704 = vmatprep.subr.mxu1 %v20259_v25  ;;  %18712 = vmatmul.mubr.f32.vlgmr.msra.gmra.mrb[56].mxu0 %v5457_v10 }
 0x918   : > { %18794 = vmatprep.mubr.msk.f32.mxu0 %vm20263_vm0, %v20259_v25 }
 0x919   : > { %18697 = vmatmul.mubr.f32.vlgmr.msra.gmra.mrb[18].mxu1 %v5458_v0 }
 0x91a   : > { %18705 = vmatpush3.msra.mxu1 %v5470_v48  ;;  %18706 = vmatprep.mubr.msk.f32.mxu1 %vm20263_vm0, %v20259_v25 }
 0x91b   : > { %19827 = vmatprep.subr.bf16.mxu1 %v22493_v29 }
 0x91d   : > { %18707 = vmatmul.mubr.f32.vlgmr.msra.gmra.mrb[20].mxu1 %v5457_v10 }
 0x91e   : > { %19829 = vmatpush3.bf16.msk.msra.mxu1 %vm20509_vm7, %v22499_v24  ;;  %18724 = vmatprep.mubr.msk.f32.mxu1 %vm20263_vm0, %v20259_v25 }
 0x91f   : > { %19830 = vmatprep.subr.bf16.mxu1 %v22493_v29 }
 0x922   : > { %19832 = vmatpush3.bf16.msk.msra.mxu1 %vm20523_vm8, %v22499_v24 }
 0x923   : > { %18722 = vmatprep.subr.mxu1 %v20259_v25 }
 0x9c8   : > { %v4561_v17 = vpop.f32.mrb[40].mxu0 }
 0x9c9   : > { %v18628_v50 = vpop.f32.mrb[41].mxu0 }
 0x9ca   : > { %v5842_v50 = vpop.permute.xlu1 %5841 }
 0x9cc   : > { %v4785_v4 = vpop.f32.mrb[42].mxu0 }
 0x9cd   : > { %v18643_v19 = vpop.f32.mrb[43].mxu0 }
 0x9d0   : > { %v4637_v20 = vpop.f32.mrb[4].mxu1 }
 0x9d1   : > { %v4638_v23 = vadd.f32 %v4637_v20, %v4561_v17  ;;  %v18633_v36 = vpop.f32.mrb[5].mxu1  ;;  %v4931_v16 = vpop.f32.mrb[44].mxu0 }
 0x9d2   : > { %v18653_v51 = vpop.f32.mrb[45].mxu0 }
 0x9d4   : > { %v4711_v46 = vpop.f32.mrb[6].mxu1 }
 0x9d5   : > { %v4712_v49 = vadd.f32 %v4711_v46, %v4638_v23  ;;  %v18638_v52 = vpop.f32.mrb[7].mxu1  ;;  %v5086_v22 = vpop.f32.mrb[46].mxu0 }
 0x9d6   : > { %v18663_v13 = vpop.f32.mrb[47].mxu0 }
 0x9d7   : > { %v4786_v21 = vadd.f32 %v4785_v4, %v4712_v49  ;;  %v22528_v4 = vld [vmem:[#allocation13_spill] sm:$0xff] }
 0x9d8   : > { %v4859_v6 = vpop.f32.mrb[8].mxu1  ;;  %18723 = vmatpush3.msk.msra.mxu1 %vm5855_vm1, %v22528_v4  ;;  %v5857_v46 = vsel %vm5855_vm1, %v22528_v4, 0 }
 0x9d9   : > { %v4860_v28 = vadd.f32 %v4859_v6, %v4786_v21  ;;  %v18648_v33 = vpop.f32.mrb[9].mxu1  ;;  %v5234_v27 = vpop.f32.mrb[48].mxu0  ;;  %19833 = vmatprep.subr.bf16.mxu1 %v22493_v29  ;;  %v5969_v52 = vsub.f32 %v5857_v46, %v5857_v46 }
 0x9da   : > { %v18673_v35 = vpop.f32.mrb[49].mxu0 }
 0x9db   : > { %v4932_v60 = vadd.f32 %v4931_v16, %v4860_v28  ;;  %v5970_v21 = vand.u32 4294901760, %v5969_v52 }
 0x9dc   : > { %v5010_v11 = vpop.f32.mrb[10].mxu1 }
 0x9dd   : > { %v5011_v34 = vadd.f32 %v5010_v11, %v4932_v60  ;;  %v18658_v41 = vpop.f32.mrb[11].mxu1  ;;  %v5380_v39 = vpop.f32.mrb[50].mxu0  ;;  %v5971_v28 = vsub.f32 %v5969_v52, %v5970_v21  ;;  %v7261_v60 = vld [vmem:[#allocation5 + $0x90] sm:$0xff] }
 0x9de   : > { %v18683_v45 = vpop.f32.mrb[51].mxu0  ;;  %v7266_v11 = vsel %vm22530_vm6, %v7261_v60, 0  ;;  %vm22539_vm6 = vmmov %vm22525_vm2 }
 0x9df   : > { %v5087_v53 = vadd.f32 %v5086_v22, %v5011_v34  ;;  %v5972_v33 = vand.u32 4294901760, %v5971_v28  ;;  %v21632_v41 = vand.u32 4294901760, %v7266_v11 }
 0x9e0   : > { %v5160_v2 = vpop.f32.mrb[12].mxu1 }
 0x9e1   : > { %v5161_v15 = vadd.f32 %v5160_v2, %v5087_v53  ;;  %v18668_v57 = vpop.f32.mrb[13].mxu1  ;;  %v5539_v61 = vpop.f32.mrb[52].mxu0  ;;  %v21635_v45 = vsub.f32 %v7266_v11, %v21632_v41 }
 0x9e2   : > { %v18693_v55 = vpop.f32.mrb[53].mxu0 }
 0x9e3   : > { %v5235_v58 = vadd.f32 %v5234_v27, %v5161_v15  ;;  %v7336_v57 = vand.u32 4294901760, %v21635_v45 }
 0x9e4   : > { %v5308_v59 = vpop.f32.mrb[14].mxu1 }
 0x9e5   : > { %v5309_v62 = vadd.f32 %v5308_v59, %v5235_v58  ;;  %v18678_v1 = vpop.f32.mrb[15].mxu1  ;;  %v5687_v14 = vpop.f32.mrb[54].mxu0 }
 0x9e6   : > { %v18703_v18 = vpop.f32.mrb[55].mxu0  ;;  %v6357_v1 = vld [vmem:[#allocation5 + $0x80] sm:$0xff] }
 0x9e7   : > { %v5381_v30 = vadd.f32 %v5380_v39, %v5309_v62 }
 0x9e8   : > { %v5463_v31 = vpop.f32.mrb[16].mxu1 }
 0x9e9   : > { %v5540_v3 = vadd.f32 %v5539_v61, %v5463_v31  ;;  %v18688_v63 = vpop.f32.mrb[17].mxu1 }
 0x9ea   : > { %v5833_v48 = vpop.f32.mrb[56].mxu0 }
 0x9eb   : > { %v18713_v56 = vpop.f32.mrb[57].mxu0 }
 0x9ec   : > { %v5613_v10 = vpop.f32.mrb[18].mxu1 }
 0x9ed   : > { %v5614_v12 = vadd.f32 %v5613_v10, %v5540_v3  ;;  %v18698_v42 = vpop.f32.mrb[19].mxu1 }
 0x9ef   : > { %v5688_v0 = vadd.f32 %v5687_v14, %v5614_v12 }
 0x9f0   : > { %v5761_v32 = vpop.f32.mrb[20].mxu1 }
 0x9f1   : > { %v5762_v9 = vadd.f32 %v5761_v32, %v5688_v0  ;;  %v18708_v38 = vpop.f32.mrb[21].mxu1 }
 0x9f3   : > { %v5834_v26 = vadd.f32 %v5833_v48, %v5762_v9 }
 0x9f5   : > { %v5837_v17 = vadd.f32 %v5834_v26, %v5381_v30  ;;  %v6813_v30 = vsel %vm22531_vm4, %v6357_v1, 0  ;;  %v7337_v26 = vsub.f32 %v21635_v45, %v7336_v57  ;;  %vm22540_vm4 = vmmov %vm22525_vm2 }
 0x9f6   : > { %v6881_v31 = vand.u32 4294901760, %v6813_v30 }
 0x9f7   : > { %v5844_v19 = vadd.f32 %v5842_v50, %v5837_v17  ;;  %v7338_v50 = vand.u32 4294901760, %v7337_v26 }
 0x9f8   : > { %v6882_v63 = vsub.f32 %v6813_v30, %v6881_v31 }
 0x9f9   : > { %v5845_v20 = vmax.f32 %v5844_v19, 0.0 }
 0x9fa   : > { %v6883_v56 = vand.u32 4294901760, %v6882_v63 }
 0x9fb   : > { %5847 = vrot.lane.b32.xlu0 %v5845_v20, %s20257_s15 }
 0x9fc   : > { %v6884_v12 = vsub.f32 %v6882_v63, %v6883_v56 }
 0x9fe   : > { %v6885_v0 = vand.u32 4294901760, %v6884_v12 }
 0xa6d   : > { %v5848_v23 = vpop.permute.xlu0 %5847 }
 0xa6e   : > { %v5850_v36 = vmax.f32 %v5845_v20, %v5848_v23 }
 0xa70   : > { %v5853_v16 = vsel %vm5851_vm13, %v5850_v36, 0  ;;  %vm22538_vm13 = vmmov %vm22525_vm2 }
 0xa71   : > { %v5929_v51 = vand.u32 4294901760, %v5853_v16 }
 0xa73   : > { %v5930_v49 = vsub.f32 %v5853_v16, %v5929_v51 }
 0xa75   : > { %v5931_v22 = vand.u32 4294901760, %v5930_v49 }
 0xa77   : > { %v5932_v13 = vsub.f32 %v5930_v49, %v5931_v22 }
 0xa79   : > { %v5933_v6 = vand.u32 4294901760, %v5932_v13 }
 0xa7b   : > { %18725 = vmatmul.mubr.f32.vlgmr.msra.gmra.mrb[22].mxu1 %v5933_v6 }
 0xa7c   : > { %19835 = vmatpush3.bf16.msra.mxu1 %v21015_v7  ;;  %18737 = vmatprep.mubr.msk.f32.mxu1 %vm20263_vm0, %v20259_v25 }
 0xa7d   : > { %19836 = vmatprep.subr.bf16.mxu1 %v22493_v29 }
 0xa80   : > { %19838 = vmatpush3.bf16.msra.mxu1 %v21035_v8 }
 0xa81   : > { %18735 = vmatprep.subr.mxu1 %v20259_v25 }
 0xa84   : > { %18736 = vmatpush3.msra.mxu1 %v5972_v33 }
 0xa85   : > { %18738 = vmatmul.mubr.f32.vlgmr.msra.gmra.mrb[22].mxu1 %v5929_v51  ;;  %19839 = vmatprep.subr.bf16.mxu1 %v22493_v29 }
 0xa86   : > { %19841 = vmatpush3.bf16.msra.mxu1 %v21068_v40  ;;  %18750 = vmatprep.mubr.msk.f32.mxu1 %vm20263_vm0, %v20259_v25 }
 0xa87   : > { %19842 = vmatprep.subr.bf16.mxu1 %v22493_v29 }
 0xa8a   : > { %19844 = vmatpush3.bf16.msra.mxu1 %v21076_v44  ;;  %v7715_v44 = vld [vmem:[#allocation5 + $0x98] sm:$0xff] }
 0xa8b   : > { %18748 = vmatprep.subr.mxu1 %v20259_v25 }
 0xa8e   : > { %18749 = vmatpush3.msra.mxu1 %v5969_v52 }
 0xa8f   : > { %18751 = vmatmul.mubr.f32.vlgmr.msra.gmra.mrb[22].mxu1 %v5930_v49  ;;  %19845 = vmatprep.subr.bf16.mxu1 %v22493_v29 }
 0xa90   : > { %19847 = vmatpush3.bf16.msk.msra.mxu1 %vm20509_vm7, %v22499_v24  ;;  %18763 = vmatprep.mubr.msk.f32.mxu1 %vm20263_vm0, %v20259_v25 }
 0xa91   : > { %19848 = vmatprep.subr.bf16.mxu1 %v22493_v29 }
 0xa94   : > { %19850 = vmatpush3.bf16.msk.msra.mxu1 %vm20523_vm8, %v22499_v24 }
 0xa95   : > { %18761 = vmatprep.subr.mxu1 %v20259_v25 }
 0xa98   : > { %18762 = vmatpush3.msk.msra.mxu1 %vm5855_vm1, %v22528_v4 }
 0xa99   : > { %18764 = vmatmul.mubr.f32.vlgmr.msra.gmra.mrb[22].mxu1 %v5931_v22  ;;  %19851 = vmatprep.subr.bf16.mxu1 %v22493_v29 }
 0xa9a   : > { %19853 = vmatpush3.bf16.msra.mxu1 %v21164_v37  ;;  %18776 = vmatprep.mubr.msk.f32.mxu1 %vm20263_vm0, %v20259_v25 }
 0xa9b   : > { %19854 = vmatprep.subr.bf16.mxu1 %v22493_v29 }
 0xa9e   : > { %19856 = vmatpush3.bf16.msra.mxu1 %v21175_v47  ;;  %v6358_v47 = vld [vmem:[#allocation5 + $0x88] sm:$0xff] }
 0xa9f   : > { %18774 = vmatprep.subr.mxu1 %v20259_v25 }
 0xaa2   : > { %18775 = vmatpush3.msra.mxu1 %v5970_v21 }
 0xaa3   : > { %18777 = vmatmul.mubr.f32.vlgmr.msra.gmra.mrb[22].mxu1 %v5929_v51  ;;  %19857 = vmatprep.subr.bf16.mxu1 %v22493_v29 }
 0xaa4   : > { %19859 = vmatpush3.bf16.msk.msra.mxu1 %vm20509_vm7, %v22499_v24  ;;  %18789 = vmatprep.mubr.msk.f32.mxu1 %vm20263_vm0, %v20259_v25 }
 0xaa5   : > { %19860 = vmatprep.subr.bf16.mxu1 %v22493_v29 }
 0xaa8   : > { %19862 = vmatpush3.bf16.msk.msra.mxu1 %vm20523_vm8, %v22499_v24  ;;  %vm22529_vm8 = vmmov %vm22525_vm2 }
 0xaa9   : > { %18787 = vmatprep.subr.mxu1 %v20259_v25  ;;  %v6364_v27 = vsel %vm22529_vm8, %v6358_v47, 0  ;;  %vm11399_vm8 = vcmask 80896  }
 0xaaa   : > { %v6432_v35 = vand.u32 4294901760, %v6364_v27 }
 0xaac   : > { %18788 = vmatpush3.msk.msra.mxu1 %vm5855_vm1, %v22528_v4  ;;  %v6433_v34 = vsub.f32 %v6364_v27, %v6432_v35  ;;  %vm10945_vm1 = vcmask 39936  }
 0xaad   : > { %18790 = vmatmul.mubr.f32.vlgmr.msra.gmra.mrb[22].mxu1 %v5929_v51  ;;  %18867 = vmatprep.subr.mxu1 %v20259_v25 }
 0xaae   : > { %18869 = vmatprep.mubr.msk.f32.mxu1 %vm20263_vm0, %v20259_v25  ;;  %v6434_v39 = vand.u32 4294901760, %v6433_v34 }
 0xab0   : > { %v6435_v53 = vsub.f32 %v6433_v34, %v6434_v39 }
 0xab2   : > { %v6436_v58 = vand.u32 4294901760, %v6435_v53 }
 0xb80   : > { %v21624_v8 = vpop.f32.mrb[22].mxu1 }
 0xb81   : > { %7262 = vrot.lane.b32.xlu0 %v21624_v8, %s20258_s17  ;;  %6360 = vrot.lane.b32.xlu1 %v21624_v8, %s20257_s15  ;;  %v18791_v43 = vpop.f32.mrb[23].mxu1  ;;  %v6816_v3 = vand.u32 4294901760, %v21624_v8 }
 0xb83   : > { %v6893_v48 = vsub.f32 %v21624_v8, %v6816_v3 }
 0xb85   : > { %7718 = vperm.xlu1 %20121, %v7715_v44   ;;  %v6894_v10 = vand.u32 4294901760, %v6893_v48 }
 0xb87   : > { %v6895_v42 = vsub.f32 %v6893_v48, %v6894_v10 }
 0xb89   : > { %v6896_v32 = vand.u32 4294901760, %v6895_v42 }
 0xbf3   : > { %v21637_v2 = vpop.permute.xlu0 %7262  ;;  %v6361_v15 = vpop.permute.xlu1 %6360 }
 0xbf4   : > { %v21641_v61 = vand.u32 4294901760, %v21637_v2  ;;  %v6367_v55 = vand.u32 4294901760, %v6361_v15 }
 0xbf6   : > { %v6444_v59 = vsub.f32 %v6361_v15, %v6367_v55  ;;  %18793 = vmatpush3.msra.mxu0 %v6367_v55  ;;  %18868 = vmatpush3.msra.mxu1 %v21641_v61  ;;  %v7346_v9 = vsub.f32 %v21637_v2, %v21641_v61 }
 0xbf7   : > { %18877 = vmatprep.subr.mxu1 %v20259_v25  ;;  %18870 = vmatmul.mubr.f32.vlgmr.msra.gmra.mrb[24].mxu1 %v7336_v57 }
 0xbf8   : > { %v6445_v62 = vand.u32 4294901760, %v6444_v59  ;;  %18878 = vmatpush3.msra.mxu1 %v21641_v61  ;;  %18795 = vmatmul.mubr.f32.vlgmr.msra.gmra.mrb[58].mxu0 %v6436_v58  ;;  %v7347_v38 = vand.u32 4294901760, %v7346_v9 }
 0xbf9   : > { %18797 = vmatprep.subr.mxu0 %v20259_v25  ;;  %18799 = vmatprep.mubr.msk.f32.mxu0 %vm20263_vm0, %v20259_v25 }
 0xbfa   : > { %v6446_v14 = vsub.f32 %v6444_v59, %v6445_v62  ;;  %18879 = vmatprep.mubr.msk.f32.mxu1 %vm20263_vm0, %v20259_v25  ;;  %18936 = vmatprep.subr.mxu1 %v20259_v25  ;;  %v7348_v17 = vsub.f32 %v7346_v9, %v7347_v38 }
 0xbfb   : > { %18880 = vmatmul.mubr.f32.vlgmr.msra.gmra.mrb[26].mxu1 %v21632_v41 }
 0xbfc   : > { %v6447_v18 = vand.u32 4294901760, %v6446_v14  ;;  %18938 = vmatprep.mubr.msk.f32.mxu1 %vm20263_vm0, %v20259_v25  ;;  %v7349_v4 = vand.u32 4294901760, %v7348_v17 }
 0xbfe   : > { %18798 = vmatpush3.msra.mxu0 %v6447_v18 }
 0xbff   : > { %18800 = vmatmul.mubr.f32.vlgmr.msra.gmra.mrb[60].mxu0 %v6432_v35  ;;  %18802 = vmatprep.subr.mxu0 %v20259_v25 }
 0xc00   : > { %18803 = vmatpush3.msra.mxu0 %v6444_v59  ;;  %18804 = vmatprep.mubr.msk.f32.mxu0 %vm20263_vm0, %v20259_v25 }
 0xc01   : > { %18807 = vmatprep.subr.mxu0 %v20259_v25 }
 0xc03   : > { %18805 = vmatmul.mubr.f32.vlgmr.msra.gmra.mrb[62].mxu0 %v6433_v34 }
 0xc04   : > { %18808 = vmatpush3.msra.mxu0 %v6367_v55  ;;  %18809 = vmatprep.mubr.msk.f32.mxu0 %vm20263_vm0, %v20259_v25 }
 0xc05   : > { %18812 = vmatprep.subr.mxu0 %v20259_v25 }
 0xc07   : > { %18810 = vmatmul.mubr.f32.vlgmr.msra.gmra.mrb[64].mxu0 %v6434_v39 }
 0xc08   : > { %18813 = vmatpush3.msra.mxu0 %v6445_v62  ;;  %18814 = vmatprep.mubr.msk.f32.mxu0 %vm20263_vm0, %v20259_v25 }
 0xc09   : > { %18817 = vmatprep.subr.mxu0 %v20259_v25 }
 0xc0b   : > { %18815 = vmatmul.mubr.f32.vlgmr.msra.gmra.mrb[66].mxu0 %v6432_v35 }
 0xc0c   : > { %18818 = vmatpush3.msra.mxu0 %v6367_v55  ;;  %18819 = vmatprep.mubr.msk.f32.mxu0 %vm20263_vm0, %v20259_v25 }
 0xc0d   : > { %18822 = vmatprep.subr.mxu0 %v20259_v25 }
 0xc0f   : > { %18820 = vmatmul.mubr.f32.vlgmr.msra.gmra.mrb[68].mxu0 %v6432_v35 }
 0xc10   : > { %18823 = vmatpush3.msra.mxu0 %v6816_v3  ;;  %18824 = vmatprep.mubr.msk.f32.mxu0 %vm20263_vm0, %v20259_v25 }
 0xc11   : > { %18827 = vmatprep.subr.mxu0 %v20259_v25 }
 0xc13   : > { %18825 = vmatmul.mubr.f32.vlgmr.msra.gmra.mrb[70].mxu0 %v6885_v0 }
 0xc14   : > { %18828 = vmatpush3.msra.mxu0 %v6896_v32  ;;  %18829 = vmatprep.mubr.msk.f32.mxu0 %vm20263_vm0, %v20259_v25 }
 0xc15   : > { %18832 = vmatprep.subr.mxu0 %v20259_v25 }
 0xc17   : > { %18830 = vmatmul.mubr.f32.vlgmr.msra.gmra.mrb[72].mxu0 %v6881_v31 }
 0xc18   : > { %18833 = vmatpush3.msra.mxu0 %v6893_v48  ;;  %18834 = vmatprep.mubr.msk.f32.mxu0 %vm20263_vm0, %v20259_v25 }
 0xc19   : > { %18837 = vmatprep.subr.mxu0 %v20259_v25 }
 0xc1b   : > { %18835 = vmatmul.mubr.f32.vlgmr.msra.gmra.mrb[74].mxu0 %v6882_v63 }
 0xc1c   : > { %18838 = vmatpush3.msra.mxu0 %v6816_v3  ;;  %18839 = vmatprep.mubr.msk.f32.mxu0 %vm20263_vm0, %v20259_v25 }
 0xc1d   : > { %18842 = vmatprep.subr.mxu0 %v20259_v25 }
 0xc1f   : > { %18840 = vmatmul.mubr.f32.vlgmr.msra.gmra.mrb[76].mxu0 %v6883_v56 }
 0xc20   : > { %18843 = vmatpush3.msra.mxu0 %v6894_v10  ;;  %18844 = vmatprep.mubr.msk.f32.mxu0 %vm20263_vm0, %v20259_v25 }
 0xc21   : > { %18847 = vmatprep.subr.mxu0 %v20259_v25 }
 0xc23   : > { %18845 = vmatmul.mubr.f32.vlgmr.msra.gmra.mrb[78].mxu0 %v6881_v31 }
 0xc24   : > { %18848 = vmatpush3.msra.mxu0 %v6816_v3  ;;  %18849 = vmatprep.mubr.msk.f32.mxu0 %vm20263_vm0, %v20259_v25 }
 0xc25   : > { %18852 = vmatprep.subr.mxu0 %v20259_v25 }
 0xc27   : > { %18850 = vmatmul.mubr.f32.vlgmr.msra.gmra.mrb[80].mxu0 %v6881_v31 }
 0xc28   : > { %18853 = vmatpush3.msra.mxu0 %v21641_v61  ;;  %18854 = vmatprep.mubr.msk.f32.mxu0 %vm20263_vm0, %v20259_v25 }
 0xc29   : > { %18857 = vmatprep.subr.mxu0 %v20259_v25 }
 0xc2b   : > { %18855 = vmatmul.mubr.f32.vlgmr.msra.gmra.mrb[82].mxu0 %v7338_v50  ;;  %v7719_v50 = vpop.permute.xlu1 %7718 }
 0xc2c   : > { %18858 = vmatpush3.msra.mxu0 %v7349_v4  ;;  %18859 = vmatprep.mubr.msk.f32.mxu0 %vm20263_vm0, %v20259_v25  ;;  %v22532_v4 = vld [vmem:[#allocation12_spill] sm:$0xff] }
 0xc2d   : > { %18862 = vmatprep.subr.mxu0 %v20259_v25 }
 0xc2f   : > { %18860 = vmatmul.mubr.f32.vlgmr.msra.gmra.mrb[84].mxu0 %v21632_v41 }
 0xc30   : > { %18863 = vmatpush3.msra.mxu0 %v7346_v9  ;;  %18864 = vmatprep.mubr.msk.f32.mxu0 %vm20263_vm0, %v20259_v25 }
 0xc31   : > { %18872 = vmatprep.subr.mxu0 %v20259_v25 }
 0xc33   : > { %18865 = vmatmul.mubr.f32.vlgmr.msra.gmra.mrb[86].mxu0 %v21635_v45 }
 0xc34   : > { %18873 = vmatpush3.msra.mxu0 %v7347_v38  ;;  %18874 = vmatprep.mubr.msk.f32.mxu0 %vm20263_vm0, %v20259_v25 }
 0xc35   : > { %19863 = vmatprep.subr.bf16.mxu0 %v22493_v29 }
 0xc37   : > { %18875 = vmatmul.mubr.f32.vlgmr.msra.gmra.mrb[88].mxu0 %v21632_v41 }
 0xc38   : > { %19865 = vmatpush3.bf16.msk.msra.mxu0 %vm20509_vm7, %v22499_v24  ;;  %18888 = vmatprep.mubr.msk.f32.mxu0 %vm20263_vm0, %v20259_v25 }
 0xc39   : > { %18886 = vmatprep.subr.mxu0 %v20259_v25 }
 0xc3c   : > { %18887 = vmatpush3.msk.msra.mxu0 %vm7732_vm12, %v22532_v4 }
 0xc3d   : > { %19866 = vmatprep.subr.bf16.mxu0 %v22493_v29 }
 0xcca   : > { %v7564_v19 = vpop.f32.mrb[24].mxu1 }
 0xccb   : > { %v6438_v20 = vpop.f32.mrb[58].mxu0  ;;  %v18871_v23 = vpop.f32.mrb[25].mxu1 }
 0xccc   : > { %v18796_v36 = vpop.f32.mrb[59].mxu0 }
 0xcce   : > { %v7710_v16 = vpop.f32.mrb[26].mxu1 }
 0xccf   : > { %v18881_v51 = vpop.f32.mrb[27].mxu1 }
 0xcd2   : > { %v6514_v46 = vpop.f32.mrb[60].mxu0 }
 0xcd3   : > { %v6515_v49 = vadd.f32 %v6514_v46, %v6438_v20  ;;  %v18801_v52 = vpop.f32.mrb[61].mxu0 }
 0xcd6   : > { %v6588_v22 = vpop.f32.mrb[62].mxu0 }
 0xcd7   : > { %v6589_v13 = vadd.f32 %v6588_v22, %v6515_v49  ;;  %v18806_v21 = vpop.f32.mrb[63].mxu0 }
 0xcda   : > { %v6662_v6 = vpop.f32.mrb[64].mxu0 }
 0xcdb   : > { %v6663_v28 = vadd.f32 %v6662_v6, %v6589_v13  ;;  %v18811_v33 = vpop.f32.mrb[65].mxu0 }
 0xcde   : > { %v6736_v43 = vpop.f32.mrb[66].mxu0 }
 0xcdf   : > { %v6737_v44 = vadd.f32 %v6736_v43, %v6663_v28  ;;  %v18816_v47 = vpop.f32.mrb[67].mxu0 }
 0xce0   : > { %v9568_v47 = vld [vmem:[#allocation5 + $0xb8] sm:$0xff] }
 0xce2   : > { %v6808_v27 = vpop.f32.mrb[68].mxu0 }
 0xce3   : > { %v6809_v35 = vadd.f32 %v6808_v27, %v6737_v44  ;;  %v18821_v60 = vpop.f32.mrb[69].mxu0  ;;  %v8211_v27 = vld [vmem:[#allocation5 + $0xa8] sm:$0xff] }
 0xce6   : > { %v6887_v11 = vpop.f32.mrb[70].mxu0 }
 0xce7   : > { %v6888_v34 = vadd.f32 %v6887_v11, %v6809_v35  ;;  %v18826_v41 = vpop.f32.mrb[71].mxu0 }
 0xcea   : > { %v6963_v39 = vpop.f32.mrb[72].mxu0 }
 0xceb   : > { %v6964_v45 = vadd.f32 %v6963_v39, %v6888_v34  ;;  %v18831_v53 = vpop.f32.mrb[73].mxu0  ;;  %v9114_v39 = vld [vmem:[#allocation5 + $0xb0] sm:$0xff] }
 0xcee   : > { %v7037_v2 = vpop.f32.mrb[74].mxu0 }
 0xcef   : > { %v7038_v15 = vadd.f32 %v7037_v2, %v6964_v45  ;;  %v18836_v57 = vpop.f32.mrb[75].mxu0 }
 0xcf2   : > { %v7111_v61 = vpop.f32.mrb[76].mxu0 }
 0xcf3   : > { %v7112_v55 = vadd.f32 %v7111_v61, %v7038_v15  ;;  %v18841_v58 = vpop.f32.mrb[77].mxu0  ;;  %v9119_v61 = vsel %vm22535_vm9, %v9114_v39, 0  ;;  %vm22545_vm9 = vmmov %vm22525_vm2 }
 0xcf6   : > { %v7185_v59 = vpop.f32.mrb[78].mxu0 }
 0xcf7   : > { %v7186_v62 = vadd.f32 %v7185_v59, %v7112_v55  ;;  %v18846_v1 = vpop.f32.mrb[79].mxu0 }
 0xcf8   : > { %v21792_v1 = vand.u32 4294901760, %v9119_v61 }
 0xcfa   : > { %v7257_v14 = vpop.f32.mrb[80].mxu0 }
 0xcfb   : > { %v7258_v18 = vadd.f32 %v7257_v14, %v7186_v62  ;;  %v18851_v30 = vpop.f32.mrb[81].mxu0 }
 0xcfe   : > { %v7340_v31 = vpop.f32.mrb[82].mxu0 }
 0xcff   : > { %v18856_v3 = vpop.f32.mrb[83].mxu0 }
 0xd00   : > { %v21798_v3 = vsub.f32 %v9119_v61, %v21792_v1 }
 0xd02   : > { %v7416_v63 = vpop.f32.mrb[84].mxu0 }
 0xd03   : > { %v7417_v48 = vadd.f32 %v7416_v63, %v7340_v31  ;;  %v18861_v56 = vpop.f32.mrb[85].mxu0  ;;  %v9189_v63 = vand.u32 4294901760, %v21798_v3 }
 0xd06   : > { %v7490_v10 = vpop.f32.mrb[86].mxu0 }
 0xd07   : > { %v7491_v12 = vadd.f32 %v7490_v10, %v7417_v48  ;;  %v18866_v42 = vpop.f32.mrb[87].mxu0 }
 0xd09   : > { %v7565_v0 = vadd.f32 %v7564_v19, %v7491_v12  ;;  %v7734_v19 = vsel %vm7732_vm12, %v22532_v4, 0 }
 0xd0a   : > { %v7638_v32 = vpop.f32.mrb[88].mxu0 }
 0xd0b   : > { %v7639_v9 = vadd.f32 %v7638_v32, %v7565_v0  ;;  %v18876_v38 = vpop.f32.mrb[89].mxu0  ;;  %v9190_v32 = vsub.f32 %v21798_v3, %v9189_v63 }
 0xd0d   : > { %v7711_v26 = vadd.f32 %v7710_v16, %v7639_v9  ;;  %v7830_v16 = vsub.f32 %v7734_v19, %v7734_v19  ;;  %v9191_v9 = vand.u32 4294901760, %v9190_v32 }
 0xd0f   : > { %v7714_v17 = vadd.f32 %v7711_v26, %v7258_v18  ;;  %v7831_v22 = vand.u32 4294901760, %v7830_v16 }
 0xd11   : > { %v7721_v20 = vadd.f32 %v7719_v50, %v7714_v17  ;;  %v7832_v6 = vsub.f32 %v7830_v16, %v7831_v22 }
 0xd13   : > { %v7722_v23 = vmax.f32 %v7721_v20, 0.0  ;;  %v7833_v33 = vand.u32 4294901760, %v7832_v6 }
 0xd15   : > { %7724 = vrot.lane.b32.xlu0 %v7722_v23, %s20257_s15 }
 0xd87   : > { %v7725_v36 = vpop.permute.xlu0 %7724 }
 0xd88   : > { %v7727_v51 = vmax.f32 %v7722_v23, %v7725_v36 }
 0xd8a   : > { %v7730_v46 = vsel %vm7728_vm3, %v7727_v51, 0  ;;  %vm22542_vm3 = vmmov %vm22525_vm2 }
 0xd8b   : > { %v7804_v49 = vand.u32 4294901760, %v7730_v46 }
 0xd8d   : > { %v7805_v52 = vsub.f32 %v7730_v46, %v7804_v49 }
 0xd8f   : > { %v7806_v13 = vand.u32 4294901760, %v7805_v52 }
 0xd91   : > { %v7807_v21 = vsub.f32 %v7805_v52, %v7806_v13 }
 0xd93   : > { %v7808_v28 = vand.u32 4294901760, %v7807_v21 }
 0xd95   : > { %18889 = vmatmul.mubr.f32.vlgmr.msra.gmra.mrb[90].mxu0 %v7808_v28 }
 0xd96   : > { %19868 = vmatpush3.bf16.msra.mxu0 %v21015_v7  ;;  %18897 = vmatprep.mubr.msk.f32.mxu0 %vm20263_vm0, %v20259_v25  ;;  %v8210_v7 = vld [vmem:[#allocation5 + $0xa0] sm:$0xff] }
 0xd97   : > { %18895 = vmatprep.subr.mxu0 %v20259_v25 }
 0xd9a   : > { %18896 = vmatpush3.msra.mxu0 %v7833_v33 }
 0xd9b   : > { %19869 = vmatprep.subr.bf16.mxu0 %v22493_v29 }
 0xd9d   : > { %18898 = vmatmul.mubr.f32.vlgmr.msra.gmra.mrb[90].mxu0 %v7804_v49 }
 0xd9e   : > { %19871 = vmatpush3.bf16.msra.mxu0 %v21068_v40  ;;  %18906 = vmatprep.mubr.msk.f32.mxu0 %vm20263_vm0, %v20259_v25 }
 0xd9f   : > { %18904 = vmatprep.subr.mxu0 %v20259_v25 }
 0xda2   : > { %18905 = vmatpush3.msra.mxu0 %v7830_v16 }
 0xda3   : > { %19872 = vmatprep.subr.bf16.mxu0 %v22493_v29 }
 0xda5   : > { %18907 = vmatmul.mubr.f32.vlgmr.msra.gmra.mrb[90].mxu0 %v7805_v52 }
 0xda6   : > { %19874 = vmatpush3.bf16.msk.msra.mxu0 %vm20509_vm7, %v22499_v24  ;;  %18915 = vmatprep.mubr.msk.f32.mxu0 %vm20263_vm0, %v20259_v25 }
 0xda7   : > { %18913 = vmatprep.subr.mxu0 %v20259_v25 }
 0xdaa   : > { %18914 = vmatpush3.msk.msra.mxu0 %vm7732_vm12, %v22532_v4 }
 0xdab   : > { %19875 = vmatprep.subr.bf16.mxu0 %v22493_v29 }
 0xdad   : > { %18916 = vmatmul.mubr.f32.vlgmr.msra.gmra.mrb[90].mxu0 %v7806_v13 }
 0xdae   : > { %19877 = vmatpush3.bf16.msra.mxu0 %v21164_v37  ;;  %18924 = vmatprep.mubr.msk.f32.mxu0 %vm20263_vm0, %v20259_v25 }
 0xdaf   : > { %18922 = vmatprep.subr.mxu0 %v20259_v25 }
 0xdb2   : > { %18923 = vmatpush3.msra.mxu0 %v7831_v22 }
 0xdb3   : > { %19878 = vmatprep.subr.bf16.mxu0 %v22493_v29  ;;  %v8666_v29 = vsel %vm22533_vm5, %v8210_v7, 0  ;;  %vm22543_vm5 = vmmov %vm22525_vm2 }
 0xdb4   : > { %v21760_v40 = vand.u32 4294901760, %v8666_v29 }
 0xdb5   : > { %18925 = vmatmul.mubr.f32.vlgmr.msra.gmra.mrb[90].mxu0 %v7804_v49 }
 0xdb6   : > { %19880 = vmatpush3.bf16.msk.msra.mxu0 %vm20509_vm7, %v22499_v24  ;;  %18933 = vmatprep.mubr.msk.f32.mxu0 %vm20263_vm0, %v20259_v25  ;;  %v21763_v5 = vsub.f32 %v8666_v29, %v21760_v40  ;;  %vm22534_vm7 = vmmov %vm22525_vm2 }
 0xdb7   : > { %18931 = vmatprep.subr.mxu0 %v20259_v25  ;;  %v8217_v35 = vsel %vm22534_vm7, %v8211_v27, 0  ;;  %vm22544_vm7 = vmmov %vm22525_vm2 }
 0xdb8   : > { %v8736_v37 = vand.u32 4294901760, %v21763_v5  ;;  %v8285_v60 = vand.u32 4294901760, %v8217_v35 }
 0xdba   : > { %18932 = vmatpush3.msk.msra.mxu0 %vm7732_vm12, %v22532_v4  ;;  %v8286_v11 = vsub.f32 %v8217_v35, %v8285_v60  ;;  %v8737_v10 = vsub.f32 %v21763_v5, %v8736_v37  ;;  %vm22541_vm12 = vmmov %vm22525_vm2 }
 0xdbb   : > { %18981 = vmatprep.subr.mxu0 %v20259_v25 }
 0xdbc   : > { %v8287_v34 = vand.u32 4294901760, %v8286_v11  ;;  %v8738_v42 = vand.u32 4294901760, %v8737_v10 }
 0xdbd   : > { %18934 = vmatmul.mubr.f32.vlgmr.msra.gmra.mrb[90].mxu0 %v7804_v49 }
 0xdbe   : > { %18983 = vmatprep.mubr.msk.f32.mxu0 %vm20263_vm0, %v20259_v25  ;;  %v8288_v41 = vsub.f32 %v8286_v11, %v8287_v34 }
 0xdc0   : > { %v8289_v2 = vand.u32 4294901760, %v8288_v41 }
 0xe90   : > { %v8204_v24 = vpop.f32.mrb[90].mxu0 }
 0xe91   : > { %v21766_v43 = vand.u32 4294901760, %v8204_v24  ;;  %9115 = vrot.lane.b32.xlu0 %v8204_v24, %s20258_s17  ;;  %8213 = vrot.lane.b32.xlu1 %v8204_v24, %s20257_s15  ;;  %v18935_v44 = vpop.f32.mrb[91].mxu0 }
 0xe93   : > { %18982 = vmatpush3.msra.mxu0 %v21766_v43  ;;  %v8746_v48 = vsub.f32 %v8204_v24, %v21766_v43 }
 0xe94   : > { %18991 = vmatprep.subr.mxu0 %v20259_v25  ;;  %18984 = vmatmul.mubr.f32.vlgmr.msra.gmra.mrb[92].mxu0 %v8736_v37 }
 0xe95   : > { %9571 = vperm.xlu1 %20121, %v9568_v47   ;;  %18992 = vmatpush3.msra.mxu0 %v21766_v43  ;;  %v8747_v56 = vand.u32 4294901760, %v8746_v48 }
 0xe96   : > { %18993 = vmatprep.mubr.msk.f32.mxu0 %vm20263_vm0, %v20259_v25  ;;  %19001 = vmatprep.subr.mxu0 %v20259_v25 }
 0xe97   : > { %v8748_v12 = vsub.f32 %v8746_v48, %v8747_v56 }
 0xe98   : > { %18994 = vmatmul.mubr.f32.vlgmr.msra.gmra.mrb[94].mxu0 %v21760_v40 }
 0xe99   : > { %19003 = vmatprep.mubr.msk.f32.mxu0 %vm20263_vm0, %v20259_v25  ;;  %v8749_v0 = vand.u32 4294901760, %v8748_v12  ;;  %v10936_v12 = vld [vmem:[#allocation5 + $0xd8] sm:$0xff] }
 0xf03   : > { %v9116_v45 = vpop.permute.xlu0 %9115  ;;  %v8214_v53 = vpop.permute.xlu1 %8213 }
 0xf04   : > { %v21782_v15 = vand.u32 4294901760, %v9116_v45  ;;  %v8220_v57 = vand.u32 4294901760, %v8214_v53 }
 0xf06   : > { %v21786_v55 = vsub.f32 %v9116_v45, %v21782_v15  ;;  %v8297_v58 = vsub.f32 %v8214_v53, %v8220_v57  ;;  %18937 = vmatpush3.msra.mxu1 %v8220_v57 }
 0xf07   : > { %18939 = vmatmul.mubr.f32.vlgmr.msra.gmra.mrb[28].mxu1 %v8289_v2  ;;  %18941 = vmatprep.subr.mxu1 %v20259_v25 }
 0xf08   : > { %v9200_v59 = vand.u32 4294901760, %v21786_v55  ;;  %v8298_v62 = vand.u32 4294901760, %v8297_v58  ;;  %18943 = vmatprep.mubr.msk.f32.mxu1 %vm20263_vm0, %v20259_v25 }
 0xf0a   : > { %v9201_v14 = vsub.f32 %v21786_v55, %v9200_v59  ;;  %v8299_v18 = vsub.f32 %v8297_v58, %v8298_v62 }
 0xf0c   : > { %v9202_v30 = vand.u32 4294901760, %v9201_v14  ;;  %v8300_v31 = vand.u32 4294901760, %v8299_v18 }
 0xf0e   : > { %18942 = vmatpush3.msra.mxu1 %v8300_v31  ;;  %19002 = vmatpush3.msra.mxu0 %v9202_v30 }
 0xf0f   : > { %18944 = vmatmul.mubr.f32.vlgmr.msra.gmra.mrb[30].mxu1 %v8285_v60  ;;  %18946 = vmatprep.subr.mxu1 %v20259_v25 }
 0xf10   : > { %19004 = vmatmul.mubr.f32.vlgmr.msra.gmra.mrb[96].mxu0 %v21792_v1  ;;  %19011 = vmatprep.subr.mxu0 %v20259_v25 }
 0xf11   : > { %18947 = vmatpush3.msra.mxu1 %v8297_v58  ;;  %19012 = vmatpush3.msra.mxu0 %v21782_v15 }
 0xf12   : > { %18948 = vmatprep.mubr.msk.f32.mxu1 %vm20263_vm0, %v20259_v25  ;;  %18951 = vmatprep.subr.mxu1 %v20259_v25 }
 0xf13   : > { %19013 = vmatprep.mubr.msk.f32.mxu0 %vm20263_vm0, %v20259_v25  ;;  %19021 = vmatprep.subr.mxu0 %v20259_v25 }
 0xf14   : > { %18949 = vmatmul.mubr.f32.vlgmr.msra.gmra.mrb[32].mxu1 %v8286_v11  ;;  %19014 = vmatmul.mubr.f32.vlgmr.msra.gmra.mrb[98].mxu0 %v9189_v63 }
 0xf15   : > { %18952 = vmatpush3.msra.mxu1 %v8220_v57  ;;  %19022 = vmatpush3.msra.mxu0 %v21782_v15 }
 0xf16   : > { %18953 = vmatprep.mubr.msk.f32.mxu1 %vm20263_vm0, %v20259_v25  ;;  %18956 = vmatprep.subr.mxu1 %v20259_v25 }
 0xf17   : > { %19023 = vmatprep.mubr.msk.f32.mxu0 %vm20263_vm0, %v20259_v25  ;;  %19031 = vmatprep.subr.mxu0 %v20259_v25 }
 0xf18   : > { %18954 = vmatmul.mubr.f32.vlgmr.msra.gmra.mrb[34].mxu1 %v8287_v34  ;;  %19024 = vmatmul.mubr.f32.vlgmr.msra.gmra.mrb[100].mxu0 %v21792_v1 }
 0xf19   : > { %18957 = vmatpush3.msra.mxu1 %v8298_v62  ;;  %18958 = vmatprep.mubr.msk.f32.mxu1 %vm20263_vm0, %v20259_v25 }
 0xf1a   : > { %18961 = vmatprep.subr.mxu1 %v20259_v25  ;;  %19033 = vmatprep.mubr.msk.f32.mxu0 %vm20263_vm0, %v20259_v25 }
 0xf1c   : > { %18959 = vmatmul.mubr.f32.vlgmr.msra.gmra.mrb[36].mxu1 %v8285_v60 }
 0xf1d   : > { %18962 = vmatpush3.msra.mxu1 %v8220_v57  ;;  %18963 = vmatprep.mubr.msk.f32.mxu1 %vm20263_vm0, %v20259_v25 }
 0xf1e   : > { %18966 = vmatprep.subr.mxu1 %v20259_v25 }
 0xf20   : > { %18964 = vmatmul.mubr.f32.vlgmr.msra.gmra.mrb[38].mxu1 %v8285_v60 }
 0xf21   : > { %18967 = vmatpush3.msra.mxu1 %v21766_v43  ;;  %18968 = vmatprep.mubr.msk.f32.mxu1 %vm20263_vm0, %v20259_v25 }
 0xf22   : > { %18971 = vmatprep.subr.mxu1 %v20259_v25 }
 0xf24   : > { %18969 = vmatmul.mubr.f32.vlgmr.msra.gmra.mrb[40].mxu1 %v8738_v42  ;;  %v9579_v42 = vld [vmem:[#allocation5 + $0xc8] sm:$0xff] }
 0xf25   : > { %18972 = vmatpush3.msra.mxu1 %v8749_v0  ;;  %18973 = vmatprep.mubr.msk.f32.mxu1 %vm20263_vm0, %v20259_v25  ;;  %v9585_v0 = vsel %vm22536_vm15, %v9579_v42, 0 }
 0xf26   : > { %18976 = vmatprep.subr.mxu1 %v20259_v25  ;;  %v9653_v32 = vand.u32 4294901760, %v9585_v0 }
 0xf28   : > { %18974 = vmatmul.mubr.f32.vlgmr.msra.gmra.mrb[42].mxu1 %v21760_v40 }
 0xf29   : > { %18977 = vmatpush3.msra.mxu1 %v8746_v48  ;;  %18978 = vmatprep.mubr.msk.f32.mxu1 %vm20263_vm0, %v20259_v25  ;;  %v9572_v48 = vpop.permute.xlu1 %9571 }
 0xf2a   : > { %18986 = vmatprep.subr.mxu1 %v20259_v25 }
 0xf2c   : > { %18979 = vmatmul.mubr.f32.vlgmr.msra.gmra.mrb[44].mxu1 %v21763_v5 }
 0xf2d   : > { %18987 = vmatpush3.msra.mxu1 %v8747_v56  ;;  %18988 = vmatprep.mubr.msk.f32.mxu1 %vm20263_vm0, %v20259_v25 }
 0xf2e   : > { %18996 = vmatprep.subr.mxu1 %v20259_v25 }
 0xf30   : > { %18989 = vmatmul.mubr.f32.vlgmr.msra.gmra.mrb[46].mxu1 %v21760_v40 }
 0xf31   : > { %18997 = vmatpush3.msra.mxu1 %v21782_v15  ;;  %18998 = vmatprep.mubr.msk.f32.mxu1 %vm20263_vm0, %v20259_v25 }
 0xf32   : > { %19006 = vmatprep.subr.mxu1 %v20259_v25 }
 0xf34   : > { %18999 = vmatmul.mubr.f32.vlgmr.msra.gmra.mrb[48].mxu1 %v9191_v9  ;;  %v9654_v9 = vsub.f32 %v9585_v0, %v9653_v32 }
 0xf35   : > { %19007 = vmatpush3.msra.mxu1 %v21786_v55  ;;  %19008 = vmatprep.mubr.msk.f32.mxu1 %vm20263_vm0, %v20259_v25 }
 0xf36   : > { %19016 = vmatprep.subr.mxu1 %v20259_v25 }
 0xf38   : > { %19009 = vmatmul.mubr.f32.vlgmr.msra.gmra.mrb[50].mxu1 %v21798_v3 }
 0xf39   : > { %19017 = vmatpush3.msra.mxu1 %v9200_v59  ;;  %19018 = vmatprep.mubr.msk.f32.mxu1 %vm20263_vm0, %v20259_v25 }
 0xf3a   : > { %19026 = vmatprep.subr.mxu1 %v20259_v25 }
 0xf3c   : > { %19019 = vmatmul.mubr.f32.vlgmr.msra.gmra.mrb[52].mxu1 %v21792_v1 }
 0xf3d   : > { %19028 = vmatprep.mubr.msk.f32.mxu1 %vm20263_vm0, %v20259_v25 }
 0xf67   : > { %v8964_v38 = vpop.f32.mrb[92].mxu0 }
 0xf68   : > { %v18985_v26 = vpop.f32.mrb[93].mxu0 }
 0xf69   : > { %v9655_v26 = vand.u32 4294901760, %v9654_v9 }
 0xf6b   : > { %v9110_v17 = vpop.f32.mrb[94].mxu0 }
 0xf6c   : > { %v18995_v50 = vpop.f32.mrb[95].mxu0 }
 0xf6d   : > { %v9656_v50 = vsub.f32 %v9654_v9, %v9655_v26 }
 0xfda   : > { %v8291_v4 = vpop.f32.mrb[28].mxu1 }
 0xfdb   : > { %v18940_v20 = vpop.f32.mrb[29].mxu1 }
 0xfe2   : > { %v8367_v23 = vpop.f32.mrb[30].mxu1 }
 0xfe3   : > { %v8368_v36 = vadd.f32 %v8367_v23, %v8291_v4  ;;  %v18945_v19 = vpop.f32.mrb[31].mxu1  ;;  %v9269_v51 = vpop.f32.mrb[96].mxu0  ;;  %v9657_v23 = vand.u32 4294901760, %v9656_v50 }
 0xfe4   : > { %v19005_v46 = vpop.f32.mrb[97].mxu0 }
 0xfe7   : > { %v8441_v16 = vpop.f32.mrb[32].mxu1  ;;  %v9417_v49 = vpop.f32.mrb[98].mxu0 }
 0xfe8   : > { %v8442_v52 = vadd.f32 %v8441_v16, %v8368_v36  ;;  %v18950_v22 = vpop.f32.mrb[33].mxu1  ;;  %v19015_v13 = vpop.f32.mrb[99].mxu0  ;;  %v10482_v16 = vld [vmem:[#allocation5 + $0xd0] sm:$0xff] }
 0xfe9   : > { %v10487_v22 = vsel %vm22537_vm11, %v10482_v16, 0 }
 0xfeb   : > { %v8515_v21 = vpop.f32.mrb[34].mxu1  ;;  %v9563_v6 = vpop.f32.mrb[100].mxu0 }
 0xfec   : > { %v8516_v28 = vadd.f32 %v8515_v21, %v8442_v52  ;;  %v18955_v33 = vpop.f32.mrb[35].mxu1  ;;  %v19025_v7 = vpop.f32.mrb[101].mxu0 }
 0xfed   : > { %v21887_v33 = vand.u32 4294901760, %v10487_v22 }
 0xfef   : > { %v8589_v29 = vpop.f32.mrb[36].mxu1 }
 0xff0   : > { %v8590_v40 = vadd.f32 %v8589_v29, %v8516_v28  ;;  %v18960_v5 = vpop.f32.mrb[37].mxu1 }
 0xff1   : > { %v10556_v5 = vsub.f32 %v10487_v22, %v21887_v33 }
 0xff3   : > { %v8661_v24 = vpop.f32.mrb[38].mxu1 }
 0xff4   : > { %v8662_v37 = vadd.f32 %v8661_v24, %v8590_v40  ;;  %v18965_v43 = vpop.f32.mrb[39].mxu1 }
 0xff5   : > { %v10557_v43 = vand.u32 4294901760, %v10556_v5 }
 0xff7   : > { %v8740_v44 = vpop.f32.mrb[40].mxu1 }
 0xff8   : > { %v8741_v47 = vadd.f32 %v8740_v44, %v8662_v37  ;;  %v18970_v27 = vpop.f32.mrb[41].mxu1 }
 0xff9   : > { %v10558_v27 = vsub.f32 %v10556_v5, %v10557_v43 }
 0xffb   : > { %v8816_v35 = vpop.f32.mrb[42].mxu1 }
 0xffc   : > { %v8817_v60 = vadd.f32 %v8816_v35, %v8741_v47  ;;  %v18975_v11 = vpop.f32.mrb[43].mxu1 }
 0xfff   : > { %v8890_v34 = vpop.f32.mrb[44].mxu1 }
0x1000   : > { %v8891_v41 = vadd.f32 %v8890_v34, %v8817_v60  ;;  %v18980_v39 = vpop.f32.mrb[45].mxu1  ;;  %v10559_v60 = vand.u32 4294901760, %v10558_v27 }
0x1002   : > { %v8965_v45 = vadd.f32 %v8964_v38, %v8891_v41  ;;  %v9578_v38 = vld [vmem:[#allocation5 + $0xc0] sm:$0xff] }
0x1003   : > { %v9038_v53 = vpop.f32.mrb[46].mxu1  ;;  %v10944_v41 = vld [vmem:[#allocation5 + $0x140] sm:$0x1f] }
0x1004   : > { %v9039_v2 = vadd.f32 %v9038_v53, %v8965_v45  ;;  %v18990_v15 = vpop.f32.mrb[47].mxu1  ;;  %v10951_v39 = vsel %vm10949_vm14, %v10944_v41, 0 }
0x1005   : > { %v21948_v45 = vand.u32 4294901760, %v10951_v39 }
0x1006   : > { %v9111_v57 = vadd.f32 %v9110_v17, %v9039_v2  ;;  %v10034_v17 = vsel %vm22525_vm2, %v9578_v38, 0 }
0x1007   : > { %v9193_v61 = vpop.f32.mrb[48].mxu1  ;;  %v21870_v4 = vand.u32 4294901760, %v10034_v17 }
0x1008   : > { %v9270_v55 = vadd.f32 %v9269_v51, %v9193_v61  ;;  %v19000_v58 = vpop.f32.mrb[49].mxu1 }
0x1009   : > { %v21873_v19 = vsub.f32 %v10034_v17, %v21870_v4 }
0x100b   : > { %v9343_v59 = vpop.f32.mrb[50].mxu1  ;;  %v10104_v52 = vand.u32 4294901760, %v21873_v19 }
0x100c   : > { %v9344_v62 = vadd.f32 %v9343_v59, %v9270_v55  ;;  %v19010_v1 = vpop.f32.mrb[51].mxu1 }
0x100d   : > { %v10105_v28 = vsub.f32 %v21873_v19, %v10104_v52 }
0x100e   : > { %v9418_v14 = vadd.f32 %v9417_v49, %v9344_v62 }
0x100f   : > { %v9491_v18 = vpop.f32.mrb[52].mxu1  ;;  %v10106_v40 = vand.u32 4294901760, %v10105_v28 }
0x1010   : > { %v9492_v30 = vadd.f32 %v9491_v18, %v9418_v14  ;;  %v19020_v31 = vpop.f32.mrb[53].mxu1 }
0x1012   : > { %v9564_v3 = vadd.f32 %v9563_v6, %v9492_v30 }
0x1014   : > { %v9567_v63 = vadd.f32 %v9564_v3, %v9111_v57 }
0x1016   : > { %v9574_v56 = vadd.f32 %v9572_v48, %v9567_v63 }
0x1018   : > { %v9575_v10 = vmax.f32 %v9574_v56, 0.0 }
0x101a   : > { %9577 = vst.msk [vmem:[%s21309_s22 + $0x18] sm:$0xff] %vm9576_vm10, %v9575_v10  ;;  %10483 = vrot.lane.b32.xlu1 %v9575_v10, %s20258_s17  ;;  %9581 = vrot.lane.b32.xlu0 %v9575_v10, %s20257_s15  ;;  %v21875_v46 = vand.u32 4294901760, %v9575_v10  ;;  %vm14580_vm10 = vcmask 130048  }
0x101c   : > { %v10114_v21 = vsub.f32 %v9575_v10, %v21875_v46 }
0x101e   : > { %10939 = vperm.xlu0 %20120, %v10936_v12   ;;  %v10115_v7 = vand.u32 4294901760, %v10114_v21 }
0x1020   : > { %v10116_v37 = vsub.f32 %v10114_v21, %v10115_v7 }
0x1022   : > { %v10117_v47 = vand.u32 4294901760, %v10116_v37 }
0x108c   : > { %v9582_v20 = vpop.permute.xlu0 %9581  ;;  %v10484_v29 = vpop.permute.xlu1 %10483 }
0x108d   : > { %v9588_v36 = vand.u32 4294901760, %v9582_v20  ;;  %v10490_v24 = vand.u32 4294901760, %v10484_v29 }
0x108f   : > { %v9665_v51 = vsub.f32 %v9582_v20, %v9588_v36  ;;  %19027 = vmatpush3.msra.mxu1 %v9588_v36  ;;  %v10567_v44 = vsub.f32 %v10484_v29, %v10490_v24 }
0x1090   : > { %19029 = vmatmul.mubr.f32.vlgmr.msra.gmra.mrb[54].mxu1 %v9657_v23  ;;  %19036 = vmatprep.subr.mxu1 %v20259_v25 }
0x1091   : > { %v9666_v49 = vand.u32 4294901760, %v9665_v51  ;;  %19037 = vmatpush3.msra.mxu1 %v9665_v51  ;;  %19038 = vmatprep.mubr.msk.f32.mxu1 %vm20263_vm0, %v20259_v25  ;;  %v10568_v35 = vand.u32 4294901760, %v10567_v44 }
0x1092   : > { %19046 = vmatprep.subr.mxu1 %v20259_v25 }
0x1093   : > { %v9667_v13 = vsub.f32 %v9665_v51, %v9666_v49  ;;  %v10569_v11 = vsub.f32 %v10567_v44, %v10568_v35 }
0x1094   : > { %19039 = vmatmul.mubr.f32.vlgmr.msra.gmra.mrb[56].mxu1 %v9654_v9 }
0x1095   : > { %v9668_v6 = vand.u32 4294901760, %v9667_v13  ;;  %19047 = vmatpush3.msra.mxu1 %v9666_v49  ;;  %19048 = vmatprep.mubr.msk.f32.mxu1 %vm20263_vm0, %v20259_v25  ;;  %v10570_v34 = vand.u32 4294901760, %v10569_v11 }
0x1096   : > { %19056 = vmatprep.subr.mxu1 %v20259_v25 }
0x1097   : > { %19032 = vmatpush3.msra.mxu0 %v9668_v6 }
0x1098   : > { %19034 = vmatmul.mubr.f32.vlgmr.msra.gmra.mrb[102].mxu0 %v9653_v32  ;;  %19041 = vmatprep.subr.mxu0 %v20259_v25 }
0x1099   : > { %19049 = vmatmul.mubr.f32.vlgmr.msra.gmra.mrb[58].mxu1 %v9653_v32  ;;  %19042 = vmatpush3.msra.mxu0 %v9588_v36 }
0x109a   : > { %19057 = vmatpush3.msra.mxu1 %v21875_v46  ;;  %19043 = vmatprep.mubr.msk.f32.mxu0 %vm20263_vm0, %v20259_v25 }
0x109b   : > { %19051 = vmatprep.subr.mxu0 %v20259_v25  ;;  %19058 = vmatprep.mubr.msk.f32.mxu1 %vm20263_vm0, %v20259_v25 }
0x109c   : > { %19066 = vmatprep.subr.mxu1 %v20259_v25  ;;  %19044 = vmatmul.mubr.f32.vlgmr.msra.gmra.mrb[104].mxu0 %v9655_v26 }
0x109d   : > { %19052 = vmatpush3.msra.mxu0 %v9588_v36  ;;  %19059 = vmatmul.mubr.f32.vlgmr.msra.gmra.mrb[60].mxu1 %v10106_v40  ;;  %v10940_v27 = vpop.permute.xlu0 %10939 }
0x109e   : > { %19067 = vmatpush3.msra.mxu1 %v10114_v21  ;;  %19053 = vmatprep.mubr.msk.f32.mxu0 %vm20263_vm0, %v20259_v25 }
0x109f   : > { %19061 = vmatprep.subr.mxu0 %v20259_v25  ;;  %19068 = vmatprep.mubr.msk.f32.mxu1 %vm20263_vm0, %v20259_v25 }
0x10a0   : > { %19076 = vmatprep.subr.mxu1 %v20259_v25  ;;  %19054 = vmatmul.mubr.f32.vlgmr.msra.gmra.mrb[106].mxu0 %v9653_v32 }
0x10a1   : > { %19062 = vmatpush3.msra.mxu0 %v10117_v47  ;;  %19069 = vmatmul.mubr.f32.vlgmr.msra.gmra.mrb[62].mxu1 %v21873_v19 }
0x10a2   : > { %19077 = vmatpush3.msra.mxu1 %v10115_v7  ;;  %19063 = vmatprep.mubr.msk.f32.mxu0 %vm20263_vm0, %v20259_v25 }
0x10a3   : > { %19071 = vmatprep.subr.mxu0 %v20259_v25  ;;  %19078 = vmatprep.mubr.msk.f32.mxu1 %vm20263_vm0, %v20259_v25 }
0x10a4   : > { %19086 = vmatprep.subr.mxu1 %v20259_v25  ;;  %19064 = vmatmul.mubr.f32.vlgmr.msra.gmra.mrb[108].mxu0 %v21870_v4 }
0x10a5   : > { %19072 = vmatpush3.msra.mxu0 %v21875_v46  ;;  %19079 = vmatmul.mubr.f32.vlgmr.msra.gmra.mrb[64].mxu1 %v21870_v4 }
0x10a6   : > { %19087 = vmatpush3.msra.mxu1 %v10490_v24  ;;  %19073 = vmatprep.mubr.msk.f32.mxu0 %vm20263_vm0, %v20259_v25 }
0x10a7   : > { %19081 = vmatprep.subr.mxu0 %v20259_v25  ;;  %19088 = vmatprep.mubr.msk.f32.mxu1 %vm20263_vm0, %v20259_v25 }
0x10a8   : > { %19096 = vmatprep.subr.mxu1 %v20259_v25  ;;  %19074 = vmatmul.mubr.f32.vlgmr.msra.gmra.mrb[110].mxu0 %v10104_v52 }
0x10a9   : > { %19082 = vmatpush3.msra.mxu0 %v21875_v46  ;;  %19089 = vmatmul.mubr.f32.vlgmr.msra.gmra.mrb[66].mxu1 %v10559_v60  ;;  %v11031_v60 = vsub.f32 %v10951_v39, %v21948_v45  ;;  %v11405_v39 = vld [vmem:[#allocation5 + $0xe0] sm:$0xff] }
0x10aa   : > { %19097 = vmatpush3.msra.mxu1 %v10567_v44  ;;  %19083 = vmatprep.mubr.msk.f32.mxu0 %vm20263_vm0, %v20259_v25 }
0x10ab   : > { %19091 = vmatprep.subr.mxu0 %v20259_v25  ;;  %19098 = vmatprep.mubr.msk.f32.mxu1 %vm20263_vm0, %v20259_v25  ;;  %v11032_v41 = vand.u32 4294901760, %v11031_v60 }
0x10ac   : > { %19106 = vmatprep.subr.mxu1 %v20259_v25  ;;  %19084 = vmatmul.mubr.f32.vlgmr.msra.gmra.mrb[112].mxu0 %v21870_v4 }
0x10ad   : > { %19092 = vmatpush3.msra.mxu0 %v10570_v34  ;;  %19099 = vmatmul.mubr.f32.vlgmr.msra.gmra.mrb[68].mxu1 %v10556_v5 }
0x10ae   : > { %19107 = vmatpush3.msra.mxu1 %v10568_v35  ;;  %19093 = vmatprep.mubr.msk.f32.mxu0 %vm20263_vm0, %v20259_v25 }
0x10af   : > { %19101 = vmatprep.subr.mxu0 %v20259_v25  ;;  %19108 = vmatprep.mubr.msk.f32.mxu1 %vm20263_vm0, %v20259_v25 }
0x10b0   : > { %19094 = vmatmul.mubr.f32.vlgmr.msra.gmra.mrb[114].mxu0 %v21887_v33  ;;  %19116 = vmatprep.subr.mxu1 %v20259_v25 }
0x10b1   : > { %19102 = vmatpush3.msra.mxu0 %v10490_v24  ;;  %19103 = vmatprep.mubr.msk.f32.mxu0 %vm20263_vm0, %v20259_v25 }
0x10b2   : > { %19111 = vmatprep.subr.mxu0 %v20259_v25  ;;  %19109 = vmatmul.mubr.f32.vlgmr.msra.gmra.mrb[70].mxu1 %v21887_v33 }
0x10b3   : > { %19118 = vmatprep.mubr.msk.f32.mxu1 %vm20263_vm0, %v20259_v25  ;;  %19117 = vmatpush3.msra.mxu1 %v21948_v45 }
0x10b4   : > { %19104 = vmatmul.mubr.f32.vlgmr.msra.gmra.mrb[116].mxu0 %v10557_v43  ;;  %19121 = vmatprep.subr.mxu1 %v20259_v25 }
0x10b5   : > { %19112 = vmatpush3.msra.mxu0 %v10490_v24  ;;  %19113 = vmatprep.mubr.msk.f32.mxu0 %vm20263_vm0, %v20259_v25 }
0x10b6   : > { %19146 = vmatprep.subr.mxu0 %v20259_v25 }
0x10b8   : > { %19114 = vmatmul.mubr.f32.vlgmr.msra.gmra.mrb[118].mxu0 %v21887_v33 }
0x10b9   : > { %19148 = vmatprep.mubr.msk.f32.mxu0 %vm20263_vm0, %v20259_v25 }
0x1163   : > { %v9659_v53 = vpop.f32.mrb[54].mxu1 }
0x1164   : > { %v19030_v2 = vpop.f32.mrb[55].mxu1 }
0x1167   : > { %v9809_v15 = vpop.f32.mrb[56].mxu1 }
0x1168   : > { %v19040_v57 = vpop.f32.mrb[57].mxu1 }
0x116b   : > { %v9735_v61 = vpop.f32.mrb[102].mxu0 }
0x116c   : > { %v9736_v55 = vadd.f32 %v9735_v61, %v9659_v53  ;;  %v19035_v58 = vpop.f32.mrb[103].mxu0  ;;  %v9957_v59 = vpop.f32.mrb[58].mxu1 }
0x116d   : > { %v19050_v62 = vpop.f32.mrb[59].mxu1 }
0x116e   : > { %v9810_v1 = vadd.f32 %v9809_v15, %v9736_v55  ;;  %v11033_v15 = vsub.f32 %v11031_v60, %v11032_v41 }
0x116f   : > { %v9883_v14 = vpop.f32.mrb[104].mxu0 }
0x1170   : > { %v9884_v18 = vadd.f32 %v9883_v14, %v9810_v1  ;;  %v19045_v30 = vpop.f32.mrb[105].mxu0  ;;  %v10108_v31 = vpop.f32.mrb[60].mxu1  ;;  %v11034_v55 = vand.u32 4294901760, %v11033_v15 }
0x1171   : > { %v19060_v3 = vpop.f32.mrb[61].mxu1 }
0x1172   : > { %v9958_v63 = vadd.f32 %v9957_v59, %v9884_v18  ;;  %v11861_v59 = vsel %vm22538_vm13, %v11405_v39, 0 }
0x1173   : > { %v10029_v48 = vpop.f32.mrb[106].mxu0  ;;  %v21973_v62 = vand.u32 4294901760, %v11861_v59 }
0x1174   : > { %v10030_v56 = vadd.f32 %v10029_v48, %v9958_v63  ;;  %v19055_v10 = vpop.f32.mrb[107].mxu0  ;;  %v10258_v12 = vpop.f32.mrb[62].mxu1 }
0x1175   : > { %v19070_v42 = vpop.f32.mrb[63].mxu1  ;;  %v21976_v1 = vsub.f32 %v11861_v59, %v21973_v62 }
0x1176   : > { %v10109_v0 = vadd.f32 %v10108_v31, %v10030_v56  ;;  %v11406_v56 = vld [vmem:[#allocation5 + $0xe8] sm:$0xff]  ;;  %v14122_v42 = vld [vmem:[#allocation5 + $0xf8] sm:$0xff] }
0x1177   : > { %v10184_v32 = vpop.f32.mrb[108].mxu0 }
0x1178   : > { %v10185_v9 = vadd.f32 %v10184_v32, %v10109_v0  ;;  %v19065_v38 = vpop.f32.mrb[109].mxu0  ;;  %v10406_v26 = vpop.f32.mrb[64].mxu1  ;;  %v11412_v32 = vsel %vm22540_vm4, %v11406_v56, 0 }
0x1179   : > { %v19080_v17 = vpop.f32.mrb[65].mxu1  ;;  %v22013_v38 = vand.u32 4294901760, %v11412_v32 }
0x117a   : > { %v10259_v50 = vadd.f32 %v10258_v12, %v10185_v9  ;;  %v12309_v12 = vld [vmem:[#allocation5 + $0xf0] sm:$0xff] }
0x117b   : > { %v10332_v4 = vpop.f32.mrb[110].mxu0  ;;  %v12314_v0 = vsel %vm22539_vm6, %v12309_v12, 0 }
0x117c   : > { %v10333_v20 = vadd.f32 %v10332_v4, %v10259_v50  ;;  %v19075_v23 = vpop.f32.mrb[111].mxu0  ;;  %v10561_v36 = vpop.f32.mrb[66].mxu1  ;;  %v22011_v9 = vand.u32 4294901760, %v12314_v0 }
0x117d   : > { %v19090_v19 = vpop.f32.mrb[67].mxu1 }
0x117e   : > { %v10407_v51 = vadd.f32 %v10406_v26, %v10333_v20  ;;  %v22016_v26 = vsub.f32 %v12314_v0, %v22011_v9 }
0x117f   : > { %v10478_v46 = vpop.f32.mrb[112].mxu0 }
0x1180   : > { %v10479_v16 = vadd.f32 %v10478_v46, %v10407_v51  ;;  %v19085_v49 = vpop.f32.mrb[113].mxu0  ;;  %v10711_v52 = vpop.f32.mrb[68].mxu1  ;;  %v12384_v17 = vand.u32 4294901760, %v22016_v26 }
0x1181   : > { %v19100_v22 = vpop.f32.mrb[69].mxu1 }
0x1182   : > { %v12385_v4 = vsub.f32 %v22016_v26, %v12384_v17 }
0x1183   : > { %v10637_v13 = vpop.f32.mrb[114].mxu0 }
0x1184   : > { %v10638_v21 = vadd.f32 %v10637_v13, %v10561_v36  ;;  %v19095_v6 = vpop.f32.mrb[115].mxu0  ;;  %v12386_v19 = vand.u32 4294901760, %v12385_v4  ;;  %v22247_v4 = vld [vmem:[#allocation5 + $0x148] sm:$0xff] }
0x1185   : > { %v10859_v28 = vpop.f32.mrb[70].mxu1 }
0x1186   : > { %v10712_v33 = vadd.f32 %v10711_v52, %v10638_v21  ;;  %v19110_v7 = vpop.f32.mrb[71].mxu1 }
0x1187   : > { %v10785_v29 = vpop.f32.mrb[116].mxu0 }
0x1188   : > { %v10786_v40 = vadd.f32 %v10785_v29, %v10712_v33  ;;  %v19105_v5 = vpop.f32.mrb[117].mxu0 }
0x118a   : > { %v10860_v24 = vadd.f32 %v10859_v28, %v10786_v40 }
0x118b   : > { %v10931_v37 = vpop.f32.mrb[118].mxu0 }
0x118c   : > { %v10932_v43 = vadd.f32 %v10931_v37, %v10860_v24  ;;  %v19115_v44 = vpop.f32.mrb[119].mxu0 }
0x118e   : > { %v10935_v47 = vadd.f32 %v10932_v43, %v10479_v16 }
0x1190   : > { %v10942_v35 = vadd.f32 %v10940_v27, %v10935_v47 }
0x1192   : > { %v10943_v11 = vmax.f32 %v10942_v35, 0.0 }
0x1194   : > { %v10947_v34 = vsel %vm10945_vm1, %v10943_v11, 0 }
0x1195   : > { %v11019_v53 = vand.u32 4294901760, %v10947_v34 }
0x1197   : > { %v11020_v2 = vsub.f32 %v10947_v34, %v11019_v53 }
0x1199   : > { %v11021_v57 = vand.u32 4294901760, %v11020_v2 }
0x119b   : > { %v11022_v61 = vsub.f32 %v11020_v2, %v11021_v57 }
0x119d   : > { %v11023_v58 = vand.u32 4294901760, %v11022_v61 }
0x119f   : > { %19119 = vmatmul.mubr.f32.vlgmr.msra.gmra.mrb[72].mxu1 %v11023_v58 }
0x11a0   : > { %19122 = vmatpush3.msra.mxu1 %v11034_v55  ;;  %19123 = vmatprep.mubr.msk.f32.mxu1 %vm20263_vm0, %v20259_v25 }
0x11a1   : > { %19126 = vmatprep.subr.mxu1 %v20259_v25 }
0x11a7   : > { %19124 = vmatmul.mubr.f32.vlgmr.msra.gmra.mrb[72].mxu1 %v11019_v53 }
0x11a8   : > { %19127 = vmatpush3.msra.mxu1 %v11031_v60  ;;  %19128 = vmatprep.mubr.msk.f32.mxu1 %vm20263_vm0, %v20259_v25 }
0x11a9   : > { %19131 = vmatprep.subr.mxu1 %v20259_v25 }
0x11af   : > { %19129 = vmatmul.mubr.f32.vlgmr.msra.gmra.mrb[72].mxu1 %v11020_v2 }
0x11b0   : > { %19132 = vmatpush3.msra.mxu1 %v21948_v45  ;;  %19133 = vmatprep.mubr.msk.f32.mxu1 %vm20263_vm0, %v20259_v25 }
0x11b1   : > { %19136 = vmatprep.subr.mxu1 %v20259_v25 }
0x11b7   : > { %19134 = vmatmul.mubr.f32.vlgmr.msra.gmra.mrb[72].mxu1 %v11021_v57 }
0x11b8   : > { %19137 = vmatpush3.msra.mxu1 %v11032_v41  ;;  %19138 = vmatprep.mubr.msk.f32.mxu1 %vm20263_vm0, %v20259_v25 }
0x11b9   : > { %19141 = vmatprep.subr.mxu1 %v20259_v25 }
0x11bf   : > { %19139 = vmatmul.mubr.f32.vlgmr.msra.gmra.mrb[72].mxu1 %v11019_v53 }
0x11c0   : > { %19142 = vmatpush3.msra.mxu1 %v21948_v45  ;;  %19143 = vmatprep.mubr.msk.f32.mxu1 %vm20263_vm0, %v20259_v25  ;;  %v11931_v45 = vand.u32 4294901760, %v21976_v1 }
0x11c1   : > { %19176 = vmatprep.subr.mxu1 %v20259_v25 }
0x11c2   : > { %v11932_v14 = vsub.f32 %v21976_v1, %v11931_v45 }
0x11c4   : > { %v11933_v30 = vand.u32 4294901760, %v11932_v14 }
0x11c7   : > { %19144 = vmatmul.mubr.f32.vlgmr.msra.gmra.mrb[72].mxu1 %v11019_v53 }
0x11c8   : > { %19178 = vmatprep.mubr.msk.f32.mxu1 %vm20263_vm0, %v20259_v25 }
0x129a   : > { %v11395_v18 = vpop.f32.mrb[72].mxu1 }
0x129b   : > { %12310 = vrot.lane.b32.xlu0 %v11395_v18, %s20258_s17  ;;  %11408 = vrot.lane.b32.xlu1 %v11395_v18, %s20257_s15  ;;  %v19145_v31 = vpop.f32.mrb[73].mxu1  ;;  %v21984_v3 = vand.u32 4294901760, %v11395_v18  ;;  %11400 = vst.msk [vmem:[%s21309_s22 + $0x20] sm:$0xff] %vm11399_vm8, %v11395_v18 }
0x129d   : > { %19177 = vmatpush3.msra.mxu1 %v21984_v3  ;;  %v11941_v63 = vsub.f32 %v11395_v18, %v21984_v3 }
0x129e   : > { %19179 = vmatmul.mubr.f32.vlgmr.msra.gmra.mrb[74].mxu1 %v11933_v30  ;;  %19186 = vmatprep.subr.mxu1 %v20259_v25 }
0x129f   : > { %11401 = vrot.lane.b32.xlu0 %v21624_v8, %s20264_s23  ;;  %12763 = vrot.lane.b32.xlu1 %v11405_v39, %s20265_s28  ;;  %v11942_v48 = vand.u32 4294901760, %v11941_v63 }
0x12a0   : > { %19187 = vmatpush3.msra.mxu1 %v11941_v63  ;;  %19188 = vmatprep.mubr.msk.f32.mxu1 %vm20263_vm0, %v20259_v25 }
0x12a1   : > { %19196 = vmatprep.subr.mxu1 %v20259_v25  ;;  %v21996_v10 = vsub.f32 %v11941_v63, %v11942_v48 }
0x12a2   : > { %19189 = vmatmul.mubr.f32.vlgmr.msra.gmra.mrb[76].mxu1 %v21976_v1 }
0x12a3   : > { %19197 = vmatpush3.msra.mxu1 %v11942_v48  ;;  %13216 = vrot.lane.b32.xlu0 %v21624_v8, %s20266_s30  ;;  %v11944_v39 = vand.u32 4294901760, %v21996_v10 }
0x12a4   : > { %13214 = vrot.lane.b32.xlu1 %v11406_v56, %s20265_s28  ;;  %19198 = vmatprep.mubr.msk.f32.mxu1 %vm20263_vm0, %v20259_v25 }
0x12a5   : > { %19206 = vmatprep.subr.mxu1 %v20259_v25 }
0x12a6   : > { %19199 = vmatmul.mubr.f32.vlgmr.msra.gmra.mrb[78].mxu1 %v21973_v62 }
0x12a7   : > { %13670 = vrot.lane.b32.xlu0 %v21624_v8, %s20267_s3  ;;  %19208 = vmatprep.mubr.msk.f32.mxu1 %vm20263_vm0, %v20259_v25  ;;  %v22019_v8 = vsub.f32 %v11412_v32, %v22013_v38 }
0x12a8   : > { %13668 = vrot.lane.b32.xlu1 %v12309_v12, %s20265_s28 }
0x12a9   : > { %v11482_v50 = vand.u32 4294901760, %v22019_v8 }
0x12ab   : > { %v11483_v20 = vsub.f32 %v22019_v8, %v11482_v50 }
0x12ac   : > { %14125 = vperm.xlu1 %20121, %v14122_v42  }
0x12ad   : > { %v11484_v16 = vand.u32 4294901760, %v11483_v20  ;;  %v22250_v20 = vand.u32 4294901760, %v22247_v4 }
0x130d   : > { %v12311_v23 = vpop.permute.xlu0 %12310  ;;  %v11409_v36 = vpop.permute.xlu1 %11408 }
0x130e   : > { %v22029_v51 = vand.u32 4294901760, %v12311_v23  ;;  %v22031_v46 = vand.u32 4294901760, %v11409_v36 }
0x1310   : > { %v22034_v49 = vsub.f32 %v12311_v23, %v22029_v51  ;;  %v11492_v52 = vsub.f32 %v11409_v36, %v22031_v46  ;;  %19147 = vmatpush3.msra.mxu0 %v22031_v46  ;;  %19207 = vmatpush3.msra.mxu1 %v22029_v51 }
0x1311   : > { %v11402_v22 = vpop.permute.xlu0 %11401  ;;  %v12764_v13 = vpop.permute.xlu1 %12763  ;;  %19209 = vmatmul.mubr.f32.vlgmr.msra.gmra.mrb[80].mxu1 %v12386_v19  ;;  %19216 = vmatprep.subr.mxu1 %v20259_v25 }
0x1312   : > { %v12395_v21 = vand.u32 4294901760, %v22034_v49  ;;  %v11493_v6 = vand.u32 4294901760, %v11492_v52  ;;  %11404 = vst.msk [vmem:[%s21309_s22 + $0x28] sm:$0xff] %vm11399_vm8, %v11402_v22  ;;  %v12765_v28 = vsel %vm22541_vm12, %v12764_v13, 0  ;;  %19217 = vmatpush3.msra.mxu1 %v22034_v49  ;;  %19149 = vmatmul.mubr.f32.vlgmr.msra.gmra.mrb[120].mxu0 %v11484_v16  ;;  %v22066_v44 = vand.u32 4294901760, %v11402_v22 }
0x1313   : > { %v22045_v33 = vand.u32 4294901760, %v12765_v28  ;;  %19218 = vmatprep.mubr.msk.f32.mxu1 %vm20263_vm0, %v20259_v25  ;;  %19226 = vmatprep.subr.mxu1 %v20259_v25 }
0x1314   : > { %v11494_v7 = vsub.f32 %v11492_v52, %v11493_v6  ;;  %19151 = vmatprep.subr.mxu0 %v20259_v25  ;;  %19153 = vmatprep.mubr.msk.f32.mxu0 %vm20263_vm0, %v20259_v25  ;;  %v22084_v60 = vsub.f32 %v11402_v22, %v22066_v44  ;;  %v12396_v63 = vsub.f32 %v22034_v49, %v12395_v21 }
0x1315   : > { %v22054_v29 = vsub.f32 %v12765_v28, %v22045_v33  ;;  %19219 = vmatmul.mubr.f32.vlgmr.msra.gmra.mrb[82].mxu1 %v22016_v26  ;;  %v13217_v2 = vpop.permute.xlu0 %13216 }
0x1316   : > { %v11495_v40 = vand.u32 4294901760, %v11494_v7  ;;  %19227 = vmatpush3.msra.mxu1 %v12395_v21  ;;  %19228 = vmatprep.mubr.msk.f32.mxu1 %vm20263_vm0, %v20259_v25  ;;  %v13215_v5 = vpop.permute.xlu1 %13214  ;;  %v12846_v53 = vand.u32 4294901760, %v22084_v60  ;;  %v22114_v61 = vand.u32 4294901760, %v13217_v2  ;;  %v12397_v10 = vand.u32 4294901760, %v12396_v63 }
0x1317   : > { %v12835_v24 = vand.u32 4294901760, %v22054_v29  ;;  %19236 = vmatprep.subr.mxu1 %v20259_v25  ;;  %v13219_v37 = vsel %vm22542_vm3, %v13215_v5, 0  ;;  %vm17605_vm3 = vcmask 113664  }
0x1318   : > { %19152 = vmatpush3.msra.mxu0 %v11495_v40  ;;  %v22064_v43 = vand.u32 4294901760, %v13219_v37  ;;  %v22131_v59 = vsub.f32 %v13217_v2, %v22114_v61 }
0x1319   : > { %v12836_v47 = vsub.f32 %v22054_v29, %v12835_v24  ;;  %19154 = vmatmul.mubr.f32.vlgmr.msra.gmra.mrb[122].mxu0 %v22013_v38  ;;  %19156 = vmatprep.subr.mxu0 %v20259_v25  ;;  %v13671_v30 = vpop.permute.xlu0 %13670 }
0x131a   : > { %19229 = vmatmul.mubr.f32.vlgmr.msra.gmra.mrb[84].mxu1 %v22011_v9  ;;  %19157 = vmatpush3.msra.mxu0 %v11492_v52  ;;  %v22075_v27 = vsub.f32 %v13219_v37, %v22064_v43  ;;  %v13669_v34 = vpop.permute.xlu1 %13668  ;;  %v13300_v18 = vand.u32 4294901760, %v22131_v59  ;;  %v22158_v48 = vand.u32 4294901760, %v13671_v30 }
0x131b   : > { %v12837_v35 = vand.u32 4294901760, %v12836_v47  ;;  %19237 = vmatpush3.msra.mxu1 %v22066_v44  ;;  %19158 = vmatprep.mubr.msk.f32.mxu0 %vm20263_vm0, %v20259_v25  ;;  %v13673_v41 = vsel %vm22543_vm5, %v13669_v34, 0 }
0x131c   : > { %19161 = vmatprep.subr.mxu0 %v20259_v25  ;;  %19238 = vmatprep.mubr.msk.f32.mxu1 %vm20263_vm0, %v20259_v25  ;;  %v13289_v11 = vand.u32 4294901760, %v22075_v27  ;;  %v22105_v57 = vand.u32 4294901760, %v13673_v41  ;;  %v13753_v12 = vsub.f32 %v13671_v30, %v22158_v48 }
0x131d   : > { %19246 = vmatprep.subr.mxu1 %v20259_v25  ;;  %19159 = vmatmul.mubr.f32.vlgmr.msra.gmra.mrb[124].mxu0 %v22019_v8 }
0x131e   : > { %19162 = vmatpush3.msra.mxu0 %v22031_v46  ;;  %19239 = vmatmul.mubr.f32.vlgmr.msra.gmra.mrb[86].mxu1 %v12837_v35  ;;  %v13290_v15 = vsub.f32 %v22075_v27, %v13289_v11  ;;  %v22121_v58 = vsub.f32 %v13673_v41, %v22105_v57  ;;  %v13754_v1 = vand.u32 4294901760, %v13753_v12 }
0x131f   : > { %19247 = vmatpush3.msra.mxu1 %v22084_v60  ;;  %19163 = vmatprep.mubr.msk.f32.mxu0 %vm20263_vm0, %v20259_v25 }
0x1320   : > { %19166 = vmatprep.subr.mxu0 %v20259_v25  ;;  %19248 = vmatprep.mubr.msk.f32.mxu1 %vm20263_vm0, %v20259_v25  ;;  %v13291_v55 = vand.u32 4294901760, %v13290_v15  ;;  %v13743_v14 = vand.u32 4294901760, %v22121_v58  ;;  %v13755_v0 = vsub.f32 %v13753_v12, %v13754_v1 }
0x1321   : > { %19256 = vmatprep.subr.mxu1 %v20259_v25  ;;  %19164 = vmatmul.mubr.f32.vlgmr.msra.gmra.mrb[126].mxu0 %v11482_v50 }
0x1322   : > { %19167 = vmatpush3.msra.mxu0 %v11493_v6  ;;  %19249 = vmatmul.mubr.f32.vlgmr.msra.gmra.mrb[88].mxu1 %v22054_v29  ;;  %v13744_v31 = vsub.f32 %v22121_v58, %v13743_v14  ;;  %v13756_v32 = vand.u32 4294901760, %v13755_v0 }
0x1323   : > { %19257 = vmatpush3.msra.mxu1 %v12846_v53  ;;  %19168 = vmatprep.mubr.msk.f32.mxu0 %vm20263_vm0, %v20259_v25 }
0x1324   : > { %19171 = vmatprep.subr.mxu0 %v20259_v25  ;;  %19258 = vmatprep.mubr.msk.f32.mxu1 %vm20263_vm0, %v20259_v25  ;;  %v13745_v56 = vand.u32 4294901760, %v13744_v31 }
0x1325   : > { %19266 = vmatprep.subr.mxu1 %v20259_v25  ;;  %19169 = vmatmul.mubr.f32.vlgmr.msra.gmra.mrb[128].mxu0 %v22013_v38 }
0x1326   : > { %19172 = vmatpush3.msra.mxu0 %v22031_v46  ;;  %19259 = vmatmul.mubr.f32.vlgmr.msra.gmra.mrb[90].mxu1 %v22045_v33 }
0x1327   : > { %19267 = vmatpush3.msra.mxu1 %v22114_v61  ;;  %19173 = vmatprep.mubr.msk.f32.mxu0 %vm20263_vm0, %v20259_v25 }
0x1328   : > { %19181 = vmatprep.subr.mxu0 %v20259_v25  ;;  %19268 = vmatprep.mubr.msk.f32.mxu1 %vm20263_vm0, %v20259_v25 }
0x1329   : > { %19276 = vmatprep.subr.mxu1 %v20259_v25  ;;  %19174 = vmatmul.mubr.f32.vlgmr.msra.gmra.mrb[130].mxu0 %v22013_v38 }
0x132a   : > { %19182 = vmatpush3.msra.mxu0 %v11944_v39  ;;  %19269 = vmatmul.mubr.f32.vlgmr.msra.gmra.mrb[92].mxu1 %v13291_v55 }
0x132b   : > { %19277 = vmatpush3.msra.mxu1 %v22131_v59  ;;  %19183 = vmatprep.mubr.msk.f32.mxu0 %vm20263_vm0, %v20259_v25 }
0x132c   : > { %19191 = vmatprep.subr.mxu0 %v20259_v25  ;;  %19278 = vmatprep.mubr.msk.f32.mxu1 %vm20263_vm0, %v20259_v25 }
0x132d   : > { %19286 = vmatprep.subr.mxu1 %v20259_v25  ;;  %19184 = vmatmul.mubr.f32.vlgmr.msra.gmra.mrb[132].mxu0 %v21973_v62 }
0x132e   : > { %19192 = vmatpush3.msra.mxu0 %v21984_v3  ;;  %19279 = vmatmul.mubr.f32.vlgmr.msra.gmra.mrb[94].mxu1 %v22075_v27 }
0x132f   : > { %19287 = vmatpush3.msra.mxu1 %v13300_v18  ;;  %19193 = vmatprep.mubr.msk.f32.mxu0 %vm20263_vm0, %v20259_v25 }
0x1330   : > { %19201 = vmatprep.subr.mxu0 %v20259_v25  ;;  %19288 = vmatprep.mubr.msk.f32.mxu1 %vm20263_vm0, %v20259_v25 }
0x1331   : > { %19296 = vmatprep.subr.mxu1 %v20259_v25  ;;  %19194 = vmatmul.mubr.f32.vlgmr.msra.gmra.mrb[134].mxu0 %v11931_v45 }
0x1332   : > { %19202 = vmatpush3.msra.mxu0 %v21984_v3  ;;  %19289 = vmatmul.mubr.f32.vlgmr.msra.gmra.mrb[96].mxu1 %v22064_v43  ;;  %v13301_v3 = vsub.f32 %v22131_v59, %v13300_v18 }
0x1333   : > { %19297 = vmatpush3.msra.mxu1 %v22158_v48  ;;  %19203 = vmatprep.mubr.msk.f32.mxu0 %vm20263_vm0, %v20259_v25 }
0x1334   : > { %19211 = vmatprep.subr.mxu0 %v20259_v25  ;;  %19298 = vmatprep.mubr.msk.f32.mxu1 %vm20263_vm0, %v20259_v25  ;;  %v13302_v42 = vand.u32 4294901760, %v13301_v3 }
0x1335   : > { %19306 = vmatprep.subr.mxu1 %v20259_v25  ;;  %19204 = vmatmul.mubr.f32.vlgmr.msra.gmra.mrb[136].mxu0 %v21973_v62  ;;  %v12847_v62 = vsub.f32 %v22084_v60, %v12846_v53 }
0x1336   : > { %19212 = vmatpush3.msra.mxu0 %v12397_v10  ;;  %19299 = vmatmul.mubr.f32.vlgmr.msra.gmra.mrb[98].mxu1 %v13745_v56 }
0x1337   : > { %19307 = vmatpush3.msra.mxu1 %v13753_v12  ;;  %19213 = vmatprep.mubr.msk.f32.mxu0 %vm20263_vm0, %v20259_v25  ;;  %v12848_v45 = vand.u32 4294901760, %v12847_v62 }
0x1338   : > { %19221 = vmatprep.subr.mxu0 %v20259_v25  ;;  %19308 = vmatprep.mubr.msk.f32.mxu1 %vm20263_vm0, %v20259_v25 }
0x1339   : > { %19316 = vmatprep.subr.mxu1 %v20259_v25  ;;  %19214 = vmatmul.mubr.f32.vlgmr.msra.gmra.mrb[138].mxu0 %v22011_v9 }
0x133a   : > { %19222 = vmatpush3.msra.mxu0 %v22029_v51  ;;  %19309 = vmatmul.mubr.f32.vlgmr.msra.gmra.mrb[100].mxu1 %v22121_v58 }
0x133b   : > { %19317 = vmatpush3.msra.mxu1 %v13754_v1  ;;  %19223 = vmatprep.mubr.msk.f32.mxu0 %vm20263_vm0, %v20259_v25 }
0x133c   : > { %19231 = vmatprep.subr.mxu0 %v20259_v25  ;;  %19318 = vmatprep.mubr.msk.f32.mxu1 %vm20263_vm0, %v20259_v25 }
0x133d   : > { %19224 = vmatmul.mubr.f32.vlgmr.msra.gmra.mrb[140].mxu0 %v12384_v17  ;;  %19326 = vmatprep.subr.mxu1 %v20259_v25 }
0x133e   : > { %19232 = vmatpush3.msra.mxu0 %v22029_v51  ;;  %19233 = vmatprep.mubr.msk.f32.mxu0 %vm20263_vm0, %v20259_v25 }
0x133f   : > { %19241 = vmatprep.subr.mxu0 %v20259_v25  ;;  %19319 = vmatmul.mubr.f32.vlgmr.msra.gmra.mrb[102].mxu1 %v22105_v57 }
0x1340   : > { %19328 = vmatprep.mubr.msk.f32.mxu1 %vm20263_vm0, %v20259_v25  ;;  %19327 = vmatpush3.msra.mxu1 %v22250_v20 }
0x1341   : > { %19234 = vmatmul.mubr.f32.vlgmr.msra.gmra.mrb[142].mxu0 %v22011_v9  ;;  %19331 = vmatprep.subr.mxu1 %v20259_v25 }
0x1342   : > { %19242 = vmatpush3.msra.mxu0 %v12848_v45  ;;  %19243 = vmatprep.mubr.msk.f32.mxu0 %vm20263_vm0, %v20259_v25 }
0x1343   : > { %19251 = vmatprep.subr.mxu0 %v20259_v25 }
0x1345   : > { %19244 = vmatmul.mubr.f32.vlgmr.msra.gmra.mrb[144].mxu0 %v22045_v33 }
0x1346   : > { %19252 = vmatpush3.msra.mxu0 %v22066_v44  ;;  %19253 = vmatprep.mubr.msk.f32.mxu0 %vm20263_vm0, %v20259_v25 }
0x1347   : > { %19261 = vmatprep.subr.mxu0 %v20259_v25 }
0x1349   : > { %19254 = vmatmul.mubr.f32.vlgmr.msra.gmra.mrb[146].mxu0 %v12835_v24 }
0x134a   : > { %19262 = vmatpush3.msra.mxu0 %v22066_v44  ;;  %19263 = vmatprep.mubr.msk.f32.mxu0 %vm20263_vm0, %v20259_v25 }
0x134b   : > { %19271 = vmatprep.subr.mxu0 %v20259_v25 }
0x134d   : > { %19264 = vmatmul.mubr.f32.vlgmr.msra.gmra.mrb[148].mxu0 %v22045_v33 }
0x134e   : > { %19272 = vmatpush3.msra.mxu0 %v13302_v42  ;;  %19273 = vmatprep.mubr.msk.f32.mxu0 %vm20263_vm0, %v20259_v25 }
0x134f   : > { %19281 = vmatprep.subr.mxu0 %v20259_v25 }
0x1351   : > { %19274 = vmatmul.mubr.f32.vlgmr.msra.gmra.mrb[150].mxu0 %v22064_v43 }
0x1352   : > { %19282 = vmatpush3.msra.mxu0 %v22114_v61  ;;  %19283 = vmatprep.mubr.msk.f32.mxu0 %vm20263_vm0, %v20259_v25 }
0x1353   : > { %19291 = vmatprep.subr.mxu0 %v20259_v25 }
0x1355   : > { %19284 = vmatmul.mubr.f32.vlgmr.msra.gmra.mrb[152].mxu0 %v13289_v11 }
0x1356   : > { %19292 = vmatpush3.msra.mxu0 %v22114_v61  ;;  %19293 = vmatprep.mubr.msk.f32.mxu0 %vm20263_vm0, %v20259_v25 }
0x1357   : > { %19301 = vmatprep.subr.mxu0 %v20259_v25 }
0x1359   : > { %19294 = vmatmul.mubr.f32.vlgmr.msra.gmra.mrb[154].mxu0 %v22064_v43 }
0x135a   : > { %19302 = vmatpush3.msra.mxu0 %v13756_v32  ;;  %19303 = vmatprep.mubr.msk.f32.mxu0 %vm20263_vm0, %v20259_v25 }
0x135b   : > { %19311 = vmatprep.subr.mxu0 %v20259_v25 }
0x135d   : > { %19304 = vmatmul.mubr.f32.vlgmr.msra.gmra.mrb[156].mxu0 %v22105_v57 }
0x135e   : > { %19312 = vmatpush3.msra.mxu0 %v22158_v48  ;;  %19313 = vmatprep.mubr.msk.f32.mxu0 %vm20263_vm0, %v20259_v25 }
0x135f   : > { %19321 = vmatprep.subr.mxu0 %v20259_v25 }
0x1361   : > { %19314 = vmatmul.mubr.f32.vlgmr.msra.gmra.mrb[158].mxu0 %v13743_v14 }
0x1362   : > { %19322 = vmatpush3.msra.mxu0 %v22158_v48  ;;  %19323 = vmatprep.mubr.msk.f32.mxu0 %vm20263_vm0, %v20259_v25 }
0x1365   : > { %19324 = vmatmul.mubr.f32.vlgmr.msra.gmra.mrb[160].mxu0 %v22105_v57 }
0x1371   : > { %v11935_v9 = vpop.f32.mrb[74].mxu1 }
0x1372   : > { %v19180_v38 = vpop.f32.mrb[75].mxu1 }
0x1375   : > { %v12085_v26 = vpop.f32.mrb[76].mxu1 }
0x1376   : > { %v19190_v8 = vpop.f32.mrb[77].mxu1 }
0x1379   : > { %v12233_v17 = vpop.f32.mrb[78].mxu1 }
0x137a   : > { %v19200_v50 = vpop.f32.mrb[79].mxu1 }
0x13e4   : > { %v12388_v23 = vpop.f32.mrb[80].mxu1 }
0x13e5   : > { %v11486_v36 = vpop.f32.mrb[120].mxu0  ;;  %v19210_v19 = vpop.f32.mrb[81].mxu1 }
0x13e6   : > { %v19150_v51 = vpop.f32.mrb[121].mxu0 }
0x13e8   : > { %v12538_v46 = vpop.f32.mrb[82].mxu1 }
0x13e9   : > { %v19220_v16 = vpop.f32.mrb[83].mxu1 }
0x13ec   : > { %v11562_v49 = vpop.f32.mrb[122].mxu0 }
0x13ed   : > { %v11563_v52 = vadd.f32 %v11562_v49, %v11486_v36  ;;  %v19155_v22 = vpop.f32.mrb[123].mxu0  ;;  %v12686_v13 = vpop.f32.mrb[84].mxu1 }
0x13ee   : > { %v19230_v21 = vpop.f32.mrb[85].mxu1 }
0x13f0   : > { %v11636_v6 = vpop.f32.mrb[124].mxu0 }
0x13f1   : > { %v11637_v28 = vadd.f32 %v11636_v6, %v11563_v52  ;;  %v19160_v33 = vpop.f32.mrb[125].mxu0  ;;  %v12839_v7 = vpop.f32.mrb[86].mxu1 }
0x13f2   : > { %v19240_v29 = vpop.f32.mrb[87].mxu1 }
0x13f4   : > { %v11710_v40 = vpop.f32.mrb[126].mxu0 }
0x13f5   : > { %v11711_v5 = vadd.f32 %v11710_v40, %v11637_v28  ;;  %v19165_v24 = vpop.f32.mrb[127].mxu0  ;;  %v12989_v37 = vpop.f32.mrb[88].mxu1 }
0x13f6   : > { %v19250_v43 = vpop.f32.mrb[89].mxu1 }
0x13f8   : > { %v11784_v44 = vpop.f32.mrb[128].mxu0 }
0x13f9   : > { %v11785_v47 = vadd.f32 %v11784_v44, %v11711_v5  ;;  %v19170_v27 = vpop.f32.mrb[129].mxu0  ;;  %v13137_v35 = vpop.f32.mrb[90].mxu1 }
0x13fa   : > { %v19260_v60 = vpop.f32.mrb[91].mxu1 }
0x13fc   : > { %v11856_v11 = vpop.f32.mrb[130].mxu0 }
0x13fd   : > { %v11857_v34 = vadd.f32 %v11856_v11, %v11785_v47  ;;  %v19175_v41 = vpop.f32.mrb[131].mxu0  ;;  %v13293_v53 = vpop.f32.mrb[92].mxu1 }
0x13fe   : > { %v19270_v2 = vpop.f32.mrb[93].mxu1 }
0x13ff   : > { %v11936_v15 = vadd.f32 %v11935_v9, %v11857_v34 }
0x1400   : > { %v12011_v57 = vpop.f32.mrb[132].mxu0 }
0x1401   : > { %v12012_v61 = vadd.f32 %v12011_v57, %v11936_v15  ;;  %v19185_v55 = vpop.f32.mrb[133].mxu0  ;;  %v13443_v58 = vpop.f32.mrb[94].mxu1 }
0x1402   : > { %v19280_v39 = vpop.f32.mrb[95].mxu1 }
0x1403   : > { %v12086_v59 = vadd.f32 %v12085_v26, %v12012_v61 }
0x1404   : > { %v12159_v14 = vpop.f32.mrb[134].mxu0 }
0x1405   : > { %v12160_v18 = vadd.f32 %v12159_v14, %v12086_v59  ;;  %v19195_v30 = vpop.f32.mrb[135].mxu0  ;;  %v13591_v31 = vpop.f32.mrb[96].mxu1 }
0x1406   : > { %v19290_v63 = vpop.f32.mrb[97].mxu1 }
0x1407   : > { %v12234_v48 = vadd.f32 %v12233_v17, %v12160_v18  ;;  %v14126_v63 = vpop.permute.xlu1 %14125 }
0x1408   : > { %v12305_v56 = vpop.f32.mrb[136].mxu0 }
0x1409   : > { %v12306_v10 = vadd.f32 %v12305_v56, %v12234_v48  ;;  %v19205_v12 = vpop.f32.mrb[137].mxu0  ;;  %v13747_v1 = vpop.f32.mrb[98].mxu1 }
0x140a   : > { %v19300_v62 = vpop.f32.mrb[99].mxu1 }
0x140c   : > { %v12464_v45 = vpop.f32.mrb[138].mxu0 }
0x140d   : > { %v12465_v3 = vadd.f32 %v12464_v45, %v12388_v23  ;;  %v19215_v42 = vpop.f32.mrb[139].mxu0  ;;  %v13897_v0 = vpop.f32.mrb[100].mxu1 }
0x140e   : > { %v19310_v32 = vpop.f32.mrb[101].mxu1 }
0x140f   : > { %v12539_v9 = vadd.f32 %v12538_v46, %v12465_v3 }
0x1410   : > { %v12612_v38 = vpop.f32.mrb[140].mxu0 }
0x1411   : > { %v12613_v8 = vadd.f32 %v12612_v38, %v12539_v9  ;;  %v19225_v26 = vpop.f32.mrb[141].mxu0 }
0x1412   : > { %v14045_v50 = vpop.f32.mrb[102].mxu1 }
0x1413   : > { %v12687_v36 = vadd.f32 %v12686_v13, %v12613_v8  ;;  %v19320_v19 = vpop.f32.mrb[103].mxu1 }
0x1414   : > { %v12758_v51 = vpop.f32.mrb[142].mxu0 }
0x1415   : > { %v12759_v16 = vadd.f32 %v12758_v51, %v12687_v36  ;;  %v19235_v17 = vpop.f32.mrb[143].mxu0  ;;  %v14586_v51 = vld [vmem:[#allocation5 + $0x100] sm:$0xff] }
0x1416   : > { %v22292_v17 = vld [vmem:[#allocation5 + $0x128] sm:$0xff] }
0x1417   : > { %v12762_v49 = vadd.f32 %v12759_v16, %v12306_v10  ;;  %v14589_v16 = vld [vmem:[#allocation5 + $0x118] sm:$0xff] }
0x1418   : > { %v12915_v52 = vpop.f32.mrb[144].mxu0 }
0x1419   : > { %v12916_v22 = vadd.f32 %v12915_v52, %v12839_v7  ;;  %v19245_v21 = vpop.f32.mrb[145].mxu0  ;;  %v17589_v52 = vld [vmem:[#allocation5 + $0x130] sm:$0xff] }
0x141b   : > { %v12990_v6 = vadd.f32 %v12989_v37, %v12916_v22  ;;  %v17590_v22 = vld [vmem:[#allocation5 + $0x138] sm:$0xff] }
0x141c   : > { %v13063_v28 = vpop.f32.mrb[146].mxu0 }
0x141d   : > { %v13064_v23 = vadd.f32 %v13063_v28, %v12990_v6  ;;  %v19255_v33 = vpop.f32.mrb[147].mxu0 }
0x141f   : > { %v13138_v29 = vadd.f32 %v13137_v35, %v13064_v23 }
0x1420   : > { %v13209_v40 = vpop.f32.mrb[148].mxu0 }
0x1421   : > { %v13210_v46 = vadd.f32 %v13209_v40, %v13138_v29  ;;  %v19265_v5 = vpop.f32.mrb[149].mxu0 }
0x1423   : > { %v13213_v24 = vadd.f32 %v13210_v46, %v12762_v49  ;;  %v22294_v49 = vld [vmem:[#allocation5 + $0x120] sm:$0xff] }
0x1424   : > { %v13369_v43 = vpop.f32.mrb[150].mxu0 }
0x1425   : > { %v13370_v44 = vadd.f32 %v13369_v43, %v13293_v53  ;;  %v19275_v13 = vpop.f32.mrb[151].mxu0 }
0x1427   : > { %v13444_v47 = vadd.f32 %v13443_v58, %v13370_v44 }
0x1428   : > { %v13517_v27 = vpop.f32.mrb[152].mxu0 }
0x1429   : > { %v13518_v60 = vadd.f32 %v13517_v27, %v13444_v47  ;;  %v19285_v11 = vpop.f32.mrb[153].mxu0 }
0x142b   : > { %v13592_v34 = vadd.f32 %v13591_v31, %v13518_v60  ;;  %v14212_v31 = vsub.f32 %v22247_v4, %v22250_v20  ;;  %v14588_v4 = vld [vmem:[#allocation5 + $0x110] sm:$0xff] }
0x142c   : > { %v13663_v41 = vpop.f32.mrb[154].mxu0  ;;  %v14595_v9 = vsel %vm22545_vm9, %v14588_v4, 0 }
0x142d   : > { %v13664_v7 = vadd.f32 %v13663_v41, %v13592_v34  ;;  %v19295_v2 = vpop.f32.mrb[155].mxu0  ;;  %v14213_v12 = vand.u32 4294901760, %v14212_v31  ;;  %v22274_v38 = vand.u32 4294901760, %v14595_v9 }
0x142f   : > { %v13667_v37 = vadd.f32 %v13664_v7, %v13213_v24  ;;  %v14214_v45 = vsub.f32 %v14212_v31, %v14213_v12  ;;  %v14667_v8 = vsub.f32 %v14595_v9, %v22274_v38 }
0x1430   : > { %v13823_v15 = vpop.f32.mrb[156].mxu0 }
0x1431   : > { %v13824_v57 = vadd.f32 %v13823_v15, %v13747_v1  ;;  %v19305_v61 = vpop.f32.mrb[157].mxu0  ;;  %v14668_v26 = vand.u32 4294901760, %v14667_v8 }
0x1433   : > { %v13898_v35 = vadd.f32 %v13897_v0, %v13824_v57  ;;  %v14215_v0 = vand.u32 4294901760, %v14214_v45 }
0x1434   : > { %v13971_v55 = vpop.f32.mrb[158].mxu0 }
0x1435   : > { %v13972_v39 = vadd.f32 %v13971_v55, %v13898_v35  ;;  %v19315_v59 = vpop.f32.mrb[159].mxu0 }
0x1437   : > { %v14046_v14 = vadd.f32 %v14045_v50, %v13972_v39  ;;  %v14669_v50 = vsub.f32 %v14667_v8, %v14668_v26 }
0x1438   : > { %v14117_v18 = vpop.f32.mrb[160].mxu0 }
0x1439   : > { %v14118_v53 = vadd.f32 %v14117_v18, %v14046_v14  ;;  %v19325_v30 = vpop.f32.mrb[161].mxu0  ;;  %v14670_v36 = vand.u32 4294901760, %v14669_v50 }
0x143b   : > { %v14121_v58 = vadd.f32 %v14118_v53, %v13667_v37  ;;  %19358 = vmatprep.mubr.f32.mxu0 %v14670_v36 }
0x143d   : > { %v14128_v48 = vadd.f32 %v14126_v63, %v14121_v58 }
0x143f   : > { %v14129_v56 = vmax.f32 %v14128_v48, 0.0 }
0x1441   : > { %v14132_v10 = vsel %vm22544_vm7, %v14129_v56, 0 }
0x1442   : > { %v14200_v1 = vand.u32 4294901760, %v14132_v10 }
0x1444   : > { %v14201_v62 = vsub.f32 %v14132_v10, %v14200_v1 }
0x1446   : > { %v14202_v3 = vand.u32 4294901760, %v14201_v62 }
0x1448   : > { %v14203_v42 = vsub.f32 %v14201_v62, %v14202_v3 }
0x144a   : > { %v14204_v32 = vand.u32 4294901760, %v14203_v42 }
0x144c   : > { %19329 = vmatmul.mubr.f32.vlgmr.msra.gmra.mrb[104].mxu1 %v14204_v32 }
0x144d   : > { %19332 = vmatpush3.msra.mxu1 %v14215_v0  ;;  %19333 = vmatprep.mubr.msk.f32.mxu1 %vm20263_vm0, %v20259_v25 }
0x144e   : > { %19336 = vmatprep.subr.mxu1 %v20259_v25 }
0x1454   : > { %19334 = vmatmul.mubr.f32.vlgmr.msra.gmra.mrb[104].mxu1 %v14200_v1 }
0x1455   : > { %19337 = vmatpush3.msra.mxu1 %v14212_v31  ;;  %19338 = vmatprep.mubr.msk.f32.mxu1 %vm20263_vm0, %v20259_v25 }
0x1456   : > { %19341 = vmatprep.subr.mxu1 %v20259_v25 }
0x145c   : > { %19339 = vmatmul.mubr.f32.vlgmr.msra.gmra.mrb[104].mxu1 %v14201_v62 }
0x145d   : > { %19342 = vmatpush3.msra.mxu1 %v22250_v20  ;;  %19343 = vmatprep.mubr.msk.f32.mxu1 %vm20263_vm0, %v20259_v25 }
0x145e   : > { %19346 = vmatprep.subr.mxu1 %v20259_v25 }
0x1464   : > { %19344 = vmatmul.mubr.f32.vlgmr.msra.gmra.mrb[104].mxu1 %v14202_v3 }
0x1465   : > { %19347 = vmatpush3.msra.mxu1 %v14213_v12  ;;  %19348 = vmatprep.mubr.msk.f32.mxu1 %vm20263_vm0, %v20259_v25 }
0x1466   : > { %19351 = vmatprep.subr.mxu1 %v20259_v25 }
0x146c   : > { %19349 = vmatmul.mubr.f32.vlgmr.msra.gmra.mrb[104].mxu1 %v14200_v1 }
0x146d   : > { %19352 = vmatpush3.msra.mxu1 %v22250_v20  ;;  %19353 = vmatprep.mubr.msk.f32.mxu1 %vm20263_vm0, %v20259_v25  ;;  %v14587_v20 = vld [vmem:[#allocation5 + $0x108] sm:$0xff]  ;;  %vm22546_vm0 = vmmov %vm22525_vm2 }
0x146e   : > { %v14598_v21 = vsel %vm22546_vm0, %v14589_v16, 0  ;;  %vm22547_vm15 = vmmov %vm22546_vm0 }
0x146f   : > { %v14676_v6 = vand.u32 4294901760, %v14598_v21  ;;  %v15090_v47 = vsel %vm22547_vm15, %v14586_v51, 0  ;;  %vm22548_vm2 = vmmov %vm22546_vm0 }
0x1470   : > { %v15161_v27 = vand.u32 4294901760, %v15090_v47  ;;  %v15093_v11 = vsel %vm22548_vm2, %v14587_v20, 0  ;;  %vm22549_vm11 = vmmov %vm22546_vm0 }
0x1471   : > { %v14677_v28 = vsub.f32 %v14598_v21, %v14676_v6  ;;  %v15171_v7 = vand.u32 4294901760, %v15093_v11  ;;  %v15590_v18 = vsel %vm22549_vm11, %v22294_v49, 0  ;;  %vm22550_vm14 = vmmov %vm22546_vm0 }
0x1472   : > { %v15162_v34 = vsub.f32 %v15090_v47, %v15161_v27  ;;  %v15661_v53 = vand.u32 4294901760, %v15590_v18  ;;  %v15593_v63 = vsel %vm22550_vm14, %v22292_v17, 0  ;;  %vm22551_vm1 = vmmov %vm22546_vm0 }
0x1473   : > { %v14678_v23 = vand.u32 4294901760, %v14677_v28  ;;  %v15172_v37 = vsub.f32 %v15093_v11, %v15171_v7  ;;  %v15671_v31 = vand.u32 4294901760, %v15593_v63  ;;  %vm22552_vm13 = vmmov %vm22546_vm0 }
0x1474   : > { %19354 = vmatmul.mubr.f32.vlgmr.msra.gmra.mrb[104].mxu1 %v14200_v1  ;;  %v15163_v2 = vand.u32 4294901760, %v15162_v34  ;;  %v15662_v48 = vsub.f32 %v15590_v18, %v15661_v53  ;;  %vm22553_vm8 = vmmov %vm22546_vm0 }
0x1475   : > { %v14679_v33 = vsub.f32 %v14677_v28, %v14678_v23  ;;  %v15173_v61 = vand.u32 4294901760, %v15172_v37  ;;  %v15672_v12 = vsub.f32 %v15593_v63, %v15671_v31  ;;  %vm22554_vm6 = vmmov %vm22546_vm0 }
0x1476   : > { %v15164_v57 = vsub.f32 %v15162_v34, %v15163_v2  ;;  %v15663_v10 = vand.u32 4294901760, %v15662_v48  ;;  %vm22555_vm4 = vmmov %vm22546_vm0 }
0x1477   : > { %v14680_v46 = vand.u32 4294901760, %v14679_v33  ;;  %v15174_v59 = vsub.f32 %v15172_v37, %v15173_v61  ;;  %v15673_v45 = vand.u32 4294901760, %v15672_v12  ;;  %vm22556_vm12 = vmmov %vm22546_vm0 }
0x1478   : > { %v15165_v55 = vand.u32 4294901760, %v15164_v57  ;;  %v15664_v62 = vsub.f32 %v15662_v48, %v15663_v10 }
0x1479   : > { %v15175_v14 = vand.u32 4294901760, %v15174_v59  ;;  %v15674_v32 = vsub.f32 %v15672_v12, %v15673_v45 }
0x147a   : > { %v15665_v42 = vand.u32 4294901760, %v15664_v62 }
0x1547   : > { %v22277_v19 = vpop.f32.mrb[104].mxu1 }
0x1548   : > { %15586 = vrot.lane.b32.xlu1 %v22277_v19, %s20258_s17  ;;  %14591 = vrot.lane.b32.xlu0 %v22277_v19, %s20257_s15  ;;  %v19355_v25 = vpop.f32.mrb[105].mxu1  ;;  %14581 = vst.msk [vmem:[%s21309_s22 + $0x30] sm:$0xff] %vm14580_vm10, %v22277_v19  ;;  %v15096_v60 = vand.u32 4294901760, %v22277_v19  ;;  %s20184_s15 = sshll.u32 %s20271_s29, 4  ;;  %s20185_s15 = int_to_ptr.vmem [resolvable:$false] %s20184_s15 }
0x1549   : > { %s20186_s17 = scalar_lea.vmem %s20185_s15, 2048  ;;  %p20187_p10 = scmp.lt.s32.totalorder %s22336_s18, %s20185_s15 }
0x154a   : > { %v15183_v41 = vsub.f32 %v22277_v19, %v15096_v60  ;;  %p20188_p13 = scmp.lt.s32.totalorder %s20186_s17, %s20180_s19 }
0x154c   : > { %16088 = vrot.lane.b32.xlu1 %v14587_v20, %s20265_s28  ;;  %16086 = vrot.lane.b32.xlu0 %v14586_v51, %s20265_s28  ;;  %v15184_v15 = vand.u32 4294901760, %v15183_v41  ;;  %p20189_p3 = por %p20188_p13, %p20187_p10 }
0x154e   : > { %v15185_v35 = vsub.f32 %v15183_v41, %v15184_v15  ;;  %p20190_p7 = pnand %p20189_p3, %p20183_p8 }
0x1550   : > { %16585 = vrot.lane.b32.xlu1 %v14588_v4, %s20265_s28  ;;  %14582 = vrot.lane.b32.xlu0 %v21470_v54, %s20268_s4  ;;  %v15186_v39 = vand.u32 4294901760, %v15185_v35  ;;  %v15675_v4 = vand.u32 4294901760, %v15674_v32 }
0x1554   : > { %16589 = vrot.lane.b32.xlu1 %v21470_v54, %s20269_s5  ;;  %16587 = vrot.lane.b32.xlu0 %v14589_v16, %s20265_s28 }
0x1558   : > { %17089 = vrot.lane.b32.xlu1 %v22292_v17, %s20265_s28  ;;  %17087 = vrot.lane.b32.xlu0 %v22294_v49, %s20265_s28 }
0x155c   : > { %17593 = vperm.xlu1 %20121, %v17589_v52   ;;  %17091 = vrot.lane.b32.xlu0 %v21470_v54, %s20270_s6 }
0x1560   : > { %17598 = vperm.xlu0 %20120, %v17590_v22  }
0x15ba   : > { %v14592_v29 = vpop.permute.xlu0 %14591  ;;  %v15587_v30 = vpop.permute.xlu1 %15586 }
0x15bb   : > { %v14601_v40 = vand.u32 4294901760, %v14592_v29  ;;  %v15596_v58 = vand.u32 4294901760, %v15587_v30 }
0x15bd   : > { %v14688_v5 = vsub.f32 %v14592_v29, %v14601_v40  ;;  %19356 = vmatprep.subr.mxu0 %v14601_v40  ;;  %v15683_v56 = vsub.f32 %v15587_v30, %v15596_v58 }
0x15be   : > { %19357 = vmatpush3.msra.mxu0 %v14601_v40  ;;  %v22302_v24 = vpop.permute.xlu0 %16086  ;;  %v16089_v50 = vpop.permute.xlu1 %16088 }
0x15bf   : > { %19359 = vmatmul.mubr.f32.vlgmr.msra.gmra.mrb[162].mxu0 %v14680_v46  ;;  %v14689_v43 = vand.u32 4294901760, %v14688_v5  ;;  %v15684_v1 = vand.u32 4294901760, %v15683_v56  ;;  %v16090_v9 = vsel %vm22551_vm1, %v22302_v24, 0  ;;  %v16092_v36 = vsel %vm22552_vm13, %v16089_v50, 0 }
0x15c0   : > { %19363 = vmatprep.mubr.f32.mxu0 %v22274_v38  ;;  %v16170_v20 = vand.u32 4294901760, %v16092_v36 }
0x15c1   : > { %v14690_v54 = vsub.f32 %v14688_v5, %v14689_v43  ;;  %v15685_v3 = vsub.f32 %v15683_v56, %v15684_v1 }
0x15c2   : > { %v22305_v44 = vpop.permute.xlu0 %14582  ;;  %v16171_v17 = vsub.f32 %v16092_v36, %v16170_v20 }
0x15c3   : > { %14585 = vst.msk [vmem:[%s21309_s22 + $0x38] sm:$0xff] %vm14580_vm10, %v22305_v44  ;;  %v14691_v13 = vand.u32 4294901760, %v14690_v54  ;;  %v15686_v0 = vand.u32 4294901760, %v15685_v3 }
0x15c4   : > { %v16172_v22 = vand.u32 4294901760, %v16171_v17 }
0x15c5   : > { %19361 = vmatprep.subr.mxu0 %v14691_v13 }
0x15c6   : > { %19362 = vmatpush3.msra.mxu0 %v14691_v13  ;;  %v16588_v24 = vpop.permute.xlu0 %16587 }
0x15c7   : > { %19364 = vmatmul.mubr.f32.vlgmr.msra.gmra.mrb[162].mxu0 %v14676_v6  ;;  %19366 = vmatprep.subr.mxu0 %v14688_v5 }
0x15c8   : > { %19367 = vmatpush3.msra.mxu0 %v14688_v5  ;;  %19368 = vmatprep.mubr.f32.mxu0 %v14667_v8  ;;  %v16095_v8 = vand.u32 4294901760, %v22305_v44 }
0x15c9   : > { %19371 = vmatprep.subr.mxu0 %v14601_v40 }
0x15ca   : > { %v16182_v19 = vsub.f32 %v22305_v44, %v16095_v8 }
0x15cc   : > { %v16183_v51 = vand.u32 4294901760, %v16182_v19 }
0x15ce   : > { %v16184_v49 = vsub.f32 %v16182_v19, %v16183_v51 }
0x15cf   : > { %19369 = vmatmul.mubr.f32.vlgmr.msra.gmra.mrb[162].mxu0 %v14677_v28 }
0x15d0   : > { %19372 = vmatpush3.msra.mxu0 %v14601_v40  ;;  %19373 = vmatprep.mubr.f32.mxu0 %v14668_v26  ;;  %v16185_v21 = vand.u32 4294901760, %v16184_v49 }
0x15d1   : > { %19376 = vmatprep.subr.mxu0 %v14689_v43 }
0x15d7   : > { %19374 = vmatmul.mubr.f32.vlgmr.msra.gmra.mrb[162].mxu0 %v14678_v23  ;;  %v16586_v23 = vpop.permute.xlu1 %16585 }
0x15d8   : > { %19377 = vmatpush3.msra.mxu0 %v14689_v43  ;;  %19378 = vmatprep.mubr.f32.mxu0 %v22274_v38  ;;  %v16592_v33 = vsel %vm22553_vm8, %v16586_v23, 0  ;;  %v16594_v43 = vsel %vm22554_vm6, %v16588_v24, 0 }
0x15d9   : > { %19381 = vmatprep.subr.mxu0 %v14601_v40  ;;  %v16662_v29 = vand.u32 4294901760, %v16592_v33  ;;  %v16672_v13 = vand.u32 4294901760, %v16594_v43 }
0x15db   : > { %v16663_v5 = vsub.f32 %v16592_v33, %v16662_v29 }
0x15dd   : > { %v16664_v44 = vand.u32 4294901760, %v16663_v5 }
0x15df   : > { %19379 = vmatmul.mubr.f32.vlgmr.msra.gmra.mrb[162].mxu0 %v14676_v6 }
0x15e0   : > { %19382 = vmatpush3.msra.mxu0 %v14601_v40  ;;  %19383 = vmatprep.mubr.f32.mxu0 %v22274_v38  ;;  %v16160_v38 = vand.u32 4294901760, %v16090_v9  ;;  %v16590_v40 = vpop.permute.xlu1 %16589 }
0x15e1   : > { %19386 = vmatprep.subr.mxu0 %v15096_v60  ;;  %v16597_v46 = vand.u32 4294901760, %v16590_v40 }
0x15e2   : > { %v16161_v26 = vsub.f32 %v16090_v9, %v16160_v38 }
0x15e3   : > { %v16684_v54 = vsub.f32 %v16590_v40, %v16597_v46 }
0x15e4   : > { %v16162_v25 = vand.u32 4294901760, %v16161_v26  ;;  %v17090_v59 = vpop.permute.xlu1 %17089 }
0x15e5   : > { %v16685_v47 = vand.u32 4294901760, %v16684_v54 }
0x15e6   : > { %v16163_v16 = vsub.f32 %v16161_v26, %v16162_v25 }
0x15e7   : > { %19384 = vmatmul.mubr.f32.vlgmr.msra.gmra.mrb[162].mxu0 %v14676_v6  ;;  %v16173_v6 = vsub.f32 %v16171_v17, %v16172_v22  ;;  %v16686_v11 = vsub.f32 %v16684_v54, %v16685_v47 }
0x15e8   : > { %19387 = vmatpush3.msra.mxu0 %v15096_v60  ;;  %19388 = vmatprep.mubr.f32.mxu0 %v15165_v55  ;;  %v16164_v52 = vand.u32 4294901760, %v16163_v16 }
0x15e9   : > { %19391 = vmatprep.subr.mxu0 %v15186_v39  ;;  %v16174_v28 = vand.u32 4294901760, %v16173_v6 }
0x15ef   : > { %19389 = vmatmul.mubr.f32.vlgmr.msra.gmra.mrb[162].mxu0 %v15175_v14  ;;  %v17096_v14 = vsel %vm22556_vm12, %v17090_v59, 0 }
0x15f0   : > { %19392 = vmatpush3.msra.mxu0 %v15186_v39  ;;  %19393 = vmatprep.mubr.f32.mxu0 %v15161_v27  ;;  %v17174_v30 = vand.u32 4294901760, %v17096_v14 }
0x15f1   : > { %19396 = vmatprep.subr.mxu0 %v15183_v41 }
0x15f7   : > { %19394 = vmatmul.mubr.f32.vlgmr.msra.gmra.mrb[162].mxu0 %v15171_v7 }
0x15f8   : > { %19397 = vmatpush3.msra.mxu0 %v15183_v41  ;;  %19398 = vmatprep.mubr.f32.mxu0 %v15162_v34 }
0x15f9   : > { %19401 = vmatprep.subr.mxu0 %v15096_v60 }
0x15ff   : > { %19399 = vmatmul.mubr.f32.vlgmr.msra.gmra.mrb[162].mxu0 %v15172_v37 }
0x1600   : > { %19402 = vmatpush3.msra.mxu0 %v15096_v60  ;;  %19403 = vmatprep.mubr.f32.mxu0 %v15163_v2 }
0x1601   : > { %19406 = vmatprep.subr.mxu0 %v15184_v15 }
0x1607   : > { %19404 = vmatmul.mubr.f32.vlgmr.msra.gmra.mrb[162].mxu0 %v15173_v61 }
0x1608   : > { %19407 = vmatpush3.msra.mxu0 %v15184_v15  ;;  %19408 = vmatprep.mubr.f32.mxu0 %v15161_v27  ;;  %v17088_v15 = vpop.permute.xlu0 %17087 }
0x1609   : > { %19411 = vmatprep.subr.mxu0 %v15096_v60  ;;  %v17094_v57 = vsel %vm22555_vm4, %v17088_v15, 0 }
0x160a   : > { %v17164_v61 = vand.u32 4294901760, %v17094_v57 }
0x160c   : > { %v17092_v35 = vpop.permute.xlu0 %17091  ;;  %v17165_v39 = vsub.f32 %v17094_v57, %v17164_v61 }
0x160d   : > { %v17099_v55 = vand.u32 4294901760, %v17092_v35 }
0x160f   : > { %19409 = vmatmul.mubr.f32.vlgmr.msra.gmra.mrb[162].mxu0 %v15171_v7  ;;  %v17186_v18 = vsub.f32 %v17092_v35, %v17099_v55 }
0x1610   : > { %19412 = vmatpush3.msra.mxu0 %v15096_v60  ;;  %19413 = vmatprep.mubr.f32.mxu0 %v15161_v27  ;;  %v16665_v27 = vsub.f32 %v16663_v5, %v16664_v44  ;;  %v16673_v60 = vsub.f32 %v16594_v43, %v16672_v13 }
0x1611   : > { %19416 = vmatprep.subr.mxu0 %v15596_v58 }
0x1612   : > { %v16666_v34 = vand.u32 4294901760, %v16665_v27  ;;  %v16674_v41 = vand.u32 4294901760, %v16673_v60 }
0x1614   : > { %v16675_v2 = vsub.f32 %v16673_v60, %v16674_v41 }
0x1616   : > { %v16676_v37 = vand.u32 4294901760, %v16675_v2 }
0x1617   : > { %19414 = vmatmul.mubr.f32.vlgmr.msra.gmra.mrb[162].mxu0 %v15171_v7  ;;  %v16687_v7 = vand.u32 4294901760, %v16686_v11 }
0x1618   : > { %19417 = vmatpush3.msra.mxu0 %v15596_v58  ;;  %19418 = vmatprep.mubr.f32.mxu0 %v15665_v42  ;;  %v17594_v42 = vpop.permute.xlu1 %17593 }
0x1619   : > { %19421 = vmatprep.subr.mxu0 %v15686_v0 }
0x161f   : > { %19419 = vmatmul.mubr.f32.vlgmr.msra.gmra.mrb[162].mxu0 %v15675_v4 }
0x1620   : > { %19422 = vmatpush3.msra.mxu0 %v15686_v0  ;;  %19423 = vmatprep.mubr.f32.mxu0 %v15661_v53 }
0x1621   : > { %19426 = vmatprep.subr.mxu0 %v15683_v56 }
0x1627   : > { %19424 = vmatmul.mubr.f32.vlgmr.msra.gmra.mrb[162].mxu0 %v15671_v31 }
0x1628   : > { %19427 = vmatpush3.msra.mxu0 %v15683_v56  ;;  %19428 = vmatprep.mubr.f32.mxu0 %v15662_v48  ;;  %v17175_v48 = vsub.f32 %v17096_v14, %v17174_v30 }
0x1629   : > { %19431 = vmatprep.subr.mxu0 %v15596_v58 }
0x162f   : > { %19429 = vmatmul.mubr.f32.vlgmr.msra.gmra.mrb[162].mxu0 %v15672_v12 }
0x1630   : > { %19432 = vmatpush3.msra.mxu0 %v15596_v58  ;;  %19433 = vmatprep.mubr.f32.mxu0 %v15663_v10  ;;  %v17176_v10 = vand.u32 4294901760, %v17175_v48 }
0x1631   : > { %19436 = vmatprep.subr.mxu0 %v15684_v1 }
0x1637   : > { %19434 = vmatmul.mubr.f32.vlgmr.msra.gmra.mrb[162].mxu0 %v15673_v45  ;;  %v17599_v45 = vpop.permute.xlu0 %17598 }
0x1638   : > { %19437 = vmatpush3.msra.mxu0 %v15684_v1  ;;  %19438 = vmatprep.mubr.f32.mxu0 %v15661_v53  ;;  %v17177_v1 = vsub.f32 %v17175_v48, %v17176_v10 }
0x1639   : > { %19441 = vmatprep.subr.mxu0 %v15596_v58 }
0x163a   : > { %v17178_v62 = vand.u32 4294901760, %v17177_v1 }
0x163f   : > { %19439 = vmatmul.mubr.f32.vlgmr.msra.gmra.mrb[162].mxu0 %v15671_v31 }
0x1640   : > { %19442 = vmatpush3.msra.mxu0 %v15596_v58  ;;  %19443 = vmatprep.mubr.f32.mxu0 %v15661_v53  ;;  %v17166_v53 = vand.u32 4294901760, %v17165_v39  ;;  %v17187_v58 = vand.u32 4294901760, %v17186_v18 }
0x1641   : > { %19446 = vmatprep.subr.mxu0 %v16095_v8 }
0x1642   : > { %v17167_v63 = vsub.f32 %v17165_v39, %v17166_v53 }
0x1644   : > { %v17168_v56 = vand.u32 4294901760, %v17167_v63 }
0x1647   : > { %19444 = vmatmul.mubr.f32.vlgmr.msra.gmra.mrb[162].mxu0 %v15671_v31  ;;  %v17188_v31 = vsub.f32 %v17186_v18, %v17187_v58 }
0x1648   : > { %19447 = vmatpush3.msra.mxu0 %v16095_v8  ;;  %19448 = vmatprep.mubr.f32.mxu0 %v16164_v52 }
0x1649   : > { %19451 = vmatprep.subr.mxu0 %v16185_v21  ;;  %v17189_v12 = vand.u32 4294901760, %v17188_v31 }
0x164f   : > { %19449 = vmatmul.mubr.f32.vlgmr.msra.gmra.mrb[162].mxu0 %v16174_v28 }
0x1650   : > { %19452 = vmatpush3.msra.mxu0 %v16185_v21  ;;  %19453 = vmatprep.mubr.f32.mxu0 %v16160_v38 }
0x1651   : > { %19456 = vmatprep.subr.mxu0 %v16182_v19 }
0x1657   : > { %19454 = vmatmul.mubr.f32.vlgmr.msra.gmra.mrb[162].mxu0 %v16170_v20 }
0x1658   : > { %19457 = vmatpush3.msra.mxu0 %v16182_v19  ;;  %19458 = vmatprep.mubr.f32.mxu0 %v16161_v26 }
0x1659   : > { %19461 = vmatprep.subr.mxu0 %v16095_v8 }
0x165f   : > { %19459 = vmatmul.mubr.f32.vlgmr.msra.gmra.mrb[162].mxu0 %v16171_v17 }
0x1660   : > { %19462 = vmatpush3.msra.mxu0 %v16095_v8  ;;  %19463 = vmatprep.mubr.f32.mxu0 %v16162_v25 }
0x1661   : > { %19466 = vmatprep.subr.mxu0 %v16183_v51 }
0x1667   : > { %19464 = vmatmul.mubr.f32.vlgmr.msra.gmra.mrb[162].mxu0 %v16172_v22 }
0x1668   : > { %19467 = vmatpush3.msra.mxu0 %v16183_v51  ;;  %19468 = vmatprep.mubr.f32.mxu0 %v16160_v38 }
0x1669   : > { %19471 = vmatprep.subr.mxu0 %v16095_v8 }
0x166f   : > { %19469 = vmatmul.mubr.f32.vlgmr.msra.gmra.mrb[162].mxu0 %v16170_v20 }
0x1670   : > { %19472 = vmatpush3.msra.mxu0 %v16095_v8  ;;  %19473 = vmatprep.mubr.f32.mxu0 %v16160_v38 }
0x1671   : > { %19476 = vmatprep.subr.mxu0 %v16597_v46 }
0x1677   : > { %19474 = vmatmul.mubr.f32.vlgmr.msra.gmra.mrb[162].mxu0 %v16170_v20 }
0x1678   : > { %19477 = vmatpush3.msra.mxu0 %v16597_v46  ;;  %19478 = vmatprep.mubr.f32.mxu0 %v16666_v34 }
0x1679   : > { %19481 = vmatprep.subr.mxu0 %v16687_v7 }
0x167f   : > { %19479 = vmatmul.mubr.f32.vlgmr.msra.gmra.mrb[162].mxu0 %v16676_v37 }
0x1680   : > { %19482 = vmatpush3.msra.mxu0 %v16687_v7  ;;  %19483 = vmatprep.mubr.f32.mxu0 %v16662_v29 }
0x1681   : > { %19486 = vmatprep.subr.mxu0 %v16684_v54 }
0x1687   : > { %19484 = vmatmul.mubr.f32.vlgmr.msra.gmra.mrb[162].mxu0 %v16672_v13 }
0x1688   : > { %19487 = vmatpush3.msra.mxu0 %v16684_v54  ;;  %19488 = vmatprep.mubr.f32.mxu0 %v16663_v5 }
0x1689   : > { %19491 = vmatprep.subr.mxu0 %v16597_v46 }
0x168f   : > { %19489 = vmatmul.mubr.f32.vlgmr.msra.gmra.mrb[162].mxu0 %v16673_v60 }
0x1690   : > { %19492 = vmatpush3.msra.mxu0 %v16597_v46  ;;  %19493 = vmatprep.mubr.f32.mxu0 %v16664_v44 }
0x1691   : > { %19496 = vmatprep.subr.mxu0 %v16685_v47 }
0x1697   : > { %19494 = vmatmul.mubr.f32.vlgmr.msra.gmra.mrb[162].mxu0 %v16674_v41 }
0x1698   : > { %19497 = vmatpush3.msra.mxu0 %v16685_v47  ;;  %19498 = vmatprep.mubr.f32.mxu0 %v16662_v29 }
0x1699   : > { %19501 = vmatprep.subr.mxu0 %v16597_v46 }
0x169f   : > { %19499 = vmatmul.mubr.f32.vlgmr.msra.gmra.mrb[162].mxu0 %v16672_v13 }
0x16a0   : > { %19502 = vmatpush3.msra.mxu0 %v16597_v46  ;;  %19503 = vmatprep.mubr.f32.mxu0 %v16662_v29 }
0x16a1   : > { %19506 = vmatprep.subr.mxu0 %v17099_v55 }
0x16a7   : > { %19504 = vmatmul.mubr.f32.vlgmr.msra.gmra.mrb[162].mxu0 %v16672_v13 }
0x16a8   : > { %19507 = vmatpush3.msra.mxu0 %v17099_v55  ;;  %19508 = vmatprep.mubr.f32.mxu0 %v17168_v56 }
0x16a9   : > { %19511 = vmatprep.subr.mxu0 %v17189_v12 }
0x16af   : > { %19509 = vmatmul.mubr.f32.vlgmr.msra.gmra.mrb[162].mxu0 %v17178_v62 }
0x16b0   : > { %19512 = vmatpush3.msra.mxu0 %v17189_v12  ;;  %19513 = vmatprep.mubr.f32.mxu0 %v17164_v61 }
0x16b1   : > { %19516 = vmatprep.subr.mxu0 %v17186_v18 }
0x16b7   : > { %19514 = vmatmul.mubr.f32.vlgmr.msra.gmra.mrb[162].mxu0 %v17174_v30 }
0x16b8   : > { %19517 = vmatpush3.msra.mxu0 %v17186_v18  ;;  %19518 = vmatprep.mubr.f32.mxu0 %v17165_v39 }
0x16b9   : > { %19521 = vmatprep.subr.mxu0 %v17099_v55 }
0x16bf   : > { %19519 = vmatmul.mubr.f32.vlgmr.msra.gmra.mrb[162].mxu0 %v17175_v48 }
0x16c0   : > { %19522 = vmatpush3.msra.mxu0 %v17099_v55  ;;  %19523 = vmatprep.mubr.f32.mxu0 %v17166_v53 }
0x16c1   : > { %19526 = vmatprep.subr.mxu0 %v17187_v58 }
0x16c7   : > { %19524 = vmatmul.mubr.f32.vlgmr.msra.gmra.mrb[162].mxu0 %v17176_v10 }
0x16c8   : > { %19527 = vmatpush3.msra.mxu0 %v17187_v58  ;;  %19528 = vmatprep.mubr.f32.mxu0 %v17164_v61 }
0x16c9   : > { %19531 = vmatprep.subr.mxu0 %v17099_v55 }
0x16cf   : > { %19529 = vmatmul.mubr.f32.vlgmr.msra.gmra.mrb[162].mxu0 %v17174_v30 }
0x16d0   : > { %19532 = vmatpush3.msra.mxu0 %v17099_v55  ;;  %19533 = vmatprep.mubr.f32.mxu0 %v17164_v61 }
0x16d7   : > { %19534 = vmatmul.mubr.f32.vlgmr.msra.gmra.mrb[162].mxu0 %v17174_v30 }
0x17aa   : > { %v19535_v3 = vpop.f32.mrb[162].mxu0 }
0x17ab   : > { %v17602_v0 = vadd.f32 %v19535_v3, %v17599_v45  ;;  %v17577_v32 = vpop.f32.mrb[163].mxu0 }
0x17ac   : > { %v17601_v4 = vadd.f32 %v17594_v42, %v17577_v32 }
0x17ad   : > { %v17604_v9 = vmax.f32 %v17602_v0, 0.0 }
0x17ae   : > { %v17603_v38 = vmax.f32 %v17601_v4, 0.0 }
0x17af   : > { %17607 = vst.msk [vmem:[%s21309_s22 + $0x8] sm:$0xff] %vm17605_vm3, %v17604_v9 }
0x17b0   : > { %17606 = vst.msk [vmem:[%s21309_s22] sm:$0xff] %vm17605_vm3, %v17603_v38 }
0x17b1   : > { %20193 = shalt.err (!%p20190_p7)
}
0x17b2   : > { %s20194_s27 = scalar_lea.hbm %s22334_s26, 1024  ;;  %s20198_s28 = scalar_lea.hbm %s22384_s2, 2048 }
0x17b3   : > { %p20195_p9 = scmp.ne.s32.totalorder %s22334_s26, %s20194_s27  ;;  %p20199_p0 = scmp.lt.u32.totalorder %s22334_s26, %s22384_s2 }
0x17b4   : > { %p20200_p1 = scmp.lt.u32.totalorder %s20198_s28, %s20194_s27  ;;  %p20202_p4 = scmp.lt.u32.totalorder %s20194_s27, %s22334_s26 }
0x17b5   : > { %p20196_p2 = pnand %p20195_p9, %p20380_p12 }
0x17b6   : > { %p20201_p11 = por %p20200_p1, %p20199_p0 }
0x17b7   : > { %p20197_p5 = pneg %p20196_p2 }
0x17b8   : > { %p20203_p6 = por %p20202_p4, %p20201_p11 }
0x17ba   : > { %p20204_p8 = pnand %p20203_p6, %p20197_p5 }
0x17bc   : > { %20207 = shalt.err (!%p20204_p8)
}
0x17bd   : > { %s20272_s4 = smov 128   ;;  %s20273_s5 = smov 8  }
0x17be   : > { %20050 = dma.vmem_to_hbm [thread:$0]  (%p20380_p12), %s22336_s18, 1024, %s22334_s26, %s17609_s13, %s20272_s4, %s20272_s4, %s20273_s5  }
0x17bf PF: > { %s17637_s6 = sand.u32 1, %s20238_s9   ;;  %p22557_p10 = scmp.ne.s32.totalorder %s22438_s16, 0 }
0x17c0   : > { %p22558_p13 = scmp.ge.s32.totalorder %s20250_s12, 2  ;;  %s17638_s7 = scalar_lea.sflag [#allocation4], %s17637_s6 }
0x17c2   : > { %p20061_p3 = pnand %p22558_p13, %p22557_p10 }
0x17c4   : > { %20233 = dma.done.wait (!%p20061_p3), %s17638_s7, 1024  }
0x17c5   : > { %20235 = vsyncadd (!%p20061_p3), %s17638_s7, 4294966272  ;;  %p16_p7 = scmp.ge.s32.totalorder %s20345_s21, 4   ;;  %s22559_s9 = smov %s20242_s10 }
0x17c6   : > { %s22560_s10 = smov %s20246_s11  ;;  %s22561_s11 = smov %s20376_s8 }
0x17c7   : > { %s22562_s12 = smov %s20345_s21  ;;  %18 = sbr.rel (!%p16_p7) target bundleno = 6 (0x6), region = 77 }
0x17ce   :  { %17643 = vsyncpa [#allocation3], 1 }
0x17cf   :  { %17645 = vsyncpa [#allocation3 + $0x1], 1 }
0x17d0   :  { %17646 = vsyncpa [#allocation6], 1 }
0x17d1   :  { %17647 = vsyncpa [#allocation4], 1 }
0x17d2   :  { %17649 = vsyncpa [#allocation4 + $0x1], 1 }

</bundles_post_ra>
